<compile_context>
chip_gen: v5e
topology: v5e:2x2
jax: 0.10.0
libtpu: 0.0.40
codegen_flags: <defaults>
</compile_context>

<pallas_src>
import functools

import jax
import jax.numpy as jnp
import numpy as np
from jax.experimental import pallas as pl
from jax.experimental.pallas import tpu as pltpu

EPS = 1e-5


# ----------------------------------------------------------------------------
# In-kernel helpers
# ----------------------------------------------------------------------------
def _conv3x3_taps(a, wf):
    """3x3 conv (stride 1, zero pad 1) as 9 accumulating MXU matmuls.

    a:  (Nb, H, W, C) bfloat16 activation tile (unpadded, channel-minor).
    wf: (9*C, Cout) bfloat16 folded weights, row order (dy, dx, cin).
    Returns a (Nb*H*W, Cout) float32 accumulator.

    Each tap is a plain shifted window of the zero-padded bf16 tile feeding
    one matmul that accumulates into a float32 accumulator -- no 9*C-wide
    im2col patch temporary and no lane-granularity concatenates.  On v7x the
    MRB accumulates these in place; on v5e/v6e the extra result pops are noise
    next to the HBM-bound outer loop.
    """
    nb, h, w, c = a.shape
    cout = wf.shape[1]
    # Zero-padded tile, built write-once in bf16 (operand dtype of the MXU).
    zc = jnp.zeros((nb, h, 1, c), a.dtype)
    ap = jnp.concatenate([zc, a, zc], axis=2)            # (nb, h,   w+2, c)
    zr = jnp.zeros((nb, 1, w + 2, c), a.dtype)
    ap = jnp.concatenate([zr, ap, zr], axis=1)           # (nb, h+2, w+2, c)
    acc = jnp.zeros((nb * h * w, cout), jnp.float32)
    for dy in range(3):
        band = ap[:, dy:dy + h, :, :]                    # contiguous row band
        for dx in range(3):
            tap = band[:, :, dx:dx + w, :].reshape(nb * h * w, c)
            wk = wf[(dy * 3 + dx) * c:(dy * 3 + dx + 1) * c, :]
            acc = acc + jnp.dot(tap, wk, preferred_element_type=jnp.float32)
    return acc


def _partial_stats(acc):
    """Per-channel [sum, sum-of-squares] of an (M, C) f32 accumulator -> (2, C)."""
    return jnp.concatenate(
        [jnp.sum(acc, axis=0, keepdims=True),
         jnp.sum(acc * acc, axis=0, keepdims=True)], axis=0)


# ----------------------------------------------------------------------------
# Kernels (grid = (N // Nb,), Nb images per step, axis marked "parallel")
# ----------------------------------------------------------------------------
def _conv1_stats_kernel(x_ref, wf_ref, y_ref, st_ref, *, h, w):
    # x_ref:  (Nb, C, H*W) f32 NCHW view      wf_ref: (9*C, C) bf16
    # y_ref:  (Nb, C, H*W) bf16 raw conv1 output (lane-dense)
    # st_ref: (1, 2, C) f32 partial BN1 statistics for this grid step
    nb, c, hw = x_ref.shape
    # NCHW -> channel-minor (batched 2-D transpose), cast to bf16 *before*
    # padding / tap building so all large temporaries are bf16.
    a = jnp.transpose(x_ref[...], (0, 2, 1)).reshape(nb, h, w, c)
    acc = _conv3x3_taps(a.astype(jnp.bfloat16), wf_ref[...])   # (nb*h*w, c) f32
    st_ref[0] = _partial_stats(acc)                            # stats from f32 acc
    y = jnp.transpose(acc.reshape(nb, hw, c), (0, 2, 1))       # back to NCHW view
    y_ref[...] = y.astype(jnp.bfloat16)


def _bn_relu_conv2_stats_kernel(y1_ref, wf_ref, sc_ref, sh_ref, y2_ref, st_ref,
                                *, h, w):
    # y1_ref: (Nb, C, H*W) bf16 raw conv1 output; sc/sh: (C, 1) fused BN1 affine
    # y2_ref: (Nb, C, H*W) bf16 raw conv2 output; st_ref: (1, 2, C) partial stats
    nb, c, hw = y1_ref.shape
    # bn1 + relu on full-width lane-dense vregs, f32 math.
    a = jnp.maximum(y1_ref[...].astype(jnp.float32) * sc_ref[...] + sh_ref[...],
                    0.0)
    a = jnp.transpose(a, (0, 2, 1)).reshape(nb, h, w, c)
    acc = _conv3x3_taps(a.astype(jnp.bfloat16), wf_ref[...])
    st_ref[0] = _partial_stats(acc)
    y2 = jnp.transpose(acc.reshape(nb, hw, c), (0, 2, 1))
    y2_ref[...] = y2.astype(jnp.bfloat16)


def _bn2_add_relu_kernel(y2_ref, x_ref, sc_ref, sh_ref, out_ref):
    # out = relu(bn2(conv2_raw) + identity); pure elementwise, all operands in
    # the lane-dense (Nb, C, H*W) NCHW view, no relayout needed.
    t = y2_ref[...].astype(jnp.float32) * sc_ref[...] + sh_ref[...]
    out_ref[...] = jnp.maximum(t + x_ref[...], 0.0)


# ----------------------------------------------------------------------------
# Host-side helpers
# ----------------------------------------------------------------------------
def _tpu_vmem_capacity():
    try:
        cap = getattr(pltpu.get_tpu_info(), "vmem_capacity_bytes", None)
        if cap:
            return int(cap)
    except Exception:
        pass
    return 64 << 20   # conservative default (v7x-sized VMEM)


def _choose_block(n, h, w, c, vmem_cap):
    """Images per grid step: largest block fitting ~half of VMEM while keeping
    >= ~8 grid steps (double-buffering + megacore sharding) when possible."""
    # Pass 2 is the heaviest: double-buffered bf16 in/out tiles, padded bf16
    # tile, f32 accumulator and relayout transients -- ~40 B per activation elem.
    per_img = 40 * h * w * c
    nb_fit = max(1, (vmem_cap // 2) // per_img)
    nb_pipe = max(1, n // 8)
    nb = int(min(nb_fit, nb_pipe, n))
    while n % nb:                       # largest divisor of N that still fits
        nb -= 1
    return nb


def _compiler_params(vmem_cap):
    # Generation-aware: ~48 MiB on v7x (64 MiB physical), ~96 MiB on v5e/v6e.
    limit = max(32 << 20, min(vmem_cap * 3 // 4, 112 << 20))
    return pltpu.CompilerParams(dimension_semantics=("parallel",),
                                vmem_limit_bytes=int(limit))


def _bn_affine(stat_sums, count, gamma, beta):
    """Fold global batch statistics + (gamma, beta) into per-channel scale/shift."""
    mean = stat_sums[0] / count
    # E[x^2] - E[x]^2 (clamped); partial sums are f32 per grid step, so
    # cancellation only matters for |mean| >> std over very large N*H*W.
    # TODO(synk): switch to a Welford/Chan combine of per-step (mean, M2) if
    #             huge batches with large activation means are expected.
    var = jnp.maximum(stat_sums[1] / count - mean * mean, 0.0)
    scale = gamma.astype(jnp.float32) * jax.lax.rsqrt(var + EPS)
    shift = beta.astype(jnp.float32) - mean * scale
    return scale, shift


# ----------------------------------------------------------------------------
# Wrapper (NCHW in / NCHW out, PyTorch convention)
# ----------------------------------------------------------------------------
def basic_block(x_nchw, w1, g1, b1, w2, g2, b2):
    """x_nchw: (N, C, H, W) f32;  w*: (3, 3, C, C) HWIO;  g*, b*: (C,)."""
    n, c, h, w = x_nchw.shape
    assert w1.shape == (3, 3, c, c) and w2.shape == (3, 3, c, c), (
        "stride != 1 / downsample (inplanes != planes) path not implemented")

    m = n * h * w
    x_flat = x_nchw.astype(jnp.float32).reshape(n, c, h * w)   # free NCHW view
    wf1 = w1.reshape(9 * c, c).astype(jnp.bfloat16)
    wf2 = w2.reshape(9 * c, c).astype(jnp.bfloat16)

    vmem_cap = _tpu_vmem_capacity()
    nb = _choose_block(n, h, w, c, vmem_cap)
    steps = n // nb
    cparams = _compiler_params(vmem_cap)

    act_spec = pl.BlockSpec((nb, c, h * w), lambda i: (i, 0, 0))
    st_spec = pl.BlockSpec((1, 2, c), lambda i: (i, 0, 0))
    w_spec = pl.BlockSpec((9 * c, c), lambda i: (0, 0))
    aff_spec = pl.BlockSpec((c, 1), lambda i: (0, 0))

    mid_shape = jax.ShapeDtypeStruct((n, c, h * w), jnp.bfloat16)
    st_shape = jax.ShapeDtypeStruct((steps, 2, c), jnp.float32)

    # ---- pass 1: conv1 (NCHW input) + partial BN1 statistics -----------------
    y1, st1 = pl.pallas_call(
        functools.partial(_conv1_stats_kernel, h=h, w=w),
        out_shape=(mid_shape, st_shape),
        grid=(steps,),
        in_specs=[act_spec, w_spec],
        out_specs=(act_spec, st_spec),
        compiler_params=cparams,
    )(x_flat, wf1)
    scale1, shift1 = _bn_affine(jnp.sum(st1, axis=0), m, g1, b1)

    # ---- pass 2: bn1 + relu + conv2 + partial BN2 statistics ------------------
    y2, st2 = pl.pallas_call(
        functools.partial(_bn_relu_conv2_stats_kernel, h=h, w=w),
        out_shape=(mid_shape, st_shape),
        grid=(steps,),
        in_specs=[act_spec, w_spec, aff_spec, aff_spec],
        out_specs=(act_spec, st_spec),
        compiler_params=cparams,
    )(y1, wf2, scale1.reshape(c, 1), shift1.reshape(c, 1))
    scale2, shift2 = _bn_affine(jnp.sum(st2, axis=0), m, g2, b2)

    # ---- pass 3: bn2 + residual add + relu (elementwise, lane-dense NCHW) -----
    out = pl.pallas_call(
        _bn2_add_relu_kernel,
        out_shape=jax.ShapeDtypeStruct((n, c, h * w), jnp.float32),
        grid=(steps,),
        in_specs=[act_spec, act_spec, aff_spec, aff_spec],
        out_specs=act_spec,
        compiler_params=cparams,
    )(y2, x_flat, scale2.reshape(c, 1), shift2.reshape(c, 1))
    return out.reshape(n, c, h, w)


# ----------------------------------------------------------------------------
# Pure-JAX references
# ----------------------------------------------------------------------------
def basic_block_ref(x_nchw, w1, g1, b1, w2, g2, b2, *, matched=False):
    """matched=False: full-f32 PyTorch train-mode numerics.
    matched=True : replicates the kernel's intentional roundings (bf16 conv
    operands + f32 accumulation, bf16 HBM storage of raw conv outputs, BN
    statistics from the f32 conv output, folded scale/shift affine)."""
    x = jnp.transpose(x_nchw, (0, 2, 3, 1)).astype(jnp.float32)
    cdt = jnp.bfloat16 if matched else jnp.float32

    def conv(a, wt):
        return jax.lax.conv_general_dilated(
            a.astype(cdt), wt.astype(cdt), window_strides=(1, 1), padding='SAME',
            dimension_numbers=('NHWC', 'HWIO', 'NHWC'),
            preferred_element_type=jnp.float32)

    def bn(raw, gma, bta):
        mean = raw.mean(axis=(0, 1, 2))
        var = ((raw - mean) ** 2).mean(axis=(0, 1, 2))    # biased, train mode
        scale = gma * jax.lax.rsqrt(var + EPS)
        shift = bta - mean * scale
        stored = raw.astype(jnp.bfloat16).astype(jnp.float32) if matched else raw
        return stored * scale + shift

    out = jax.nn.relu(bn(conv(x, w1), g1, b1))
    out = bn(conv(out, w2), g2, b2)
    out = jax.nn.relu(out + x)
    return jnp.transpose(out, (0, 3, 1, 2))


if __name__ == "__main__":
    key = jax.random.PRNGKey(0)
    k_x, k_w1, k_w2, k_g1, k_b1, k_g2, k_b2 = jax.random.split(key, 7)

    N, C, H, W = 2, 8, 16, 16          # inplanes = planes = 8, stride = 1
    x = jax.random.normal(k_x, (N, C, H, W), jnp.float32)

    fan_in = C * 3 * 3
    w1 = jax.random.normal(k_w1, (3, 3, C, C), jnp.float32) * (2.0 / fan_in) ** 0.5
    w2 = jax.random.normal(k_w2, (3, 3, C, C), jnp.float32) * (2.0 / fan_in) ** 0.5
    g1 = 1.0 + 0.1 * jax.random.normal(k_g1, (C,), jnp.float32)
    b1 = 0.1 * jax.random.normal(k_b1, (C,), jnp.float32)
    g2 = 1.0 + 0.1 * jax.random.normal(k_g2, (C,), jnp.float32)
    b2 = 0.1 * jax.random.normal(k_b2, (C,), jnp.float32)

    fwd = jax.jit(basic_block)
    out = jax.block_until_ready(fwd(x, w1, g1, b1, w2, g2, b2))
    out_np = np.asarray(out)

    # Tight check vs a matched-rounding reference (bf16 MXU operands, bf16
    # intermediate storage, f32 statistics) -- isolates kernel-structure bugs.
    ref_m = basic_block_ref(x, w1, g1, b1, w2, g2, b2, matched=True)
    np.testing.assert_allclose(out_np, np.asarray(ref_m), rtol=5e-3, atol=5e-3)

    # Looser check vs the full-f32 reference (bf16 rounding is the only
    # intentional deviation from exact PyTorch-f32 numerics).
    ref_f = basic_block_ref(x, w1, g1, b1, w2, g2, b2, matched=False)
    np.testing.assert_allclose(out_np, np.asarray(ref_f), rtol=5e-2, atol=5e-2)

    print("KERNEL_OK")
</pallas_src>

<mosaic_0001>
module attributes {stable_mosaic.version = 11 : i64} {
  func.func @_conv1_stats_kernel(%arg0: i32, %arg1: memref<1x8x256xf32, #tpu.memory_space<vmem>>, %arg2: memref<72x8xbf16, #tpu.memory_space<vmem>>, %arg3: memref<1x8x256xbf16, #tpu.memory_space<vmem>>, %arg4: memref<1x2x8xf32, #tpu.memory_space<vmem>>) attributes {dimension_semantics = [#tpu.dimension_semantics<parallel>], iteration_bounds = array<i64: 2>, scalar_prefetch = 0 : i64, scratch_operands = 0 : i64, tpu.core_type = #tpu.core_type<tc>, window_params = [{transform_indices = @transform_0, window_bounds = array<i64: 1, 8, 256>}, {pipeline_mode = #tpu.pipeline_mode<synchronous>, transform_indices = @transform_1, window_bounds = array<i64: 72, 8>}, {transform_indices = @transform_2, window_bounds = array<i64: 1, 8, 256>}, {transform_indices = @transform_3, window_bounds = array<i64: 1, 2, 8>}]} {
    %c0 = arith.constant 0 : index
    %c0_0 = arith.constant 0 : index
    %c0_1 = arith.constant 0 : index
    %0 = vector.load %arg1[%c0, %c0_0, %c0_1] : memref<1x8x256xf32, #tpu.memory_space<vmem>>, vector<1x8x256xf32>
    %1 = tpu.transpose %0, [0, 2, 1] : vector<1x8x256xf32> -> vector<1x256x8xf32>
    %2 = vector.shape_cast %1 : vector<1x256x8xf32> to vector<1x16x16x8xf32>
    %3 = arith.truncf %2 : vector<1x16x16x8xf32> to vector<1x16x16x8xbf16>
    %c0_2 = arith.constant 0 : index
    %c0_3 = arith.constant 0 : index
    %4 = vector.load %arg2[%c0_2, %c0_3] : memref<72x8xbf16, #tpu.memory_space<vmem>>, vector<72x8xbf16>
    %cst = arith.constant 0.000000e+00 : bf16
    %5 = vector.broadcast %cst : bf16 to vector<1x16x1x8xbf16>
    %6 = tpu.concatenate %5, %3, %5 in 2 : vector<1x16x1x8xbf16>, vector<1x16x16x8xbf16>, vector<1x16x1x8xbf16> -> vector<1x16x18x8xbf16>
    %cst_4 = arith.constant 0.000000e+00 : bf16
    %7 = vector.broadcast %cst_4 : bf16 to vector<1x1x18x8xbf16>
    %8 = tpu.concatenate %7, %6, %7 in 1 : vector<1x1x18x8xbf16>, vector<1x16x18x8xbf16>, vector<1x1x18x8xbf16> -> vector<1x18x18x8xbf16>
    %cst_5 = arith.constant 0.000000e+00 : f32
    %9 = vector.broadcast %cst_5 : f32 to vector<256x8xf32>
    %10 = vector.extract_strided_slice %8 {offsets = [0, 0, 0, 0], sizes = [1, 16, 18, 8], strides = [1, 1, 1, 1]} : vector<1x18x18x8xbf16> to vector<1x16x18x8xbf16>
    %11 = vector.extract_strided_slice %10 {offsets = [0, 0, 0, 0], sizes = [1, 16, 16, 8], strides = [1, 1, 1, 1]} : vector<1x16x18x8xbf16> to vector<1x16x16x8xbf16>
    %12 = vector.shape_cast %11 : vector<1x16x16x8xbf16> to vector<256x8xbf16>
    %13 = vector.extract_strided_slice %4 {offsets = [0, 0], sizes = [8, 8], strides = [1, 1]} : vector<72x8xbf16> to vector<8x8xbf16>
    %cst_6 = arith.constant dense<0.000000e+00> : vector<256x8xf32>
    %14 = tpu.matmul %12, %13, %cst_6 {dimension_numbers = #tpu.dot_dimension_numbers<[1], [0], [0], [1], [0, 0, 1, 1], [], []>} : vector<256x8xbf16>, vector<8x8xbf16>, vector<256x8xf32> -> vector<256x8xf32>
    %15 = arith.addf %9, %14 : vector<256x8xf32>
    %16 = vector.extract_strided_slice %10 {offsets = [0, 0, 1, 0], sizes = [1, 16, 16, 8], strides = [1, 1, 1, 1]} : vector<1x16x18x8xbf16> to vector<1x16x16x8xbf16>
    %17 = vector.shape_cast %16 : vector<1x16x16x8xbf16> to vector<256x8xbf16>
    %18 = vector.extract_strided_slice %4 {offsets = [8, 0], sizes = [8, 8], strides = [1, 1]} : vector<72x8xbf16> to vector<8x8xbf16>
    %cst_7 = arith.constant dense<0.000000e+00> : vector<256x8xf32>
    %19 = tpu.matmul %17, %18, %cst_7 {dimension_numbers = #tpu.dot_dimension_numbers<[1], [0], [0], [1], [0, 0, 1, 1], [], []>} : vector<256x8xbf16>, vector<8x8xbf16>, vector<256x8xf32> -> vector<256x8xf32>
    %20 = arith.addf %15, %19 : vector<256x8xf32>
    %21 = vector.extract_strided_slice %10 {offsets = [0, 0, 2, 0], sizes = [1, 16, 16, 8], strides = [1, 1, 1, 1]} : vector<1x16x18x8xbf16> to vector<1x16x16x8xbf16>
    %22 = vector.shape_cast %21 : vector<1x16x16x8xbf16> to vector<256x8xbf16>
    %23 = vector.extract_strided_slice %4 {offsets = [16, 0], sizes = [8, 8], strides = [1, 1]} : vector<72x8xbf16> to vector<8x8xbf16>
    %cst_8 = arith.constant dense<0.000000e+00> : vector<256x8xf32>
    %24 = tpu.matmul %22, %23, %cst_8 {dimension_numbers = #tpu.dot_dimension_numbers<[1], [0], [0], [1], [0, 0, 1, 1], [], []>} : vector<256x8xbf16>, vector<8x8xbf16>, vector<256x8xf32> -> vector<256x8xf32>
    %25 = arith.addf %20, %24 : vector<256x8xf32>
    %26 = vector.extract_strided_slice %8 {offsets = [0, 1, 0, 0], sizes = [1, 16, 18, 8], strides = [1, 1, 1, 1]} : vector<1x18x18x8xbf16> to vector<1x16x18x8xbf16>
    %27 = vector.extract_strided_slice %26 {offsets = [0, 0, 0, 0], sizes = [1, 16, 16, 8], strides = [1, 1, 1, 1]} : vector<1x16x18x8xbf16> to vector<1x16x16x8xbf16>
    %28 = vector.shape_cast %27 : vector<1x16x16x8xbf16> to vector<256x8xbf16>
    %29 = vector.extract_strided_slice %4 {offsets = [24, 0], sizes = [8, 8], strides = [1, 1]} : vector<72x8xbf16> to vector<8x8xbf16>
    %cst_9 = arith.constant dense<0.000000e+00> : vector<256x8xf32>
    %30 = tpu.matmul %28, %29, %cst_9 {dimension_numbers = #tpu.dot_dimension_numbers<[1], [0], [0], [1], [0, 0, 1, 1], [], []>} : vector<256x8xbf16>, vector<8x8xbf16>, vector<256x8xf32> -> vector<256x8xf32>
    %31 = arith.addf %25, %30 : vector<256x8xf32>
    %32 = vector.extract_strided_slice %26 {offsets = [0, 0, 1, 0], sizes = [1, 16, 16, 8], strides = [1, 1, 1, 1]} : vector<1x16x18x8xbf16> to vector<1x16x16x8xbf16>
    %33 = vector.shape_cast %32 : vector<1x16x16x8xbf16> to vector<256x8xbf16>
    %34 = vector.extract_strided_slice %4 {offsets = [32, 0], sizes = [8, 8], strides = [1, 1]} : vector<72x8xbf16> to vector<8x8xbf16>
    %cst_10 = arith.constant dense<0.000000e+00> : vector<256x8xf32>
    %35 = tpu.matmul %33, %34, %cst_10 {dimension_numbers = #tpu.dot_dimension_numbers<[1], [0], [0], [1], [0, 0, 1, 1], [], []>} : vector<256x8xbf16>, vector<8x8xbf16>, vector<256x8xf32> -> vector<256x8xf32>
    %36 = arith.addf %31, %35 : vector<256x8xf32>
    %37 = vector.extract_strided_slice %26 {offsets = [0, 0, 2, 0], sizes = [1, 16, 16, 8], strides = [1, 1, 1, 1]} : vector<1x16x18x8xbf16> to vector<1x16x16x8xbf16>
    %38 = vector.shape_cast %37 : vector<1x16x16x8xbf16> to vector<256x8xbf16>
    %39 = vector.extract_strided_slice %4 {offsets = [40, 0], sizes = [8, 8], strides = [1, 1]} : vector<72x8xbf16> to vector<8x8xbf16>
    %cst_11 = arith.constant dense<0.000000e+00> : vector<256x8xf32>
    %40 = tpu.matmul %38, %39, %cst_11 {dimension_numbers = #tpu.dot_dimension_numbers<[1], [0], [0], [1], [0, 0, 1, 1], [], []>} : vector<256x8xbf16>, vector<8x8xbf16>, vector<256x8xf32> -> vector<256x8xf32>
    %41 = arith.addf %36, %40 : vector<256x8xf32>
    %42 = vector.extract_strided_slice %8 {offsets = [0, 2, 0, 0], sizes = [1, 16, 18, 8], strides = [1, 1, 1, 1]} : vector<1x18x18x8xbf16> to vector<1x16x18x8xbf16>
    %43 = vector.extract_strided_slice %42 {offsets = [0, 0, 0, 0], sizes = [1, 16, 16, 8], strides = [1, 1, 1, 1]} : vector<1x16x18x8xbf16> to vector<1x16x16x8xbf16>
    %44 = vector.shape_cast %43 : vector<1x16x16x8xbf16> to vector<256x8xbf16>
    %45 = vector.extract_strided_slice %4 {offsets = [48, 0], sizes = [8, 8], strides = [1, 1]} : vector<72x8xbf16> to vector<8x8xbf16>
    %cst_12 = arith.constant dense<0.000000e+00> : vector<256x8xf32>
    %46 = tpu.matmul %44, %45, %cst_12 {dimension_numbers = #tpu.dot_dimension_numbers<[1], [0], [0], [1], [0, 0, 1, 1], [], []>} : vector<256x8xbf16>, vector<8x8xbf16>, vector<256x8xf32> -> vector<256x8xf32>
    %47 = arith.addf %41, %46 : vector<256x8xf32>
    %48 = vector.extract_strided_slice %42 {offsets = [0, 0, 1, 0], sizes = [1, 16, 16, 8], strides = [1, 1, 1, 1]} : vector<1x16x18x8xbf16> to vector<1x16x16x8xbf16>
    %49 = vector.shape_cast %48 : vector<1x16x16x8xbf16> to vector<256x8xbf16>
    %50 = vector.extract_strided_slice %4 {offsets = [56, 0], sizes = [8, 8], strides = [1, 1]} : vector<72x8xbf16> to vector<8x8xbf16>
    %cst_13 = arith.constant dense<0.000000e+00> : vector<256x8xf32>
    %51 = tpu.matmul %49, %50, %cst_13 {dimension_numbers = #tpu.dot_dimension_numbers<[1], [0], [0], [1], [0, 0, 1, 1], [], []>} : vector<256x8xbf16>, vector<8x8xbf16>, vector<256x8xf32> -> vector<256x8xf32>
    %52 = arith.addf %47, %51 : vector<256x8xf32>
    %53 = vector.extract_strided_slice %42 {offsets = [0, 0, 2, 0], sizes = [1, 16, 16, 8], strides = [1, 1, 1, 1]} : vector<1x16x18x8xbf16> to vector<1x16x16x8xbf16>
    %54 = vector.shape_cast %53 : vector<1x16x16x8xbf16> to vector<256x8xbf16>
    %55 = vector.extract_strided_slice %4 {offsets = [64, 0], sizes = [8, 8], strides = [1, 1]} : vector<72x8xbf16> to vector<8x8xbf16>
    %cst_14 = arith.constant dense<0.000000e+00> : vector<256x8xf32>
    %56 = tpu.matmul %54, %55, %cst_14 {dimension_numbers = #tpu.dot_dimension_numbers<[1], [0], [0], [1], [0, 0, 1, 1], [], []>} : vector<256x8xbf16>, vector<8x8xbf16>, vector<256x8xf32> -> vector<256x8xf32>
    %57 = arith.addf %52, %56 : vector<256x8xf32>
    %cst_15 = arith.constant dense<0.000000e+00> : vector<8xf32>
    %58 = vector.multi_reduction <add>, %57, %cst_15 [0] : vector<256x8xf32> to vector<8xf32>
    %59 = vector.shape_cast %58 : vector<8xf32> to vector<1x8xf32>
    %60 = arith.mulf %57, %57 : vector<256x8xf32>
    %cst_16 = arith.constant dense<0.000000e+00> : vector<8xf32>
    %61 = vector.multi_reduction <add>, %60, %cst_16 [0] : vector<256x8xf32> to vector<8xf32>
    %62 = vector.shape_cast %61 : vector<8xf32> to vector<1x8xf32>
    %63 = tpu.concatenate %59, %62 in 0 : vector<1x8xf32>, vector<1x8xf32> -> vector<2x8xf32>
    %c0_17 = arith.constant 0 : index
    %c0_18 = arith.constant 0 : index
    %c0_19 = arith.constant 0 : index
    %64 = vector.load %arg4[%c0_17, %c0_18, %c0_19] : memref<1x2x8xf32, #tpu.memory_space<vmem>>, vector<1x2x8xf32>
    %65 = vector.shape_cast %64 : vector<1x2x8xf32> to vector<2x8xf32>
    %66 = vector.shape_cast %63 : vector<2x8xf32> to vector<1x2x8xf32>
    tpu.vector_store %arg4[%c0_17, %c0_18, %c0_19], %66 {strides = array<i32>} : memref<1x2x8xf32, #tpu.memory_space<vmem>>, vector<1x2x8xf32>,
    %67 = vector.shape_cast %57 : vector<256x8xf32> to vector<1x256x8xf32>
    %68 = tpu.transpose %67, [0, 2, 1] : vector<1x256x8xf32> -> vector<1x8x256xf32>
    %69 = arith.truncf %68 : vector<1x8x256xf32> to vector<1x8x256xbf16>
    %c0_20 = arith.constant 0 : index
    %c0_21 = arith.constant 0 : index
    %c0_22 = arith.constant 0 : index
    %70 = vector.load %arg3[%c0_20, %c0_21, %c0_22] : memref<1x8x256xbf16, #tpu.memory_space<vmem>>, vector<1x8x256xbf16>
    tpu.vector_store %arg3[%c0_20, %c0_21, %c0_22], %69 {strides = array<i32>} : memref<1x8x256xbf16, #tpu.memory_space<vmem>>, vector<1x8x256xbf16>,
    return
  }
  func.func @transform_0(%arg0: i32) -> (i32, i32, i32) {
    %c0_i32 = arith.constant 0 : i32
    %c0_i32_0 = arith.constant 0 : i32
    %c0_i32_1 = arith.constant 0 : i32
    return %arg0, %c0_i32, %c0_i32_0 : i32, i32, i32
  }
  func.func @transform_1(%arg0: i32) -> (i32, i32) {
    %c0_i32 = arith.constant 0 : i32
    %c0_i32_0 = arith.constant 0 : i32
    %c0_i32_1 = arith.constant 0 : i32
    return %c0_i32, %c0_i32_0 : i32, i32
  }
  func.func @transform_2(%arg0: i32) -> (i32, i32, i32) {
    %c0_i32 = arith.constant 0 : i32
    %c0_i32_0 = arith.constant 0 : i32
    %c0_i32_1 = arith.constant 0 : i32
    return %arg0, %c0_i32, %c0_i32_0 : i32, i32, i32
  }
  func.func @transform_3(%arg0: i32) -> (i32, i32, i32) {
    %c0_i32 = arith.constant 0 : i32
    %c0_i32_0 = arith.constant 0 : i32
    %c0_i32_1 = arith.constant 0 : i32
    return %arg0, %c0_i32, %c0_i32_0 : i32, i32, i32
  }
}

module attributes {stable_mosaic.version = 11 : i64} {
  func.func @_bn2_add_relu_kernel(%arg0: i32, %arg1: memref<1x8x256xbf16, #tpu.memory_space<vmem>>, %arg2: memref<1x8x256xf32, #tpu.memory_space<vmem>>, %arg3: memref<8x1xf32, #tpu.memory_space<vmem>>, %arg4: memref<8x1xf32, #tpu.memory_space<vmem>>, %arg5: memref<1x8x256xf32, #tpu.memory_space<vmem>>) attributes {dimension_semantics = [#tpu.dimension_semantics<parallel>], iteration_bounds = array<i64: 2>, scalar_prefetch = 0 : i64, scratch_operands = 0 : i64, tpu.core_type = #tpu.core_type<tc>, window_params = [{transform_indices = @transform_0, window_bounds = array<i64: 1, 8, 256>}, {transform_indices = @transform_1, window_bounds = array<i64: 1, 8, 256>}, {pipeline_mode = #tpu.pipeline_mode<synchronous>, transform_indices = @transform_2, window_bounds = array<i64: 8, 1>}, {pipeline_mode = #tpu.pipeline_mode<synchronous>, transform_indices = @transform_3, window_bounds = array<i64: 8, 1>}, {transform_indices = @transform_4, window_bounds = array<i64: 1, 8, 256>}]} {
    %c0 = arith.constant 0 : index
    %c0_0 = arith.constant 0 : index
    %c0_1 = arith.constant 0 : index
    %0 = vector.load %arg1[%c0, %c0_0, %c0_1] : memref<1x8x256xbf16, #tpu.memory_space<vmem>>, vector<1x8x256xbf16>
    %1 = arith.extf %0 : vector<1x8x256xbf16> to vector<1x8x256xf32>
    %c0_2 = arith.constant 0 : index
    %c0_3 = arith.constant 0 : index
    %2 = vector.load %arg3[%c0_2, %c0_3] : memref<8x1xf32, #tpu.memory_space<vmem>>, vector<8x1xf32>
    %3 = vector.shape_cast %2 : vector<8x1xf32> to vector<1x8x1xf32>
    %4 = vector.broadcast %3 : vector<1x8x1xf32> to vector<1x8x256xf32>
    %5 = arith.mulf %1, %4 : vector<1x8x256xf32>
    %c0_4 = arith.constant 0 : index
    %c0_5 = arith.constant 0 : index
    %6 = vector.load %arg4[%c0_4, %c0_5] : memref<8x1xf32, #tpu.memory_space<vmem>>, vector<8x1xf32>
    %7 = vector.shape_cast %6 : vector<8x1xf32> to vector<1x8x1xf32>
    %8 = vector.broadcast %7 : vector<1x8x1xf32> to vector<1x8x256xf32>
    %9 = arith.addf %5, %8 : vector<1x8x256xf32>
    %c0_6 = arith.constant 0 : index
    %c0_7 = arith.constant 0 : index
    %c0_8 = arith.constant 0 : index
    %10 = vector.load %arg2[%c0_6, %c0_7, %c0_8] : memref<1x8x256xf32, #tpu.memory_space<vmem>>, vector<1x8x256xf32>
    %11 = arith.addf %9, %10 : vector<1x8x256xf32>
    %cst = arith.constant 0.000000e+00 : f32
    %12 = vector.broadcast %cst : f32 to vector<1x8x256xf32>
    %13 = arith.maximumf %11, %12 : vector<1x8x256xf32>
    %c0_9 = arith.constant 0 : index
    %c0_10 = arith.constant 0 : index
    %c0_11 = arith.constant 0 : index
    %14 = vector.load %arg5[%c0_9, %c0_10, %c0_11] : memref<1x8x256xf32, #tpu.memory_space<vmem>>, vector<1x8x256xf32>
    tpu.vector_store %arg5[%c0_9, %c0_10, %c0_11], %13 {strides = array<i32>} : memref<1x8x256xf32, #tpu.memory_space<vmem>>, vector<1x8x256xf32>,
    return
  }
  func.func @transform_0(%arg0: i32) -> (i32, i32, i32) {
    %c0_i32 = arith.constant 0 : i32
    %c0_i32_0 = arith.constant 0 : i32
    %c0_i32_1 = arith.constant 0 : i32
    return %arg0, %c0_i32, %c0_i32_0 : i32, i32, i32
  }
  func.func @transform_1(%arg0: i32) -> (i32, i32, i32) {
    %c0_i32 = arith.constant 0 : i32
    %c0_i32_0 = arith.constant 0 : i32
    %c0_i32_1 = arith.constant 0 : i32
    return %arg0, %c0_i32, %c0_i32_0 : i32, i32, i32
  }
  func.func @transform_2(%arg0: i32) -> (i32, i32) {
    %c0_i32 = arith.constant 0 : i32
    %c0_i32_0 = arith.constant 0 : i32
    %c0_i32_1 = arith.constant 0 : i32
    return %c0_i32, %c0_i32_0 : i32, i32
  }
  func.func @transform_3(%arg0: i32) -> (i32, i32) {
    %c0_i32 = arith.constant 0 : i32
    %c0_i32_0 = arith.constant 0 : i32
    %c0_i32_1 = arith.constant 0 : i32
    return %c0_i32, %c0_i32_0 : i32, i32
  }
  func.func @transform_4(%arg0: i32) -> (i32, i32, i32) {
    %c0_i32 = arith.constant 0 : i32
    %c0_i32_0 = arith.constant 0 : i32
    %c0_i32_1 = arith.constant 0 : i32
    return %arg0, %c0_i32, %c0_i32_0 : i32, i32, i32
  }
}

module attributes {stable_mosaic.version = 11 : i64} {
  func.func @_bn_relu_conv2_stats_kernel(%arg0: i32, %arg1: memref<1x8x256xbf16, #tpu.memory_space<vmem>>, %arg2: memref<72x8xbf16, #tpu.memory_space<vmem>>, %arg3: memref<8x1xf32, #tpu.memory_space<vmem>>, %arg4: memref<8x1xf32, #tpu.memory_space<vmem>>, %arg5: memref<1x8x256xbf16, #tpu.memory_space<vmem>>, %arg6: memref<1x2x8xf32, #tpu.memory_space<vmem>>) attributes {dimension_semantics = [#tpu.dimension_semantics<parallel>], iteration_bounds = array<i64: 2>, scalar_prefetch = 0 : i64, scratch_operands = 0 : i64, tpu.core_type = #tpu.core_type<tc>, window_params = [{transform_indices = @transform_0, window_bounds = array<i64: 1, 8, 256>}, {pipeline_mode = #tpu.pipeline_mode<synchronous>, transform_indices = @transform_1, window_bounds = array<i64: 72, 8>}, {pipeline_mode = #tpu.pipeline_mode<synchronous>, transform_indices = @transform_2, window_bounds = array<i64: 8, 1>}, {pipeline_mode = #tpu.pipeline_mode<synchronous>, transform_indices = @transform_3, window_bounds = array<i64: 8, 1>}, {transform_indices = @transform_4, window_bounds = array<i64: 1, 8, 256>}, {transform_indices = @transform_5, window_bounds = array<i64: 1, 2, 8>}]} {
    %c0 = arith.constant 0 : index
    %c0_0 = arith.constant 0 : index
    %c0_1 = arith.constant 0 : index
    %0 = vector.load %arg1[%c0, %c0_0, %c0_1] : memref<1x8x256xbf16, #tpu.memory_space<vmem>>, vector<1x8x256xbf16>
    %1 = arith.extf %0 : vector<1x8x256xbf16> to vector<1x8x256xf32>
    %c0_2 = arith.constant 0 : index
    %c0_3 = arith.constant 0 : index
    %2 = vector.load %arg3[%c0_2, %c0_3] : memref<8x1xf32, #tpu.memory_space<vmem>>, vector<8x1xf32>
    %3 = vector.shape_cast %2 : vector<8x1xf32> to vector<1x8x1xf32>
    %4 = vector.broadcast %3 : vector<1x8x1xf32> to vector<1x8x256xf32>
    %5 = arith.mulf %1, %4 : vector<1x8x256xf32>
    %c0_4 = arith.constant 0 : index
    %c0_5 = arith.constant 0 : index
    %6 = vector.load %arg4[%c0_4, %c0_5] : memref<8x1xf32, #tpu.memory_space<vmem>>, vector<8x1xf32>
    %7 = vector.shape_cast %6 : vector<8x1xf32> to vector<1x8x1xf32>
    %8 = vector.broadcast %7 : vector<1x8x1xf32> to vector<1x8x256xf32>
    %9 = arith.addf %5, %8 : vector<1x8x256xf32>
    %cst = arith.constant 0.000000e+00 : f32
    %10 = vector.broadcast %cst : f32 to vector<1x8x256xf32>
    %11 = arith.maximumf %9, %10 : vector<1x8x256xf32>
    %12 = tpu.transpose %11, [0, 2, 1] : vector<1x8x256xf32> -> vector<1x256x8xf32>
    %13 = vector.shape_cast %12 : vector<1x256x8xf32> to vector<1x16x16x8xf32>
    %14 = arith.truncf %13 : vector<1x16x16x8xf32> to vector<1x16x16x8xbf16>
    %c0_6 = arith.constant 0 : index
    %c0_7 = arith.constant 0 : index
    %15 = vector.load %arg2[%c0_6, %c0_7] : memref<72x8xbf16, #tpu.memory_space<vmem>>, vector<72x8xbf16>
    %cst_8 = arith.constant 0.000000e+00 : bf16
    %16 = vector.broadcast %cst_8 : bf16 to vector<1x16x1x8xbf16>
    %17 = tpu.concatenate %16, %14, %16 in 2 : vector<1x16x1x8xbf16>, vector<1x16x16x8xbf16>, vector<1x16x1x8xbf16> -> vector<1x16x18x8xbf16>
    %cst_9 = arith.constant 0.000000e+00 : bf16
    %18 = vector.broadcast %cst_9 : bf16 to vector<1x1x18x8xbf16>
    %19 = tpu.concatenate %18, %17, %18 in 1 : vector<1x1x18x8xbf16>, vector<1x16x18x8xbf16>, vector<1x1x18x8xbf16> -> vector<1x18x18x8xbf16>
    %cst_10 = arith.constant 0.000000e+00 : f32
    %20 = vector.broadcast %cst_10 : f32 to vector<256x8xf32>
    %21 = vector.extract_strided_slice %19 {offsets = [0, 0, 0, 0], sizes = [1, 16, 18, 8], strides = [1, 1, 1, 1]} : vector<1x18x18x8xbf16> to vector<1x16x18x8xbf16>
    %22 = vector.extract_strided_slice %21 {offsets = [0, 0, 0, 0], sizes = [1, 16, 16, 8], strides = [1, 1, 1, 1]} : vector<1x16x18x8xbf16> to vector<1x16x16x8xbf16>
    %23 = vector.shape_cast %22 : vector<1x16x16x8xbf16> to vector<256x8xbf16>
    %24 = vector.extract_strided_slice %15 {offsets = [0, 0], sizes = [8, 8], strides = [1, 1]} : vector<72x8xbf16> to vector<8x8xbf16>
    %cst_11 = arith.constant dense<0.000000e+00> : vector<256x8xf32>
    %25 = tpu.matmul %23, %24, %cst_11 {dimension_numbers = #tpu.dot_dimension_numbers<[1], [0], [0], [1], [0, 0, 1, 1], [], []>} : vector<256x8xbf16>, vector<8x8xbf16>, vector<256x8xf32> -> vector<256x8xf32>
    %26 = arith.addf %20, %25 : vector<256x8xf32>
    %27 = vector.extract_strided_slice %21 {offsets = [0, 0, 1, 0], sizes = [1, 16, 16, 8], strides = [1, 1, 1, 1]} : vector<1x16x18x8xbf16> to vector<1x16x16x8xbf16>
    %28 = vector.shape_cast %27 : vector<1x16x16x8xbf16> to vector<256x8xbf16>
    %29 = vector.extract_strided_slice %15 {offsets = [8, 0], sizes = [8, 8], strides = [1, 1]} : vector<72x8xbf16> to vector<8x8xbf16>
    %cst_12 = arith.constant dense<0.000000e+00> : vector<256x8xf32>
    %30 = tpu.matmul %28, %29, %cst_12 {dimension_numbers = #tpu.dot_dimension_numbers<[1], [0], [0], [1], [0, 0, 1, 1], [], []>} : vector<256x8xbf16>, vector<8x8xbf16>, vector<256x8xf32> -> vector<256x8xf32>
    %31 = arith.addf %26, %30 : vector<256x8xf32>
    %32 = vector.extract_strided_slice %21 {offsets = [0, 0, 2, 0], sizes = [1, 16, 16, 8], strides = [1, 1, 1, 1]} : vector<1x16x18x8xbf16> to vector<1x16x16x8xbf16>
    %33 = vector.shape_cast %32 : vector<1x16x16x8xbf16> to vector<256x8xbf16>
    %34 = vector.extract_strided_slice %15 {offsets = [16, 0], sizes = [8, 8], strides = [1, 1]} : vector<72x8xbf16> to vector<8x8xbf16>
    %cst_13 = arith.constant dense<0.000000e+00> : vector<256x8xf32>
    %35 = tpu.matmul %33, %34, %cst_13 {dimension_numbers = #tpu.dot_dimension_numbers<[1], [0], [0], [1], [0, 0, 1, 1], [], []>} : vector<256x8xbf16>, vector<8x8xbf16>, vector<256x8xf32> -> vector<256x8xf32>
    %36 = arith.addf %31, %35 : vector<256x8xf32>
    %37 = vector.extract_strided_slice %19 {offsets = [0, 1, 0, 0], sizes = [1, 16, 18, 8], strides = [1, 1, 1, 1]} : vector<1x18x18x8xbf16> to vector<1x16x18x8xbf16>
    %38 = vector.extract_strided_slice %37 {offsets = [0, 0, 0, 0], sizes = [1, 16, 16, 8], strides = [1, 1, 1, 1]} : vector<1x16x18x8xbf16> to vector<1x16x16x8xbf16>
    %39 = vector.shape_cast %38 : vector<1x16x16x8xbf16> to vector<256x8xbf16>
    %40 = vector.extract_strided_slice %15 {offsets = [24, 0], sizes = [8, 8], strides = [1, 1]} : vector<72x8xbf16> to vector<8x8xbf16>
    %cst_14 = arith.constant dense<0.000000e+00> : vector<256x8xf32>
    %41 = tpu.matmul %39, %40, %cst_14 {dimension_numbers = #tpu.dot_dimension_numbers<[1], [0], [0], [1], [0, 0, 1, 1], [], []>} : vector<256x8xbf16>, vector<8x8xbf16>, vector<256x8xf32> -> vector<256x8xf32>
    %42 = arith.addf %36, %41 : vector<256x8xf32>
    %43 = vector.extract_strided_slice %37 {offsets = [0, 0, 1, 0], sizes = [1, 16, 16, 8], strides = [1, 1, 1, 1]} : vector<1x16x18x8xbf16> to vector<1x16x16x8xbf16>
    %44 = vector.shape_cast %43 : vector<1x16x16x8xbf16> to vector<256x8xbf16>
    %45 = vector.extract_strided_slice %15 {offsets = [32, 0], sizes = [8, 8], strides = [1, 1]} : vector<72x8xbf16> to vector<8x8xbf16>
    %cst_15 = arith.constant dense<0.000000e+00> : vector<256x8xf32>
    %46 = tpu.matmul %44, %45, %cst_15 {dimension_numbers = #tpu.dot_dimension_numbers<[1], [0], [0], [1], [0, 0, 1, 1], [], []>} : vector<256x8xbf16>, vector<8x8xbf16>, vector<256x8xf32> -> vector<256x8xf32>
    %47 = arith.addf %42, %46 : vector<256x8xf32>
    %48 = vector.extract_strided_slice %37 {offsets = [0, 0, 2, 0], sizes = [1, 16, 16, 8], strides = [1, 1, 1, 1]} : vector<1x16x18x8xbf16> to vector<1x16x16x8xbf16>
    %49 = vector.shape_cast %48 : vector<1x16x16x8xbf16> to vector<256x8xbf16>
    %50 = vector.extract_strided_slice %15 {offsets = [40, 0], sizes = [8, 8], strides = [1, 1]} : vector<72x8xbf16> to vector<8x8xbf16>
    %cst_16 = arith.constant dense<0.000000e+00> : vector<256x8xf32>
    %51 = tpu.matmul %49, %50, %cst_16 {dimension_numbers = #tpu.dot_dimension_numbers<[1], [0], [0], [1], [0, 0, 1, 1], [], []>} : vector<256x8xbf16>, vector<8x8xbf16>, vector<256x8xf32> -> vector<256x8xf32>
    %52 = arith.addf %47, %51 : vector<256x8xf32>
    %53 = vector.extract_strided_slice %19 {offsets = [0, 2, 0, 0], sizes = [1, 16, 18, 8], strides = [1, 1, 1, 1]} : vector<1x18x18x8xbf16> to vector<1x16x18x8xbf16>
    %54 = vector.extract_strided_slice %53 {offsets = [0, 0, 0, 0], sizes = [1, 16, 16, 8], strides = [1, 1, 1, 1]} : vector<1x16x18x8xbf16> to vector<1x16x16x8xbf16>
    %55 = vector.shape_cast %54 : vector<1x16x16x8xbf16> to vector<256x8xbf16>
    %56 = vector.extract_strided_slice %15 {offsets = [48, 0], sizes = [8, 8], strides = [1, 1]} : vector<72x8xbf16> to vector<8x8xbf16>
    %cst_17 = arith.constant dense<0.000000e+00> : vector<256x8xf32>
    %57 = tpu.matmul %55, %56, %cst_17 {dimension_numbers = #tpu.dot_dimension_numbers<[1], [0], [0], [1], [0, 0, 1, 1], [], []>} : vector<256x8xbf16>, vector<8x8xbf16>, vector<256x8xf32> -> vector<256x8xf32>
    %58 = arith.addf %52, %57 : vector<256x8xf32>
    %59 = vector.extract_strided_slice %53 {offsets = [0, 0, 1, 0], sizes = [1, 16, 16, 8], strides = [1, 1, 1, 1]} : vector<1x16x18x8xbf16> to vector<1x16x16x8xbf16>
    %60 = vector.shape_cast %59 : vector<1x16x16x8xbf16> to vector<256x8xbf16>
    %61 = vector.extract_strided_slice %15 {offsets = [56, 0], sizes = [8, 8], strides = [1, 1]} : vector<72x8xbf16> to vector<8x8xbf16>
    %cst_18 = arith.constant dense<0.000000e+00> : vector<256x8xf32>
    %62 = tpu.matmul %60, %61, %cst_18 {dimension_numbers = #tpu.dot_dimension_numbers<[1], [0], [0], [1], [0, 0, 1, 1], [], []>} : vector<256x8xbf16>, vector<8x8xbf16>, vector<256x8xf32> -> vector<256x8xf32>
    %63 = arith.addf %58, %62 : vector<256x8xf32>
    %64 = vector.extract_strided_slice %53 {offsets = [0, 0, 2, 0], sizes = [1, 16, 16, 8], strides = [1, 1, 1, 1]} : vector<1x16x18x8xbf16> to vector<1x16x16x8xbf16>
    %65 = vector.shape_cast %64 : vector<1x16x16x8xbf16> to vector<256x8xbf16>
    %66 = vector.extract_strided_slice %15 {offsets = [64, 0], sizes = [8, 8], strides = [1, 1]} : vector<72x8xbf16> to vector<8x8xbf16>
    %cst_19 = arith.constant dense<0.000000e+00> : vector<256x8xf32>
    %67 = tpu.matmul %65, %66, %cst_19 {dimension_numbers = #tpu.dot_dimension_numbers<[1], [0], [0], [1], [0, 0, 1, 1], [], []>} : vector<256x8xbf16>, vector<8x8xbf16>, vector<256x8xf32> -> vector<256x8xf32>
    %68 = arith.addf %63, %67 : vector<256x8xf32>
    %cst_20 = arith.constant dense<0.000000e+00> : vector<8xf32>
    %69 = vector.multi_reduction <add>, %68, %cst_20 [0] : vector<256x8xf32> to vector<8xf32>
    %70 = vector.shape_cast %69 : vector<8xf32> to vector<1x8xf32>
    %71 = arith.mulf %68, %68 : vector<256x8xf32>
    %cst_21 = arith.constant dense<0.000000e+00> : vector<8xf32>
    %72 = vector.multi_reduction <add>, %71, %cst_21 [0] : vector<256x8xf32> to vector<8xf32>
    %73 = vector.shape_cast %72 : vector<8xf32> to vector<1x8xf32>
    %74 = tpu.concatenate %70, %73 in 0 : vector<1x8xf32>, vector<1x8xf32> -> vector<2x8xf32>
    %c0_22 = arith.constant 0 : index
    %c0_23 = arith.constant 0 : index
    %c0_24 = arith.constant 0 : index
    %75 = vector.load %arg6[%c0_22, %c0_23, %c0_24] : memref<1x2x8xf32, #tpu.memory_space<vmem>>, vector<1x2x8xf32>
    %76 = vector.shape_cast %75 : vector<1x2x8xf32> to vector<2x8xf32>
    %77 = vector.shape_cast %74 : vector<2x8xf32> to vector<1x2x8xf32>
    tpu.vector_store %arg6[%c0_22, %c0_23, %c0_24], %77 {strides = array<i32>} : memref<1x2x8xf32, #tpu.memory_space<vmem>>, vector<1x2x8xf32>,
    %78 = vector.shape_cast %68 : vector<256x8xf32> to vector<1x256x8xf32>
    %79 = tpu.transpose %78, [0, 2, 1] : vector<1x256x8xf32> -> vector<1x8x256xf32>
    %80 = arith.truncf %79 : vector<1x8x256xf32> to vector<1x8x256xbf16>
    %c0_25 = arith.constant 0 : index
    %c0_26 = arith.constant 0 : index
    %c0_27 = arith.constant 0 : index
    %81 = vector.load %arg5[%c0_25, %c0_26, %c0_27] : memref<1x8x256xbf16, #tpu.memory_space<vmem>>, vector<1x8x256xbf16>
    tpu.vector_store %arg5[%c0_25, %c0_26, %c0_27], %80 {strides = array<i32>} : memref<1x8x256xbf16, #tpu.memory_space<vmem>>, vector<1x8x256xbf16>,
    return
  }
  func.func @transform_0(%arg0: i32) -> (i32, i32, i32) {
    %c0_i32 = arith.constant 0 : i32
    %c0_i32_0 = arith.constant 0 : i32
    %c0_i32_1 = arith.constant 0 : i32
    return %arg0, %c0_i32, %c0_i32_0 : i32, i32, i32
  }
  func.func @transform_1(%arg0: i32) -> (i32, i32) {
    %c0_i32 = arith.constant 0 : i32
    %c0_i32_0 = arith.constant 0 : i32
    %c0_i32_1 = arith.constant 0 : i32
    return %c0_i32, %c0_i32_0 : i32, i32
  }
  func.func @transform_2(%arg0: i32) -> (i32, i32) {
    %c0_i32 = arith.constant 0 : i32
    %c0_i32_0 = arith.constant 0 : i32
    %c0_i32_1 = arith.constant 0 : i32
    return %c0_i32, %c0_i32_0 : i32, i32
  }
  func.func @transform_3(%arg0: i32) -> (i32, i32) {
    %c0_i32 = arith.constant 0 : i32
    %c0_i32_0 = arith.constant 0 : i32
    %c0_i32_1 = arith.constant 0 : i32
    return %c0_i32, %c0_i32_0 : i32, i32
  }
  func.func @transform_4(%arg0: i32) -> (i32, i32, i32) {
    %c0_i32 = arith.constant 0 : i32
    %c0_i32_0 = arith.constant 0 : i32
    %c0_i32_1 = arith.constant 0 : i32
    return %arg0, %c0_i32, %c0_i32_0 : i32, i32, i32
  }
  func.func @transform_5(%arg0: i32) -> (i32, i32, i32) {
    %c0_i32 = arith.constant 0 : i32
    %c0_i32_0 = arith.constant 0 : i32
    %c0_i32_1 = arith.constant 0 : i32
    return %arg0, %c0_i32, %c0_i32_0 : i32, i32, i32
  }
}

</mosaic_0001>

<bundles_post_ra>
// kernel: basic_block.5
= control target key start
LH: loop header
LB: loop body
LE: loop exit
PB: predicated region body
PF: predicated region fallthrough
CT: control target
= control target key end

     0   :  { %s372_s15 = smov 0   ;;  %s398_s0 = inlined_call_operand.vmem [shape: bf16[2,8,256], index: 0, kind: input, shape index: {}]   ;;  %s399_s1 = inlined_call_operand.vmem [shape: f32[2,8,256], index: 1, kind: input, shape index: {}]   ;;  %s400_s2 = inlined_call_operand.vmem [shape: f32[8,1], index: 2, kind: input, shape index: {}]   ;;  %s401_s3 = inlined_call_operand.vmem [shape: f32[8,1], index: 3, kind: input, shape index: {}]   ;;  %s402_s4 = inlined_call_operand.vmem [shape: f32[2,8,256], index: 4, kind: output, shape index: {}]  }
   0x1 LB: > { %s312_s16 = sadd.s32 4294967295, %s344_s15   ;;  %p316_p0 = scmp.ge.s32.totalorder %s344_s15, 1  ;;  %s344_s15 = sphi %s372_s15, %s14_s15  }
   0x2   : > { %p172_p1 = scmp.lt.s32.totalorder %s344_s15, 3 }
   0x4   : > { %p173_p2 = pnand %p316_p0, %p172_p1 }
   0x5   : > { %p203_p3 = scmp.lt.s32.totalorder (!%p173_p2), %s312_s16, 1 }
   0x6   : > { %176 = sbr.rel (%p173_p2) target bundleno = 144 (0x90), region = 36 }
   0xb   : > { %v221_v0 = vld [vmem:[%s400_s2] sm:$0xff]  ;;  %v346_v1 = vmov 0   ;;  %s404_s16 = smov (!%p203_p3, %s312_s16), 1 }
   0xc   : > { %337 = vset.pattern.permute.xlu0 %v346_v1  ;;  %v229_v2 = vld [vmem:[%s401_s3] sm:$0xff]  ;;  %s325_s21 = sshll.u32 %s404_s16, 3  ;;  %s326_s25 = sshll.u32 %s404_s16, 4 }
   0xd   : > { %224 = vperm.xlu0 %337, %v221_v0   ;;  %s207_s24 = scalar_lea.vmem %s398_s0, %s325_s21  ;;  %s212_s28 = scalar_lea.vmem %s399_s1, %s326_s25 }
   0xe   : > { %v218_v4 = vld [vmem:[%s207_s24] sm:$0xff]  ;;  %v238_v11 = vld [vmem:[%s212_s28 + $0x8] sm:$0xff]  ;;  %s217_s5 = scalar_lea.vmem %s402_s4, %s326_s25 }
   0xf   : > { %v219_v5 = vunpack.c.l.bf16 %v218_v4  ;;  %v220_v6 = vunpack.c.h.bf16 %v218_v4  ;;  %v237_v10 = vld [vmem:[%s212_s28] sm:$0xff] }
  0x15   : > { %232 = vperm.xlu0 %337, %v229_v2  }
  0x7f   : > { %v225_v3 = vpop.permute.xlu0 %224 }
  0x80   : > { %v227_v7 = vmul.f32 %v225_v3, %v219_v5  ;;  %v228_v8 = vmul.f32 %v225_v3, %v220_v6 }
  0x87   : > { %v233_v9 = vpop.permute.xlu0 %232 }
  0x88   : > { %v235_v12 = vadd.f32 %v233_v9, %v227_v7  ;;  %v236_v13 = vadd.f32 %v233_v9, %v228_v8 }
  0x8a   : > { %v239_v14 = vadd.f32 %v237_v10, %v235_v12  ;;  %v240_v15 = vadd.f32 %v238_v11, %v236_v13 }
  0x8c   : > { %v241_v16 = vmax.f32 %v239_v14, 0.0  ;;  %v242_v17 = vmax.f32 %v240_v15, 0.0 }
  0x8e   : > { %243 = vst [vmem:[%s217_s5] sm:$0xff] %v241_v16 }
  0x8f   : > { %244 = vst [vmem:[%s217_s5 + $0x8] sm:$0xff] %v242_v17 }
  0x90 PF: > { %s14_s15 = sadd.s32 1, %s344_s15  }
  0x91   : > { %p11_p4 = scmp.ge.s32.totalorder %s14_s15, 4  }
  0x93   :  { %13 = sbr.rel (!%p11_p4) target bundleno = 1 (0x1), region = 69 }

// kernel: basic_block.3
= control target key start
LH: loop header
LB: loop body
LE: loop exit
PB: predicated region body
PF: predicated region fallthrough
CT: control target
= control target key end

     0   :  { %s2667_s12 = smov 0   ;;  %s4101_s0 = inlined_call_operand.vmem [shape: f32[2,8,256], index: 0, kind: input, shape index: {}]   ;;  %s4102_s1 = inlined_call_operand.vmem [shape: bf16[72,8], index: 1, kind: input, shape index: {}]   ;;  %s4103_s2 = inlined_call_operand.vmem [shape: bf16[2,8,256], index: 2, kind: output, shape index: {0}]   ;;  %s4104_s3 = inlined_call_operand.vmem [shape: f32[2,2,8], index: 3, kind: output, shape index: {1}]  }
   0x1 LB: > { %s2350_s13 = sadd.s32 4294967295, %s2644_s12   ;;  %p2354_p0 = scmp.ge.s32.totalorder %s2644_s12, 1  ;;  %s2644_s12 = sphi %s2667_s12, %s14_s12  }
   0x2   : > { %p140_p1 = scmp.lt.s32.totalorder %s2644_s12, 3 }
   0x4   : > { %p141_p2 = pnand %p2354_p0, %p140_p1 }
   0x6   : > { %144 = sbr.rel (%p141_p2) target bundleno = 1084 (0x43c), region = 28 }
   0xb   : > { %p168_p3 = scmp.lt.s32.totalorder %s2350_s13, 1  ;;  %v282_v3 = vld [vmem:[%s4102_s1 + $0x4] sm:$0xf]  ;;  %vm787_vm0 = vcmask 1043456   ;;  %v4105_v5 = vmov 0   ;;  %vm738_vm1 = vcmask 64512  }
   0xc   : > { %v789_v4 = vsel %vm787_vm0, %v282_v3, 0  ;;  %v2686_v6 = vrot.slane %v4105_v5, 1  ;;  %vm514_vm2 = vcmask 1040384   ;;  %vm515_vm3 = vsmask.f32 256 }
   0xd   : > { %s4303_s13 = smov (!%p168_p3, %s2350_s13), 1  ;;  %798 = vmatpush.bf16.msra.mxu0 %v789_v4  ;;  %2506 = vmatpush.bf16.msra.mxu1 %v789_v4  ;;  %vm2693_vm4 = vmand %vm514_vm2, %vm515_vm3  ;;  %vm549_vm5 = vsmask.f32 7424  ;;  %vm1035_vm6 = vcmask 1046528   ;;  %vm2196_vm7 = vcmask 58368  }
   0xe   : > { %s2504_s14 = sshll.u32 %s4303_s13, 4  ;;  %4131 = vst [vmem:[#allocation2_spill] sm:$0xff] %v2686_v6  ;;  %2508 = vmatpush.bf16.msra.mxu3 %v789_v4  ;;  %2507 = vmatpush.bf16.msra.mxu2 %v789_v4  ;;  %s2359_s9 = sshll.u32 %s4303_s13, 1 }
   0xf   : > { %s172_s17 = scalar_lea.vmem %s4101_s0, %s2504_s14  ;;  %s181_s14 = scalar_lea.vmem %s4104_s3, %s2359_s9 }
  0x10   : > { %v183_v0 = vld [vmem:[%s172_s17] sm:$0xff]  ;;  %v184_v1 = vld [vmem:[%s172_s17 + $0x8] sm:$0xff]  ;;  %2360 = vmatmul.msk.bf16.vlgmr.msra.gmra.mxu0 %vm738_vm1, %v2686_v6  ;;  %s2505_s15 = sshll.u32 %s4303_s13, 3 }
  0x11   : > { %v2519_v2 = vpack.i.bf16 %v184_v1, %v183_v0  ;;  %s177_s18 = scalar_lea.vmem %s4103_s2, %s2505_s15 }
  0x13   : > { %2520 = vxpose.xlu0.b32.start.end [1/1] (short) %v2519_v2, 128 }
  0xb7   : > { %v2521_v7 = vpop.trf.xlu0 }
  0xb8   : > { %v2525_v8 = vunpack.i.h.bf16 %v2521_v7  ;;  %v2522_v9 = vunpack.i.l.bf16 %v2521_v7 }
  0xba   : > { %v265_v10 = vpack.c.bf16 %v2525_v8, %v2525_v8  ;;  %v249_v11 = vpack.c.bf16 %v2522_v9, %v2522_v9 }
  0xbc   : > { %v338_v17 = vunpack.c.l.b16 %v265_v10  ;;  %v322_v18 = vunpack.c.l.b16 %v249_v11 }
  0xbf   : > { %v2526_v12 = vpop.trf.xlu0 }
  0xc0   : > { %v2530_v13 = vunpack.i.h.bf16 %v2526_v12  ;;  %v2527_v14 = vunpack.i.l.bf16 %v2526_v12  ;;  %v285_v12 = vld [vmem:[%s4102_s1 + $0x10] sm:$0xf] }
  0xc2   : > { %v266_v15 = vpack.c.bf16 %v2530_v13, %v2530_v13  ;;  %v250_v16 = vpack.c.bf16 %v2527_v14, %v2527_v14 }
  0xc4   : > { %v339_v19 = vunpack.c.l.b16 %v266_v15  ;;  %v323_v20 = vunpack.c.l.b16 %v250_v16  ;;  %v1397_v16 = vsel %vm787_vm0, %v285_v12, 0 }
  0xc5   : > { %1406 = vmatpush.bf16.msrb.mxu0 %v1397_v16 }
  0xc6   : > { %v354_v21 = vpack.c.b16 %v323_v20, %v322_v18  ;;  %v2690_v22 = vpack.c.b16 %v339_v19, %v338_v17 }
  0xc7   : > { %v2531_v23 = vpop.trf.xlu0 }
  0xc8   : > { %v371_v24 = vshrl.u32 %v354_v21, 16  ;;  %v374_v25 = vshll.u32 %v354_v21, 16  ;;  %v2535_v26 = vunpack.i.h.bf16 %v2531_v23  ;;  %v2532_v27 = vunpack.i.l.bf16 %v2531_v23 }
  0xca   : > { %v373_v28 = vrot.slane %v371_v24, 7  ;;  %v267_v32 = vpack.c.bf16 %v2535_v26, %v2535_v26  ;;  %v251_v33 = vpack.c.bf16 %v2532_v27, %v2532_v27 }
  0xcc   : > { %v376_v30 = vor.u32 %v374_v25, %v373_v28  ;;  %v2699_v31 = vsel %vm2693_vm4, %v373_v28, 0  ;;  %v340_v44 = vunpack.c.l.b16 %v267_v32  ;;  %v324_v45 = vunpack.c.l.b16 %v251_v33 }
  0xcd   : > { %v566_v39 = vshll.u32 %v2699_v31, 16 }
  0xce   : > { %v2703_v35 = vsel %vm2693_vm4, 0, %v376_v30 }
  0xcf   : > { %v2536_v34 = vpop.trf.xlu0  ;;  %v561_v38 = vshll.u32 %v2703_v35, 16  ;;  %v559_v42 = vshrl.u32 %v2703_v35, 16  ;;  %v568_v49 = vrot.slane %v566_v39, 1 }
  0xd0   : > { %v2540_v36 = vunpack.i.h.bf16 %v2536_v34  ;;  %v2537_v37 = vunpack.i.l.bf16 %v2536_v34 }
  0xd1   : > { %v563_v43 = vrot.slane %v561_v38, 1 }
  0xd2   : > { %v268_v40 = vpack.c.bf16 %v2540_v36, %v2540_v36  ;;  %v252_v41 = vpack.c.bf16 %v2537_v37, %v2537_v37 }
  0xd3   : > { %v564_v48 = vor.u32 %v563_v43, %v559_v42 }
  0xd4   : > { %v341_v46 = vunpack.c.l.b16 %v268_v40  ;;  %v325_v47 = vunpack.c.l.b16 %v252_v41 }
  0xd5   : > { %v2711_v52 = vsel %vm549_vm5, %v564_v48, %v568_v49 }
  0xd6   : > { %v355_v50 = vpack.c.b16 %v325_v47, %v324_v45  ;;  %v2708_v51 = vpack.c.b16 %v341_v46, %v340_v44  ;;  %2361 = vmatmul.msk.bf16.gmra.mxu0 %vm738_vm1, %v2711_v52 }
  0xd7   : > { %v2541_v53 = vpop.trf.xlu0 }
  0xd8   : > { %v378_v54 = vshrl.u32 %v355_v50, 16  ;;  %v381_v55 = vshll.u32 %v355_v50, 16  ;;  %v2545_v56 = vunpack.i.h.bf16 %v2541_v53  ;;  %v2542_v57 = vunpack.i.l.bf16 %v2541_v53 }
  0xda   : > { %v380_v58 = vrot.slane %v378_v54, 7  ;;  %v269_v61 = vpack.c.bf16 %v2545_v56, %v2545_v56  ;;  %v253_v62 = vpack.c.bf16 %v2542_v57, %v2542_v57 }
  0xdc   : > { %v383_v59 = vor.u32 %v381_v55, %v380_v58  ;;  %v2717_v60 = vsel %vm2693_vm4, %v380_v58, 0  ;;  %v342_v9 = vunpack.c.l.b16 %v269_v61  ;;  %v326_v13 = vunpack.c.l.b16 %v253_v62 }
  0xdd   : > { %v578_v4 = vshll.u32 %v2717_v60, 16 }
  0xde   : > { %v2721_v0 = vsel %vm2693_vm4, 0, %v383_v59 }
  0xdf   : > { %v2546_v63 = vpop.trf.xlu0  ;;  %4134 = vst [vmem:[#allocation3_spill] sm:$0xff] %v2721_v0  ;;  %v573_v3 = vshll.u32 %v2721_v0, 16  ;;  %v571_v10 = vshrl.u32 %v2721_v0, 16  ;;  %v580_v18 = vrot.slane %v578_v4, 1 }
  0xe0   : > { %v2550_v1 = vunpack.i.h.bf16 %v2546_v63  ;;  %v2547_v2 = vunpack.i.l.bf16 %v2546_v63 }
  0xe1   : > { %v575_v11 = vrot.slane %v573_v3, 1 }
  0xe2   : > { %v270_v7 = vpack.c.bf16 %v2550_v1, %v2550_v1  ;;  %v254_v8 = vpack.c.bf16 %v2547_v2, %v2547_v2 }
  0xe3   : > { %v576_v17 = vor.u32 %v575_v11, %v571_v10 }
  0xe4   : > { %v343_v14 = vunpack.c.l.b16 %v270_v7  ;;  %v327_v15 = vunpack.c.l.b16 %v254_v8 }
  0xe5   : > { %v2733_v21 = vsel %vm549_vm5, %v576_v17, %v580_v18 }
  0xe6   : > { %v356_v19 = vpack.c.b16 %v327_v15, %v326_v13  ;;  %v2730_v20 = vpack.c.b16 %v343_v14, %v342_v9  ;;  %2362 = vmatmul.msk.bf16.gmra.mxu0 %vm738_vm1, %v2733_v21 }
  0xe7   : > { %v2551_v23 = vpop.trf.xlu0 }
  0xe8   : > { %v385_v24 = vshrl.u32 %v356_v19, 16  ;;  %v388_v25 = vshll.u32 %v356_v19, 16  ;;  %v2555_v26 = vunpack.i.h.bf16 %v2551_v23  ;;  %v2552_v27 = vunpack.i.l.bf16 %v2551_v23 }
  0xea   : > { %v387_v28 = vrot.slane %v385_v24, 7  ;;  %v271_v33 = vpack.c.bf16 %v2555_v26, %v2555_v26  ;;  %v255_v34 = vpack.c.bf16 %v2552_v27, %v2552_v27 }
  0xec   : > { %v390_v30 = vor.u32 %v388_v25, %v387_v28  ;;  %v2739_v32 = vsel %vm2693_vm4, %v387_v28, 0  ;;  %v344_v46 = vunpack.c.l.b16 %v271_v33  ;;  %v328_v47 = vunpack.c.l.b16 %v255_v34 }
  0xed   : > { %v590_v41 = vshll.u32 %v2739_v32, 16 }
  0xee   : > { %v2743_v37 = vsel %vm2693_vm4, 0, %v390_v30 }
  0xef   : > { %v2556_v36 = vpop.trf.xlu0  ;;  %4135 = vst [vmem:[#allocation4_spill] sm:$0xff] %v2743_v37  ;;  %v585_v40 = vshll.u32 %v2743_v37, 16  ;;  %v583_v44 = vshrl.u32 %v2743_v37, 16  ;;  %v592_v53 = vrot.slane %v590_v41, 1 }
  0xf0   : > { %v2560_v38 = vunpack.i.h.bf16 %v2556_v36  ;;  %v2557_v39 = vunpack.i.l.bf16 %v2556_v36 }
  0xf1   : > { %v587_v45 = vrot.slane %v585_v40, 1 }
  0xf2   : > { %v272_v42 = vpack.c.bf16 %v2560_v38, %v2560_v38  ;;  %v256_v43 = vpack.c.bf16 %v2557_v39, %v2557_v39 }
  0xf3   : > { %v588_v50 = vor.u32 %v587_v45, %v583_v44 }
  0xf4   : > { %v345_v48 = vunpack.c.l.b16 %v272_v42  ;;  %v329_v49 = vunpack.c.l.b16 %v256_v43 }
  0xf5   : > { %v2749_v56 = vsel %vm549_vm5, %v588_v50, %v592_v53 }
  0xf6   : > { %v357_v54 = vpack.c.b16 %v329_v49, %v328_v47  ;;  %v365_v55 = vpack.c.b16 %v345_v48, %v344_v46  ;;  %2363 = vmatmul.msk.bf16.gmra.mxu0 %vm738_vm1, %v2749_v56 }
  0xf7   : > { %v2561_v57 = vpop.trf.xlu0 }
  0xf8   : > { %v392_v58 = vshrl.u32 %v357_v54, 16  ;;  %v448_v59 = vshrl.u32 %v365_v55, 16  ;;  %v395_v61 = vshll.u32 %v357_v54, 16  ;;  %v2565_v62 = vunpack.i.h.bf16 %v2561_v57 }
  0xf9   : > { %v451_v63 = vshll.u32 %v365_v55, 16  ;;  %v2562_v1 = vunpack.i.l.bf16 %v2561_v57 }
  0xfa   : > { %v394_v2 = vrot.slane %v392_v58, 7  ;;  %v450_v3 = vrot.slane %v448_v59, 7  ;;  %v273_v8 = vpack.c.bf16 %v2565_v62, %v2565_v62 }
  0xfb   : > { %v257_v10 = vpack.c.bf16 %v2562_v1, %v2562_v1 }
  0xfc   : > { %v397_v4 = vor.u32 %v395_v61, %v394_v2  ;;  %v453_v7 = vor.u32 %v451_v63, %v450_v3  ;;  %v2755_v9 = vsel %vm2693_vm4, %v394_v2, 0  ;;  %v2767_v14 = vsel %vm2693_vm4, %v450_v3, 0 }
  0xfd   : > { %v602_v18 = vshll.u32 %v2755_v9, 16  ;;  %v698_v25 = vshll.u32 %v2767_v14, 16  ;;  %v346_v26 = vunpack.c.l.b16 %v273_v8  ;;  %v330_v27 = vunpack.c.l.b16 %v257_v10 }
  0xfe   : > { %v2759_v12 = vsel %vm2693_vm4, 0, %v397_v4  ;;  %v2763_v13 = vsel %vm2693_vm4, 0, %v453_v7 }
  0xff   : > { %v2566_v11 = vpop.trf.xlu0  ;;  %4136 = vst [vmem:[#allocation5_spill] sm:$0xff] %v2759_v12  ;;  %v597_v17 = vshll.u32 %v2759_v12, 16  ;;  %v693_v24 = vshll.u32 %v2763_v13, 16  ;;  %v595_v28 = vshrl.u32 %v2759_v12, 16  ;;  %v691_v36 = vshrl.u32 %v2763_v13, 16 }
 0x100   : > { %v2570_v15 = vunpack.i.h.bf16 %v2566_v11  ;;  %v2567_v16 = vunpack.i.l.bf16 %v2566_v11  ;;  %v604_v40 = vrot.slane %v602_v18, 1  ;;  %v700_v44 = vrot.slane %v698_v25, 1 }
 0x101   : > { %v599_v30 = vrot.slane %v597_v17, 1  ;;  %v695_v38 = vrot.slane %v693_v24, 1 }
 0x102   : > { %v274_v19 = vpack.c.bf16 %v2570_v15, %v2570_v15  ;;  %v258_v23 = vpack.c.bf16 %v2567_v16, %v2567_v16 }
 0x103   : > { %v600_v39 = vor.u32 %v599_v30, %v595_v28  ;;  %v696_v43 = vor.u32 %v695_v38, %v691_v36 }
 0x104   : > { %v347_v33 = vunpack.c.l.b16 %v274_v19  ;;  %v331_v34 = vunpack.c.l.b16 %v258_v23 }
 0x105   : > { %v2776_v45 = vsel %vm549_vm5, %v600_v39, %v604_v40  ;;  %v2781_v47 = vsel %vm549_vm5, %v696_v43, %v700_v44 }
 0x106   : > { %v358_v41 = vpack.c.b16 %v331_v34, %v330_v27  ;;  %v366_v42 = vpack.c.b16 %v347_v33, %v346_v26  ;;  %4137 = vst [vmem:[#allocation6_spill] sm:$0xff] %v2776_v45  ;;  %2364 = vmatmul.msk.bf16.vlgmr.msra.gmra.mxu1 %vm738_vm1, %v2776_v45  ;;  %2423 = vmatmul.msk.bf16.vlgmr.msrb.gmra.mxu0 %vm738_vm1, %v2711_v52 }
 0x107   : > { %v2571_v46 = vpop.trf.xlu0  ;;  %4138 = vst [vmem:[#allocation7_spill] sm:$0xff] %v2781_v47  ;;  %2372 = vmatmul.msk.bf16.vlgmr.msra.gmra.mxu3 %vm738_vm1, %v2781_v47 }
 0x108   : > { %v399_v48 = vshrl.u32 %v358_v41, 16  ;;  %v455_v49 = vshrl.u32 %v366_v42, 16  ;;  %v402_v50 = vshll.u32 %v358_v41, 16  ;;  %v2575_v53 = vunpack.i.h.bf16 %v2571_v46 }
 0x109   : > { %v2572_v54 = vunpack.i.l.bf16 %v2571_v46  ;;  %v458_v57 = vshll.u32 %v366_v42, 16 }
 0x10a   : > { %v401_v55 = vrot.slane %v399_v48, 7  ;;  %v457_v58 = vrot.slane %v455_v49, 7  ;;  %v275_v63 = vpack.c.bf16 %v2575_v53, %v2575_v53 }
 0x10b   : > { %v259_v1 = vpack.c.bf16 %v2572_v54, %v2572_v54 }
 0x10c   : > { %v404_v59 = vor.u32 %v402_v50, %v401_v55  ;;  %v2789_v61 = vsel %vm2693_vm4, %v401_v55, 0  ;;  %v460_v62 = vor.u32 %v458_v57, %v457_v58  ;;  %v2797_v3 = vsel %vm2693_vm4, %v457_v58, 0 }
 0x10d   : > { %v614_v10 = vshll.u32 %v2789_v61, 16  ;;  %v710_v18 = vshll.u32 %v2797_v3, 16  ;;  %v348_v19 = vunpack.c.l.b16 %v275_v63  ;;  %v332_v23 = vunpack.c.l.b16 %v259_v1  ;;  %v281_v1 = vld [vmem:[%s4102_s1] sm:$0xf] }
 0x10e   : > { %v2793_v2 = vsel %vm2693_vm4, 0, %v404_v59  ;;  %v2803_v11 = vsel %vm2693_vm4, 0, %v460_v62 }
 0x10f   : > { %v2576_v52 = vpop.trf.xlu0  ;;  %4139 = vst [vmem:[#allocation8_spill] sm:$0xff] %v2793_v2  ;;  %v609_v8 = vshll.u32 %v2793_v2, 16  ;;  %v705_v17 = vshll.u32 %v2803_v11, 16  ;;  %v607_v24 = vshrl.u32 %v2793_v2, 16  ;;  %v703_v28 = vshrl.u32 %v2803_v11, 16 }
 0x110   : > { %v2580_v4 = vunpack.i.h.bf16 %v2576_v52  ;;  %v2577_v7 = vunpack.i.l.bf16 %v2576_v52  ;;  %v616_v34 = vrot.slane %v614_v10, 1  ;;  %v712_v40 = vrot.slane %v710_v18, 1  ;;  %v284_v52 = vld [vmem:[%s4102_s1 + $0xc] sm:$0xf] }
 0x111   : > { %v611_v25 = vrot.slane %v609_v8, 1  ;;  %v707_v30 = vrot.slane %v705_v17, 1  ;;  %v913_v10 = vsel %vm787_vm0, %v281_v1, 0 }
 0x112   : > { %v276_v15 = vpack.c.bf16 %v2580_v4, %v2580_v4  ;;  %v260_v16 = vpack.c.bf16 %v2577_v7, %v2577_v7  ;;  %922 = vmatpush.bf16.msrb.mxu1 %v913_v10 }
 0x113   : > { %v612_v33 = vor.u32 %v611_v25, %v607_v24  ;;  %v708_v39 = vor.u32 %v707_v30, %v703_v28 }
 0x114   : > { %v349_v26 = vunpack.c.l.b16 %v276_v15  ;;  %v333_v27 = vunpack.c.l.b16 %v260_v16  ;;  %v1259_v15 = vsel %vm787_vm0, %v284_v52, 0 }
 0x115   : > { %v2810_v41 = vsel %vm549_vm5, %v612_v33, %v616_v34  ;;  %v2815_v43 = vsel %vm549_vm5, %v708_v39, %v712_v40  ;;  %1268 = vmatpush.bf16.msrb.mxu3 %v1259_v15 }
 0x116   : > { %v359_v36 = vpack.c.b16 %v333_v27, %v332_v23  ;;  %v367_v38 = vpack.c.b16 %v349_v26, %v348_v19  ;;  %4140 = vst [vmem:[#allocation9_spill] sm:$0xff] %v2810_v41  ;;  %2365 = vmatmul.msk.bf16.gmra.mxu1 %vm738_vm1, %v2810_v41  ;;  %2424 = vmatmul.msk.bf16.gmra.mxu0 %vm738_vm1, %v2733_v21 }
 0x117   : > { %v2581_v42 = vpop.trf.xlu0  ;;  %4141 = vst [vmem:[#allocation10_spill] sm:$0xff] %v2815_v43  ;;  %2373 = vmatmul.msk.bf16.gmra.mxu3 %vm738_vm1, %v2815_v43 }
 0x118   : > { %v406_v44 = vshrl.u32 %v359_v36, 16  ;;  %v2585_v46 = vunpack.i.h.bf16 %v2581_v42  ;;  %v2582_v48 = vunpack.i.l.bf16 %v2581_v42  ;;  %v462_v49 = vshrl.u32 %v367_v38, 16 }
 0x119   : > { %v409_v50 = vshll.u32 %v359_v36, 16  ;;  %v465_v54 = vshll.u32 %v367_v38, 16 }
 0x11a   : > { %v408_v53 = vrot.slane %v406_v44, 7  ;;  %v464_v55 = vrot.slane %v462_v49, 7  ;;  %v277_v58 = vpack.c.bf16 %v2585_v46, %v2585_v46  ;;  %v261_v59 = vpack.c.bf16 %v2582_v48, %v2582_v48 }
 0x11c   : > { %v411_v57 = vor.u32 %v409_v50, %v408_v53  ;;  %v2823_v62 = vsel %vm2693_vm4, %v408_v53, 0  ;;  %v467_v63 = vor.u32 %v465_v54, %v464_v55  ;;  %v2837_v8 = vsel %vm2693_vm4, %v464_v55, 0 }
 0x11d   : > { %v626_v19 = vshll.u32 %v2823_v62, 16  ;;  %v722_v27 = vshll.u32 %v2837_v8, 16  ;;  %v350_v28 = vunpack.c.l.b16 %v277_v58  ;;  %v334_v30 = vunpack.c.l.b16 %v261_v59 }
 0x11e   : > { %v2833_v7 = vsel %vm2693_vm4, 0, %v411_v57  ;;  %v2845_v23 = vsel %vm2693_vm4, 0, %v467_v63  ;;  %v283_v57 = vld [vmem:[%s4102_s1 + $0x8] sm:$0xf] }
 0x11f   : > { %v2586_v4 = vpop.trf.xlu0  ;;  %4142 = vst [vmem:[#allocation11_spill] sm:$0xff] %v2833_v7  ;;  %v621_v18 = vshll.u32 %v2833_v7, 16  ;;  %v717_v26 = vshll.u32 %v2845_v23, 16  ;;  %v619_v33 = vshrl.u32 %v2833_v7, 16  ;;  %v715_v39 = vshrl.u32 %v2845_v23, 16 }
 0x120   : > { %v2590_v16 = vunpack.i.h.bf16 %v2586_v4  ;;  %v2587_v17 = vunpack.i.l.bf16 %v2586_v4  ;;  %v628_v44 = vrot.slane %v626_v19, 1  ;;  %v724_v50 = vrot.slane %v722_v27, 1 }
 0x121   : > { %v623_v34 = vrot.slane %v621_v18, 1  ;;  %v719_v40 = vrot.slane %v717_v26, 1  ;;  %v1132_v63 = vsel %vm787_vm0, %v283_v57, 0 }
 0x122   : > { %v278_v24 = vpack.c.bf16 %v2590_v16, %v2590_v16  ;;  %v262_v25 = vpack.c.bf16 %v2587_v17, %v2587_v17  ;;  %1141 = vmatpush.bf16.msrb.mxu2 %v1132_v63 }
 0x123   : > { %v624_v42 = vor.u32 %v623_v34, %v619_v33  ;;  %v720_v49 = vor.u32 %v719_v40, %v715_v39 }
 0x124   : > { %v351_v36 = vunpack.c.l.b16 %v278_v24  ;;  %v335_v38 = vunpack.c.l.b16 %v262_v25 }
 0x125   : > { %v2852_v53 = vsel %vm549_vm5, %v624_v42, %v628_v44  ;;  %v2859_v55 = vsel %vm549_vm5, %v720_v49, %v724_v50 }
 0x126   : > { %v360_v46 = vpack.c.b16 %v335_v38, %v334_v30  ;;  %v368_v48 = vpack.c.b16 %v351_v36, %v350_v28  ;;  %4143 = vst [vmem:[#allocation12_spill] sm:$0xff] %v2852_v53  ;;  %2366 = vmatmul.msk.bf16.gmra.mxu1 %vm738_vm1, %v2852_v53  ;;  %2425 = vmatmul.msk.bf16.gmra.mxu0 %vm738_vm1, %v2749_v56 }
 0x127   : > { %v2854_v54 = vpop.trf.xlu0  ;;  %4144 = vst [vmem:[#allocation13_spill] sm:$0xff] %v2859_v55  ;;  %2374 = vmatmul.msk.bf16.gmra.mxu3 %vm738_vm1, %v2859_v55 }
 0x128   : > { %v413_v58 = vshrl.u32 %v360_v46, 16  ;;  %v469_v59 = vshrl.u32 %v368_v48, 16  ;;  %v416_v1 = vshll.u32 %v360_v46, 16  ;;  %v472_v4 = vshll.u32 %v368_v48, 16 }
 0x129   : > { %v2592_v10 = vunpack.i.l.bf16 %v2854_v54 }
 0x12a   : > { %v415_v52 = vrot.slane %v413_v58, 7  ;;  %v471_v15 = vrot.slane %v469_v59, 7 }
 0x12b   : > { %v263_v26 = vpack.c.bf16 %v2592_v10, %v2592_v10 }
 0x12c   : > { %v418_v16 = vor.u32 %v416_v1, %v415_v52  ;;  %v2872_v17 = vsel %vm2693_vm4, %v415_v52, 0  ;;  %v474_v18 = vor.u32 %v472_v4, %v471_v15  ;;  %v2882_v25 = vsel %vm2693_vm4, %v471_v15, 0 }
 0x12d   : > { %4146 = vst [vmem:[#allocation15_spill] sm:$0xff] %v2882_v25  ;;  %v638_v30 = vshll.u32 %v2872_v17, 16  ;;  %v734_v38 = vshll.u32 %v2882_v25, 16  ;;  %v336_v42 = vunpack.c.l.b16 %v263_v26  ;;  %v427_v15 = vshrl.u32 %v2690_v22, 16 }
 0x12e   : > { %v2878_v24 = vsel %vm2693_vm4, 0, %v418_v16  ;;  %v2889_v33 = vsel %vm2693_vm4, 0, %v474_v18 }
 0x12f   : > { %v2874_v19 = vpop.trf.xlu0  ;;  %4145 = vst [vmem:[#allocation14_spill] sm:$0xff] %v2878_v24  ;;  %v633_v28 = vshll.u32 %v2878_v24, 16  ;;  %v729_v36 = vshll.u32 %v2889_v33, 16  ;;  %v631_v39 = vshrl.u32 %v2878_v24, 16  ;;  %v727_v46 = vshrl.u32 %v2889_v33, 16 }
 0x130   : > { %v2597_v27 = vunpack.i.l.bf16 %v2874_v19  ;;  %v640_v50 = vrot.slane %v638_v30, 1  ;;  %v736_v59 = vrot.slane %v734_v38, 1 }
 0x131   : > { %v635_v40 = vrot.slane %v633_v28, 1  ;;  %v731_v48 = vrot.slane %v729_v36, 1  ;;  %v2919_v36 = vpop.f32.mrf.mxu0 }
 0x132   : > { %v264_v34 = vpack.c.bf16 %v2597_v27, %v2597_v27  ;;  %v429_v27 = vrot.slane %v427_v15, 7 }
 0x133   : > { %v636_v49 = vor.u32 %v635_v40, %v631_v39  ;;  %v732_v58 = vor.u32 %v731_v48, %v727_v46 }
 0x134   : > { %v337_v44 = vunpack.c.l.b16 %v264_v34  ;;  %v430_v34 = vshll.u32 %v2690_v22, 16 }
 0x135   : > { %v2896_v63 = vsel %vm549_vm5, %v636_v49, %v640_v50  ;;  %v2901_v1 = vsel %vm549_vm5, %v732_v58, %v736_v59  ;;  %v434_v50 = vshrl.u32 %v2708_v51, 16 }
 0x136   : > { %v361_v57 = vpack.c.b16 %v337_v44, %v336_v42  ;;  %4147 = vst [vmem:[#allocation16_spill] sm:$0xff] %v2896_v63  ;;  %2367 = vmatmul.msk.bf16.gmra.mxu1 %vm738_vm1, %v2896_v63  ;;  %2426 = vmatmul.msk.bf16.gmra.mxu0 %vm738_vm1, %v2776_v45  ;;  %v432_v40 = vor.u32 %v430_v34, %v429_v27 }
 0x137   : > { %4148 = vst [vmem:[#allocation17_spill] sm:$0xff] %v2901_v1  ;;  %2375 = vmatmul.msk.bf16.gmra.mxu3 %vm738_vm1, %v2901_v1  ;;  %v436_v59 = vrot.slane %v434_v50, 7 }
 0x138   : > { %v420_v52 = vshrl.u32 %v361_v57, 16  ;;  %v423_v4 = vshll.u32 %v361_v57, 16  ;;  %v2929_v48 = vsel %vm2693_vm4, 0, %v432_v40  ;;  %v2942_v57 = vsel %vm2693_vm4, %v429_v27, 0 }
 0x139   : > { %4151 = vst [vmem:[#allocation20_spill] sm:$0xff] %v2929_v48  ;;  %v657_v22 = vshll.u32 %v2929_v48, 16  ;;  %v2937_v49 = vpop.f32.mrf.mxu0  ;;  %v2970_v40 = vsel %vm2693_vm4, %v436_v59, 0 }
 0x13a   : > { %v422_v10 = vrot.slane %v420_v52, 7  ;;  %v655_v52 = vshrl.u32 %v2929_v48, 16  ;;  %v674_v50 = vshll.u32 %v2970_v40, 16 }
 0x13b   : > { %v659_v58 = vrot.slane %v657_v22, 1 }
 0x13c   : > { %v425_v16 = vor.u32 %v423_v4, %v422_v10  ;;  %v2910_v18 = vsel %vm2693_vm4, %v422_v10, 0  ;;  %v662_v4 = vshll.u32 %v2942_v57, 16  ;;  %v437_v10 = vshll.u32 %v2708_v51, 16 }
 0x13d   : > { %v650_v30 = vshll.u32 %v2910_v18, 16  ;;  %v660_v15 = vor.u32 %v659_v58, %v655_v52  ;;  %v444_v58 = vshll.u32 %v2730_v20, 16 }
 0x13e   : > { %v2914_v26 = vsel %vm2693_vm4, 0, %v425_v16  ;;  %v439_v16 = vor.u32 %v437_v10, %v436_v59  ;;  %v676_v10 = vrot.slane %v674_v50, 1 }
 0x13f   : > { %4149 = vst [vmem:[#allocation18_spill] sm:$0xff] %v2914_v26  ;;  %v645_v28 = vshll.u32 %v2914_v26, 16  ;;  %v643_v38 = vshrl.u32 %v2914_v26, 16  ;;  %v652_v44 = vrot.slane %v650_v30, 1 }
 0x140   : > { %v2956_v27 = vsel %vm2693_vm4, 0, %v439_v16 }
 0x141   : > { %v647_v39 = vrot.slane %v645_v28, 1  ;;  %v664_v28 = vrot.slane %v662_v4, 1  ;;  %v669_v51 = vshll.u32 %v2956_v27, 16  ;;  %v667_v22 = vshrl.u32 %v2956_v27, 16 }
 0x143   : > { %v648_v42 = vor.u32 %v647_v39, %v643_v38  ;;  %v2950_v34 = vsel %vm549_vm5, %v660_v15, %v664_v28  ;;  %v441_v38 = vshrl.u32 %v2730_v20, 16  ;;  %v287_v20 = vld [vmem:[%s4102_s1 + $0x18] sm:$0xf]  ;;  %v288_v28 = vld [vmem:[%s4102_s1 + $0x1c] sm:$0xf] }
 0x144   : > { %4152 = vst [vmem:[#allocation21_spill] sm:$0xff] %v2950_v34 }
 0x145   : > { %v2923_v46 = vsel %vm549_vm5, %v648_v42, %v652_v44  ;;  %v671_v42 = vrot.slane %v669_v51, 1  ;;  %v443_v44 = vrot.slane %v441_v38, 7  ;;  %v1653_v38 = vsel %vm787_vm0, %v287_v20, 0 }
 0x146   : > { %4150 = vst [vmem:[#allocation19_spill] sm:$0xff] %v2923_v46  ;;  %2368 = vmatmul.msk.bf16.vlgmr.msra.gmra.mxu2 %vm738_vm1, %v2923_v46  ;;  %923 = vmatmul.bf16.vlgmr.msrb.gmra.mxu1 %v4105_v5 }
 0x147   : > { %2427 = vmatmul.msk.bf16.gmra.mxu0 %vm738_vm1, %v2810_v41  ;;  %2407 = vmatmul.msk.bf16.vlgmr.msrb.gmra.mxu3 %vm738_vm1, %v2703_v35  ;;  %v672_v52 = vor.u32 %v671_v42, %v667_v22  ;;  %v446_v4 = vor.u32 %v444_v58, %v443_v44  ;;  %v1777_v42 = vsel %vm787_vm0, %v288_v28, 0  ;;  %v286_v22 = vld [vmem:[%s4102_s1 + $0x14] sm:$0xf]  ;;  %v3008_v58 = vsel %vm2693_vm4, %v443_v44, 0 }
 0x148   : > { %1662 = vmatpush.bf16.msra.mxu2 %v1653_v38  ;;  %1786 = vmatpush.bf16.msra.mxu3 %v1777_v42  ;;  %v686_v38 = vshll.u32 %v3008_v58, 16 }
 0x149   : > { %v2978_v16 = vsel %vm549_vm5, %v672_v52, %v676_v10  ;;  %v2984_v59 = vsel %vm2693_vm4, 0, %v446_v4  ;;  %v1529_v52 = vsel %vm787_vm0, %v286_v22, 0  ;;  %v289_v4 = vld [vmem:[%s4102_s1 + $0x20] sm:$0xf] }
 0x14a   : > { %4153 = vst [vmem:[#allocation22_spill] sm:$0xff] %v2978_v16  ;;  %v681_v51 = vshll.u32 %v2984_v59, 16  ;;  %1538 = vmatpush.bf16.msra.mxu1 %v1529_v52  ;;  %v1901_v20 = vsel %vm787_vm0, %v289_v4, 0  ;;  %v679_v28 = vshrl.u32 %v2984_v59, 16  ;;  %v688_v5 = vrot.slane %v686_v38, 1 }
 0x14b   : > { %1910 = vmatpush.bf16.msra.mxu0 %v1901_v20  ;;  %v1038_v20 = vrot.slane %v2703_v35, 1  ;;  %v1039_v38 = vrot.slane %v2699_v31, 1 }
 0x14c   : > { %v683_v10 = vrot.slane %v681_v51, 1 }
 0x14e   : > { %v684_v42 = vor.u32 %v683_v10, %v679_v28 }
 0x150   : > { %v3020_v44 = vsel %vm549_vm5, %v684_v42, %v688_v5 }
 0x151   : > { %4154 = vst [vmem:[#allocation23_spill] sm:$0xff] %v3020_v44 }
 0x153   : > { %v2947_v30 = vpop.f32.mrf.mxu0 }
 0x156   : > { %2369 = vmatmul.msk.bf16.gmra.mxu2 %vm738_vm1, %v2950_v34  ;;  %2376 = vmatmul.msk.bf16.gmra.mxu1 %vm738_vm1, %v2703_v35 }
 0x157   : > { %2428 = vmatmul.msk.bf16.gmra.mxu0 %vm738_vm1, %v2852_v53  ;;  %2408 = vmatmul.msk.bf16.gmra.mxu3 %vm738_vm1, %v2721_v0 }
 0x15b   : > { %v2966_v39 = vpop.f32.mrf.mxu0 }
 0x163   : > { %v2975_v15 = vpop.f32.mrf.mxu0 }
 0x166   : > { %2370 = vmatmul.msk.bf16.gmra.mxu2 %vm738_vm1, %v2978_v16  ;;  %2377 = vmatmul.msk.bf16.gmra.mxu1 %vm738_vm1, %v2721_v0 }
 0x167   : > { %2429 = vmatmul.msk.bf16.gmra.mxu0 %vm738_vm1, %v2896_v63  ;;  %2409 = vmatmul.msk.bf16.gmra.mxu3 %vm738_vm1, %v2743_v37 }
 0x16b   : > { %v3004_v50 = vpop.f32.mrf.mxu0 }
 0x173   : > { %v3017_v63 = vpop.f32.mrf.mxu0 }
 0x176   : > { %2371 = vmatmul.msk.bf16.gmra.mxu2 %vm738_vm1, %v3020_v44  ;;  %2378 = vmatmul.msk.bf16.gmra.mxu1 %vm738_vm1, %v2743_v37 }
 0x177   : > { %2430 = vmatmul.msk.bf16.gmra.mxu0 %vm738_vm1, %v2923_v46  ;;  %2410 = vmatmul.msk.bf16.gmra.mxu3 %vm738_vm1, %v2759_v12 }
 0x17b   : > { %v3030_v51 = vpop.f32.mrf.mxu0 }
 0x183   : > { %v3032_v22 = vpop.f32.mrf.mxu1  ;;  %v3034_v52 = vpop.f32.mrf.mxu0 }
 0x184   : > { %4155 = vst [vmem:[#allocation24_spill] sm:$0xff] %v3034_v52  ;;  %v3059_v52 = vsel %vm1035_vm6, %v1038_v20, %v1039_v38  ;;  %v1041_v20 = vrot.slane %v2721_v0, 1 }
 0x186   : > { %2391 = vmatmul.msk.bf16.vlgmr.msrb.gmra.mxu2 %vm738_vm1, %v2686_v6  ;;  %2379 = vmatmul.msk.bf16.gmra.mxu1 %vm738_vm1, %v2759_v12 }
 0x187   : > { %2431 = vmatmul.msk.bf16.gmra.mxu0 %vm738_vm1, %v2950_v34  ;;  %2411 = vmatmul.msk.bf16.gmra.mxu3 %vm738_vm1, %v2793_v2 }
 0x18a   : > { %v3044_v5 = vpop.f32.mrf.mxu3 }
 0x18b   : > { %4156 = vst [vmem:[#allocation25_spill] sm:$0xff] %v3044_v5  ;;  %v3046_v4 = vpop.f32.mrf.mxu1  ;;  %v3048_v10 = vpop.f32.mrf.mxu0 }
 0x18c   : > { %4157 = vst [vmem:[#allocation26_spill] sm:$0xff] %v3048_v10 }
 0x192   : > { %v3051_v28 = vpop.f32.mrf.mxu3 }
 0x193   : > { %4158 = vst [vmem:[#allocation27_spill] sm:$0xff] %v3051_v28  ;;  %v3054_v42 = vpop.f32.mrf.mxu1  ;;  %v3056_v6 = vpop.f32.mrf.mxu0  ;;  %v1042_v28 = vrot.slane %v2717_v60, 1 }
 0x194   : > { %4159 = vst [vmem:[#allocation28_spill] sm:$0xff] %v3056_v6 }
 0x196   : > { %2392 = vmatmul.msk.bf16.gmra.mxu2 %vm738_vm1, %v3059_v52  ;;  %2380 = vmatmul.msk.bf16.gmra.mxu1 %vm738_vm1, %v2793_v2 }
 0x197   : > { %2432 = vmatmul.msk.bf16.gmra.mxu0 %vm738_vm1, %v2978_v16  ;;  %2412 = vmatmul.msk.bf16.gmra.mxu3 %vm738_vm1, %v2833_v7  ;;  %v3084_v16 = vsel %vm1035_vm6, %v1041_v20, %v1042_v28  ;;  %v1044_v28 = vrot.slane %v2743_v37, 1 }
 0x19a   : > { %v3069_v31 = vpop.f32.mrf.mxu3 }
 0x19b   : > { %4160 = vst [vmem:[#allocation29_spill] sm:$0xff] %v3069_v31  ;;  %v3071_v35 = vpop.f32.mrf.mxu1  ;;  %v3073_v6 = vpop.f32.mrf.mxu0 }
 0x19c   : > { %4161 = vst [vmem:[#allocation30_spill] sm:$0xff] %v3073_v6  ;;  %v1045_v6 = vrot.slane %v2739_v32, 1 }
 0x1a2   : > { %v3076_v38 = vpop.f32.mrf.mxu3 }
 0x1a3   : > { %4162 = vst [vmem:[#allocation31_spill] sm:$0xff] %v3076_v38  ;;  %v3079_v10 = vpop.f32.mrf.mxu1  ;;  %v3081_v5 = vpop.f32.mrf.mxu0 }
 0x1a4   : > { %4163 = vst [vmem:[#allocation32_spill] sm:$0xff] %v3081_v5 }
 0x1a6   : > { %2393 = vmatmul.msk.bf16.gmra.mxu2 %vm738_vm1, %v3084_v16  ;;  %2381 = vmatmul.msk.bf16.gmra.mxu1 %vm738_vm1, %v2833_v7 }
 0x1a7   : > { %2433 = vmatmul.msk.bf16.gmra.mxu0 %vm738_vm1, %v3020_v44  ;;  %2413 = vmatmul.msk.bf16.gmra.mxu3 %vm738_vm1, %v2878_v24  ;;  %v3109_v44 = vsel %vm1035_vm6, %v1044_v28, %v1045_v6  ;;  %v1047_v6 = vrot.slane %v2759_v12, 1 }
 0x1aa   : > { %v3094_v60 = vpop.f32.mrf.mxu3 }
 0x1ab   : > { %4164 = vst [vmem:[#allocation33_spill] sm:$0xff] %v3094_v60  ;;  %v3096_v38 = vpop.f32.mrf.mxu1  ;;  %v3098_v5 = vpop.f32.mrf.mxu0 }
 0x1ac   : > { %4165 = vst [vmem:[#allocation34_spill] sm:$0xff] %v3096_v38  ;;  %v1057_v38 = vrot.slane %v2872_v17, 1 }
 0x1ad   : > { %4166 = vst [vmem:[#allocation35_spill] sm:$0xff] %v3098_v5  ;;  %v1048_v5 = vrot.slane %v2755_v9, 1 }
 0x1b2   : > { %v3101_v20 = vpop.f32.mrf.mxu3 }
 0x1b3   : > { %4167 = vst [vmem:[#allocation36_spill] sm:$0xff] %v3101_v20  ;;  %v3104_v31 = vpop.f32.mrf.mxu1  ;;  %v3106_v34 = vpop.f32.mrf.mxu0 }
 0x1b4   : > { %4168 = vst [vmem:[#allocation37_spill] sm:$0xff] %v3104_v31 }
 0x1b5   : > { %4169 = vst [vmem:[#allocation38_spill] sm:$0xff] %v3106_v34 }
 0x1b6   : > { %2394 = vmatmul.msk.bf16.gmra.mxu2 %vm738_vm1, %v3109_v44  ;;  %2382 = vmatmul.msk.bf16.gmra.mxu1 %vm738_vm1, %v2878_v24 }
 0x1b7   : > { %2434 = vmatmul.msk.bf16.gmra.mxu0 %vm738_vm1, %v2781_v47  ;;  %2414 = vmatmul.msk.bf16.gmra.mxu3 %vm738_vm1, %v2914_v26  ;;  %v3134_v47 = vsel %vm1035_vm6, %v1047_v6, %v1048_v5 }
 0x1ba   : > { %v3119_v32 = vpop.f32.mrf.mxu3 }
 0x1bb   : > { %4170 = vst [vmem:[#allocation39_spill] sm:$0xff] %v3119_v32  ;;  %v3121_v20 = vpop.f32.mrf.mxu1  ;;  %v3123_v34 = vpop.f32.mrf.mxu0 }
 0x1bc   : > { %4171 = vst [vmem:[#allocation40_spill] sm:$0xff] %v3121_v20 }
 0x1bd   : > { %4172 = vst [vmem:[#allocation41_spill] sm:$0xff] %v3123_v34  ;;  %v2595_v34 = vunpack.i.h.bf16 %v2854_v54 }
 0x1bf   : > { %v279_v12 = vpack.c.bf16 %v2595_v34, %v2595_v34 }
 0x1c1   : > { %v352_v41 = vunpack.c.l.b16 %v279_v12 }
 0x1c2   : > { %v3126_v28 = vpop.f32.mrf.mxu3 }
 0x1c3   : > { %4173 = vst [vmem:[#allocation42_spill] sm:$0xff] %v3126_v28  ;;  %v3129_v60 = vpop.f32.mrf.mxu1  ;;  %v2600_v28 = vunpack.i.h.bf16 %v2874_v19 }
 0x1c4   : > { %v3131_v46 = vpop.f32.mrf.mxu0 }
 0x1c5   : > { %4174 = vst [vmem:[#allocation43_spill] sm:$0xff] %v3131_v46  ;;  %v280_v32 = vpack.c.bf16 %v2600_v28, %v2600_v28 }
 0x1c6   : > { %2395 = vmatmul.msk.bf16.gmra.mxu2 %vm738_vm1, %v3134_v47  ;;  %2383 = vmatmul.msk.bf16.gmra.mxu1 %vm738_vm1, %v2914_v26 }
 0x1c7   : > { %2435 = vmatmul.msk.bf16.gmra.mxu0 %vm738_vm1, %v2815_v43  ;;  %2415 = vmatmul.msk.bf16.gmra.mxu3 %vm738_vm1, %v2929_v48  ;;  %v1050_v43 = vrot.slane %v2793_v2, 1  ;;  %v353_v53 = vunpack.c.l.b16 %v280_v32  ;;  %v1054_v2 = vrot.slane %v2823_v62, 1 }
 0x1c9   : > { %v3144_v9 = vpop.f32.mrf.mxu2  ;;  %v369_v54 = vpack.c.b16 %v353_v53, %v352_v41 }
 0x1ca   : > { %4175 = vst [vmem:[#allocation44_spill] sm:$0xff] %v3144_v9  ;;  %v3147_v46 = vpop.f32.mrf.mxu3  ;;  %v1051_v9 = vrot.slane %v2789_v61, 1 }
 0x1cb   : > { %v3149_v5 = vpop.f32.mrf.mxu1  ;;  %v476_v34 = vshrl.u32 %v369_v54, 16  ;;  %v479_v41 = vshll.u32 %v369_v54, 16 }
 0x1cc   : > { %v3151_v6 = vpop.f32.mrf.mxu0 }
 0x1cd   : > { %4176 = vst [vmem:[#allocation45_spill] sm:$0xff] %v3151_v6  ;;  %v3165_v6 = vsel %vm1035_vm6, %v1050_v43, %v1051_v9  ;;  %v478_v28 = vrot.slane %v476_v34, 7  ;;  %v1053_v9 = vrot.slane %v2833_v7, 1 }
 0x1d1   : > { %v3154_v37 = vpop.f32.mrf.mxu2 }
 0x1d2   : > { %4177 = vst [vmem:[#allocation46_spill] sm:$0xff] %v3154_v37  ;;  %v3157_v0 = vpop.f32.mrf.mxu3 }
 0x1d3   : > { %v3160_v19 = vpop.f32.mrf.mxu1 }
 0x1d4   : > { %v3162_v20 = vpop.f32.mrf.mxu0 }
 0x1d5   : > { %4178 = vst [vmem:[#allocation47_spill] sm:$0xff] %v3162_v20  ;;  %v481_v20 = vor.u32 %v479_v41, %v478_v28 }
 0x1d6   : > { %2396 = vmatmul.msk.bf16.gmra.mxu2 %vm738_vm1, %v3165_v6  ;;  %2384 = vmatmul.msk.bf16.gmra.mxu1 %vm738_vm1, %v2929_v48 }
 0x1d7   : > { %2436 = vmatmul.msk.bf16.gmra.mxu0 %vm738_vm1, %v2859_v55  ;;  %2416 = vmatmul.msk.bf16.gmra.mxu3 %vm738_vm1, %v2956_v27  ;;  %v3198_v54 = vsel %vm2693_vm4, 0, %v481_v20  ;;  %v3217_v20 = vsel %vm2693_vm4, %v478_v28, 0 }
 0x1d8   : > { %v1384_v62 = vshll.u32 %v3198_v54, 16  ;;  %4184 = vst [vmem:[#allocation53_spill] sm:$0xff] %v3217_v20 }
 0x1d9   : > { %v3175_v61 = vpop.f32.mrf.mxu2 }
 0x1da   : > { %4179 = vst [vmem:[#allocation48_spill] sm:$0xff] %v3175_v61  ;;  %v3177_v12 = vpop.f32.mrf.mxu3  ;;  %v3192_v61 = vsel %vm1035_vm6, %v1053_v9, %v1054_v2 }
 0x1db   : > { %v3179_v43 = vpop.f32.mrf.mxu1 }
 0x1dc   : > { %v3181_v32 = vpop.f32.mrf.mxu0 }
 0x1dd   : > { %4180 = vst [vmem:[#allocation49_spill] sm:$0xff] %v3181_v32  ;;  %v1386_v32 = vrot.slane %v1384_v62, 1 }
 0x1e1   : > { %v3183_v53 = vpop.f32.mrf.mxu2 }
 0x1e2   : > { %4181 = vst [vmem:[#allocation50_spill] sm:$0xff] %v3183_v53  ;;  %v3186_v55 = vpop.f32.mrf.mxu3  ;;  %v1056_v53 = vrot.slane %v2878_v24, 1  ;;  %v927_v24 = vadd.f32 %v3149_v5, %v2937_v49 }
 0x1e3   : > { %v3189_v37 = vpop.f32.mrf.mxu1 }
 0x1e4   : > { %v3204_v34 = vpop.f32.mrf.mxu0  ;;  %v3232_v28 = vsel %vm1035_vm6, %v1056_v53, %v1057_v38 }
 0x1e5   : > { %4182 = vst [vmem:[#allocation51_spill] sm:$0xff] %v3204_v34  ;;  %v1389_v34 = vshll.u32 %v3217_v20, 16 }
 0x1e6   : > { %2397 = vmatmul.msk.bf16.gmra.mxu2 %vm738_vm1, %v3192_v61  ;;  %2385 = vmatmul.msk.bf16.gmra.mxu1 %vm738_vm1, %v2956_v27 }
 0x1e7   : > { %2437 = vmatmul.msk.bf16.gmra.mxu0 %vm738_vm1, %v2901_v1  ;;  %2417 = vmatmul.msk.bf16.gmra.mxu3 %vm738_vm1, %v2984_v59  ;;  %v1382_v1 = vshrl.u32 %v3198_v54, 16  ;;  %v1391_v29 = vrot.slane %v1389_v34, 1 }
 0x1e9   : > { %v3208_v2 = vpop.f32.mrf.mxu2  ;;  %v1387_v31 = vor.u32 %v1386_v32, %v1382_v1 }
 0x1ea   : > { %4183 = vst [vmem:[#allocation52_spill] sm:$0xff] %v3208_v2  ;;  %v3211_v41 = vpop.f32.mrf.mxu3 }
 0x1eb   : > { %v3213_v9 = vpop.f32.mrf.mxu1  ;;  %v3237_v62 = vsel %vm549_vm5, %v1387_v31, %v1391_v29  ;;  %v1059_v31 = vrot.slane %v2914_v26, 1  ;;  %v1060_v29 = vrot.slane %v2910_v18, 1 }
 0x1ec   : > { %v3224_v2 = vpop.f32.mrf.mxu0  ;;  %4187 = vst [vmem:[#allocation56_spill] sm:$0xff] %v3237_v62 }
 0x1ed   : > { %4186 = vst [vmem:[#allocation55_spill] sm:$0xff] %v3224_v2 }
 0x1f1   : > { %v3221_v7 = vpop.f32.mrf.mxu2 }
 0x1f2   : > { %4185 = vst [vmem:[#allocation54_spill] sm:$0xff] %v3221_v7  ;;  %v3226_v25 = vpop.f32.mrf.mxu3 }
 0x1f3   : > { %v3229_v45 = vpop.f32.mrf.mxu1 }
 0x1f4   : > { %v3249_v38 = vpop.f32.mrf.mxu0 }
 0x1f5   : > { %4189 = vst [vmem:[#allocation58_spill] sm:$0xff] %v3249_v38  ;;  %v925_v38 = vadd.f32 %v3129_v60, %v2919_v36  ;;  %v1062_v36 = vrot.slane %v2929_v48, 1  ;;  %v1066_v48 = vrot.slane %v2970_v40, 1 }
 0x1f6   : > { %2398 = vmatmul.msk.bf16.gmra.mxu2 %vm738_vm1, %v3232_v28  ;;  %2386 = vmatmul.msk.bf16.gmra.mxu1 %vm738_vm1, %v2984_v59 }
 0x1f7   : > { %2438 = vmatmul.msk.bf16.gmra.mxu0 %vm738_vm1, %v3237_v62  ;;  %2418 = vmatmul.msk.bf16.gmra.mxu3 %vm738_vm1, %v2763_v13  ;;  %v3262_v62 = vsel %vm1035_vm6, %v1059_v31, %v1060_v29 }
 0x1f9   : > { %v3245_v17 = vpop.f32.mrf.mxu2 }
 0x1fa   : > { %4188 = vst [vmem:[#allocation57_spill] sm:$0xff] %v3245_v17  ;;  %v3247_v1 = vpop.f32.mrf.mxu3 }
 0x1fb   : > { %v3251_v32 = vpop.f32.mrf.mxu1 }
 0x1fc   : > { %v3264_v20 = vpop.f32.mrf.mxu0 }
 0x1fd   : > { %4191 = vst [vmem:[#allocation60_spill] sm:$0xff] %v3264_v20 }
 0x201   : > { %v3253_v53 = vpop.f32.mrf.mxu2 }
 0x202   : > { %4190 = vst [vmem:[#allocation59_spill] sm:$0xff] %v3253_v53  ;;  %v3256_v34 = vpop.f32.mrf.mxu3 }
 0x203   : > { %v3259_v2 = vpop.f32.mrf.mxu1 }
 0x204   : > { %v3285_v53 = vpop.f32.mrf.mxu0 }
 0x205   : > { %4192 = vst [vmem:[#allocation61_spill] sm:$0xff] %v3285_v53 }
 0x206   : > { %2399 = vmatmul.msk.bf16.gmra.mxu2 %vm738_vm1, %v3262_v62  ;;  %2387 = vmatmul.msk.bf16.gmra.mxu1 %vm738_vm1, %v2763_v13 }
 0x207   : > { %2486 = vmatmul.msk.bf16.vlgmr.msra.gmra.mxu0 %vm738_vm1, %v3084_v16  ;;  %2419 = vmatmul.msk.bf16.gmra.mxu3 %vm738_vm1, %v2803_v11 }
 0x209   : > { %v1143_v18 = vpop.f32.mrf.mxu2 }
 0x20a   : > { %v1223_v31 = vadd.f32 %v1143_v18, %v925_v38  ;;  %v3276_v29 = vpop.f32.mrf.mxu3  ;;  %v1063_v38 = vrot.slane %v2942_v57, 1 }
 0x20b   : > { %v3281_v26 = vpop.f32.mrf.mxu1 }
 0x20c   : > { %v3279_v20 = vadd.f32 %v3147_v46, %v1223_v31  ;;  %v3297_v31 = vsel %vm1035_vm6, %v1062_v36, %v1063_v38  ;;  %v3309_v49 = vpop.f32.mrf.mxu0 }
 0x20d   : > { %4193 = vst [vmem:[#allocation62_spill] sm:$0xff] %v3309_v49 }
 0x211   : > { %v1145_v17 = vpop.f32.mrf.mxu2 }
 0x212   : > { %v1224_v60 = vadd.f32 %v1145_v17, %v927_v24  ;;  %v3288_v7 = vpop.f32.mrf.mxu3  ;;  %v930_v24 = vadd.f32 %v3160_v19, %v2947_v30  ;;  %v1065_v30 = vrot.slane %v2956_v27, 1 }
 0x213   : > { %v3294_v46 = vpop.f32.mrf.mxu1 }
 0x214   : > { %v3292_v18 = vadd.f32 %v3157_v0, %v1224_v60  ;;  %v932_v60 = vadd.f32 %v3179_v43, %v2966_v39  ;;  %v3324_v49 = vpop.f32.mrf.mxu0  ;;  %v935_v39 = vadd.f32 %v3189_v37, %v2975_v15  ;;  %v1068_v37 = vrot.slane %v2984_v59, 1 }
 0x215   : > { %4194 = vst [vmem:[#allocation63_spill] sm:$0xff] %v3324_v49 }
 0x216   : > { %2400 = vmatmul.msk.bf16.gmra.mxu2 %vm738_vm1, %v3297_v31  ;;  %2388 = vmatmul.msk.bf16.gmra.mxu1 %vm738_vm1, %v2803_v11 }
 0x217   : > { %2487 = vmatmul.msk.bf16.gmra.mxu0 %vm738_vm1, %v3109_v44  ;;  %2420 = vmatmul.msk.bf16.gmra.mxu3 %vm738_vm1, %v2845_v23 }
 0x219   : > { %v1148_v0 = vpop.f32.mrf.mxu2 }
 0x21a   : > { %v1225_v57 = vadd.f32 %v1148_v0, %v930_v24  ;;  %v3311_v5 = vpop.f32.mrf.mxu3  ;;  %v3332_v0 = vsel %vm1035_vm6, %v1065_v30, %v1066_v48 }
 0x21b   : > { %v3316_v36 = vpop.f32.mrf.mxu1 }
 0x21c   : > { %v3314_v17 = vadd.f32 %v3177_v12, %v1225_v57 }
 0x221   : > { %v1150_v38 = vpop.f32.mrf.mxu2 }
 0x222   : > { %v1226_v19 = vadd.f32 %v1150_v38, %v932_v60  ;;  %v3321_v53 = vpop.f32.mrf.mxu3  ;;  %v3351_v60 = vpop.f32.mrf.mxu0  ;;  %v937_v38 = vadd.f32 %v3213_v9, %v3004_v50  ;;  %v940_v50 = vadd.f32 %v3229_v45, %v3017_v63  ;;  %v1071_v45 = vrot.slane %v2763_v13, 1 }
 0x223   : > { %v3329_v12 = vpop.f32.mrf.mxu1  ;;  %4195 = vst [vmem:[#allocation64_spill] sm:$0xff] %v3351_v60 }
 0x224   : > { %v3327_v24 = vadd.f32 %v3186_v55, %v1226_v19 }
 0x226   : > { %2401 = vmatmul.msk.bf16.gmra.mxu2 %vm738_vm1, %v3332_v0  ;;  %2389 = vmatmul.msk.bf16.gmra.mxu1 %vm738_vm1, %v2845_v23 }
 0x227   : > { %2488 = vmatmul.msk.bf16.gmra.mxu0 %vm738_vm1, %v3134_v47  ;;  %2421 = vmatmul.msk.bf16.gmra.mxu3 %vm738_vm1, %v2889_v33 }
 0x229   : > { %v1153_v55 = vpop.f32.mrf.mxu2 }
 0x22a   : > { %v1227_v40 = vadd.f32 %v1153_v55, %v935_v39  ;;  %v3344_v43 = vpop.f32.mrf.mxu3  ;;  %v1069_v39 = vrot.slane %v3008_v58, 1  ;;  %v3375_v58 = vpop.f32.mrf.mxu0 }
 0x22b   : > { %v3349_v57 = vpop.f32.mrf.mxu1  ;;  %4196 = vst [vmem:[#allocation65_spill] sm:$0xff] %v3375_v58 }
 0x22c   : > { %v3347_v48 = vadd.f32 %v3211_v41, %v1227_v40  ;;  %v3365_v40 = vsel %vm1035_vm6, %v1068_v37, %v1069_v39 }
 0x231   : > { %v1155_v30 = vpop.f32.mrf.mxu2 }
 0x232   : > { %v1228_v15 = vadd.f32 %v1155_v30, %v937_v38  ;;  %v3356_v19 = vpop.f32.mrf.mxu3  ;;  %v3389_v63 = vpop.f32.mrf.mxu0 }
 0x233   : > { %v3362_v41 = vpop.f32.mrf.mxu1  ;;  %4197 = vst [vmem:[#allocation66_spill] sm:$0xff] %v3389_v63 }
 0x234   : > { %v3360_v55 = vadd.f32 %v3226_v25, %v1228_v15  ;;  %v942_v15 = vadd.f32 %v3251_v32, %v3030_v51 }
 0x236   : > { %2402 = vmatmul.msk.bf16.gmra.mxu2 %vm738_vm1, %v3365_v40  ;;  %2390 = vmatmul.msk.bf16.gmra.mxu1 %vm738_vm1, %v2889_v33 }
 0x237   : > { %2489 = vmatmul.msk.bf16.gmra.mxu0 %vm738_vm1, %v3165_v6  ;;  %2422 = vmatmul.msk.bf16.gmra.mxu3 %vm738_vm1, %v3198_v54 }
 0x239   : > { %v1158_v25 = vpop.f32.mrf.mxu2 }
 0x23a   : > { %v1229_v9 = vadd.f32 %v1158_v25, %v940_v50  ;;  %v3379_v38 = vpop.f32.mrf.mxu3  ;;  %v1072_v50 = vrot.slane %v2767_v14, 1  ;;  %v945_v14 = vadd.f32 %v3259_v2, %v3032_v22  ;;  %v1074_v22 = vrot.slane %v2803_v11, 1 }
 0x23b   : > { %v3384_v37 = vpop.f32.mrf.mxu1 }
 0x23c   : > { %v3382_v30 = vadd.f32 %v3247_v1, %v1229_v9  ;;  %v3400_v9 = vsel %vm1035_vm6, %v1071_v45, %v1072_v50 }
 0x241   : > { %v1160_v39 = vpop.f32.mrf.mxu2 }
 0x242   : > { %v1230_v58 = vadd.f32 %v1160_v39, %v942_v15  ;;  %v3391_v60 = vpop.f32.mrf.mxu3 }
 0x243   : > { %v3397_v1 = vpop.f32.mrf.mxu1 }
 0x244   : > { %v3395_v25 = vadd.f32 %v3256_v34, %v1230_v58  ;;  %v3414_v58 = vpop.f32.mrf.mxu0 }
 0x245   : > { %4198 = vst [vmem:[#allocation67_spill] sm:$0xff] %v3414_v58 }
 0x246   : > { %2403 = vmatmul.msk.bf16.gmra.mxu2 %vm738_vm1, %v3400_v9  ;;  %2439 = vmatmul.msk.bf16.vlgmr.msra.gmra.mxu1 %vm738_vm1, %v3059_v52  ;;  %v947_v52 = vadd.f32 %v3281_v26, %v3046_v4 }
 0x247   : > { %2490 = vmatmul.msk.bf16.gmra.mxu0 %vm738_vm1, %v3192_v61  ;;  %2470 = vmatmul.msk.bf16.vlgmr.msra.gmra.mxu3 %vm738_vm1, %v2733_v21  ;;  %v1075_v21 = vrot.slane %v2797_v3, 1  ;;  %v950_v3 = vadd.f32 %v3294_v46, %v3054_v42  ;;  %v1077_v42 = vrot.slane %v2845_v23, 1 }
 0x249   : > { %v1163_v51 = vpop.f32.mrf.mxu2 }
 0x24a   : > { %v1231_v32 = vadd.f32 %v1163_v51, %v945_v14  ;;  %v3412_v34 = vpop.f32.mrf.mxu3 }
 0x24b   : > { %v3419_v39 = vpop.f32.mrf.mxu1 }
 0x24c   : > { %v3417_v15 = vadd.f32 %v3276_v29, %v1231_v32  ;;  %v3433_v29 = vsel %vm1035_vm6, %v1074_v22, %v1075_v21  ;;  %v3435_v32 = vpop.f32.mrf.mxu0 }
 0x24d   : > { %4199 = vst [vmem:[#allocation68_spill] sm:$0xff] %v3435_v32 }
 0x251   : > { %v1165_v45 = vpop.f32.mrf.mxu2 }
 0x252   : > { %v1232_v2 = vadd.f32 %v1165_v45, %v947_v52  ;;  %v3424_v50 = vpop.f32.mrf.mxu3 }
 0x253   : > { %v3430_v51 = vpop.f32.mrf.mxu1 }
 0x254   : > { %v3428_v14 = vadd.f32 %v3288_v7, %v1232_v2  ;;  %v3456_v22 = vpop.f32.mrf.mxu0 }
 0x255   : > { %4200 = vst [vmem:[#allocation69_spill] sm:$0xff] %v3456_v22 }
 0x256   : > { %2404 = vmatmul.msk.bf16.gmra.mxu2 %vm738_vm1, %v3433_v29  ;;  %2440 = vmatmul.msk.bf16.gmra.mxu1 %vm738_vm1, %v3084_v16  ;;  %v952_v16 = vadd.f32 %v3316_v36, %v3071_v35  ;;  %v4201_v35 = vld [vmem:[#allocation6_spill] sm:$0xff] }
 0x257   : > { %2491 = vmatmul.msk.bf16.gmra.mxu0 %vm738_vm1, %v3232_v28  ;;  %2471 = vmatmul.msk.bf16.gmra.mxu3 %vm738_vm1, %v2749_v56  ;;  %v1078_v56 = vrot.slane %v2837_v8, 1  ;;  %v955_v8 = vadd.f32 %v3329_v12, %v3079_v10  ;;  %v1080_v10 = vrot.slane %v2889_v33, 1 }
 0x259   : > { %v1168_v7 = vpop.f32.mrf.mxu2 }
 0x25a   : > { %v1233_v26 = vadd.f32 %v1168_v7, %v950_v3  ;;  %v3447_v4 = vpop.f32.mrf.mxu3  ;;  %v3468_v7 = vsel %vm1035_vm6, %v1077_v42, %v1078_v56 }
 0x25b   : > { %v3452_v45 = vpop.f32.mrf.mxu1 }
 0x25c   : > { %v3450_v52 = vadd.f32 %v3311_v5, %v1233_v26  ;;  %v3480_v36 = vpop.f32.mrf.mxu0 }
 0x25d   : > { %4202 = vst [vmem:[#allocation6_spill] sm:$0xff] %v3480_v36 }
 0x261   : > { %v1170_v2 = vpop.f32.mrf.mxu2 }
 0x262   : > { %v1234_v46 = vadd.f32 %v1170_v2, %v952_v16  ;;  %v3459_v21 = vpop.f32.mrf.mxu3 }
 0x263   : > { %v3465_v5 = vpop.f32.mrf.mxu1 }
 0x264   : > { %v3463_v3 = vadd.f32 %v3321_v53, %v1234_v46  ;;  %v3495_v36 = vpop.f32.mrf.mxu0 }
 0x266   : > { %2405 = vmatmul.msk.bf16.gmra.mxu2 %vm738_vm1, %v3468_v7  ;;  %2441 = vmatmul.msk.bf16.gmra.mxu1 %vm738_vm1, %v3109_v44  ;;  %v4203_v44 = vld [vmem:[#allocation34_spill] sm:$0xff] }
 0x267   : > { %2492 = vmatmul.msk.bf16.gmra.mxu0 %vm738_vm1, %v3262_v62  ;;  %2472 = vmatmul.msk.bf16.gmra.mxu3 %vm738_vm1, %v4201_v35  ;;  %v957_v46 = vadd.f32 %v3349_v57, %v4203_v44  ;;  %v4204_v35 = vld [vmem:[#allocation15_spill] sm:$0xff]  ;;  %4205 = vst [vmem:[#allocation34_spill] sm:$0xff] %v3495_v36  ;;  %v4206_v57 = vld [vmem:[#allocation37_spill] sm:$0xff] }
 0x268   : > { %v1081_v32 = vrot.slane %v4204_v35, 1  ;;  %v4207_v44 = vld [vmem:[#allocation9_spill] sm:$0xff] }
 0x269   : > { %v1173_v53 = vpop.f32.mrf.mxu2 }
 0x26a   : > { %v1235_v26 = vadd.f32 %v1173_v53, %v955_v8  ;;  %v3482_v16 = vpop.f32.mrf.mxu3  ;;  %v3503_v53 = vsel %vm1035_vm6, %v1080_v10, %v1081_v32 }
 0x26b   : > { %v3487_v42 = vpop.f32.mrf.mxu1 }
 0x26c   : > { %v3485_v2 = vadd.f32 %v3344_v43, %v1235_v26  ;;  %v960_v26 = vadd.f32 %v3362_v41, %v4206_v57 }
 0x271   : > { %v1175_v56 = vpop.f32.mrf.mxu2 }
 0x272   : > { %v1236_v12 = vadd.f32 %v1175_v56, %v957_v46  ;;  %v3492_v22 = vpop.f32.mrf.mxu3 }
 0x273   : > { %v3500_v43 = vpop.f32.mrf.mxu1 }
 0x274   : > { %v3498_v8 = vadd.f32 %v3356_v19, %v1236_v12  ;;  %v3522_v12 = vpop.f32.mrf.mxu0 }
 0x275   : > { %4208 = vst [vmem:[#allocation15_spill] sm:$0xff] %v3522_v12 }
 0x276   : > { %2406 = vmatmul.msk.bf16.gmra.mxu2 %vm738_vm1, %v3503_v53  ;;  %2442 = vmatmul.msk.bf16.gmra.mxu1 %vm738_vm1, %v3134_v47  ;;  %v4209_v47 = vld [vmem:[#allocation40_spill] sm:$0xff] }
 0x277   : > { %2493 = vmatmul.msk.bf16.gmra.mxu0 %vm738_vm1, %v3297_v31  ;;  %2473 = vmatmul.msk.bf16.gmra.mxu3 %vm738_vm1, %v4207_v44  ;;  %v962_v35 = vadd.f32 %v3384_v37, %v4209_v47  ;;  %v4210_v44 = vld [vmem:[#allocation3_spill] sm:$0xff] }
 0x279   : > { %v1178_v19 = vpop.f32.mrf.mxu2 }
 0x27a   : > { %v1237_v46 = vadd.f32 %v1178_v19, %v960_v26  ;;  %v3515_v56 = vpop.f32.mrf.mxu3  ;;  %v4213_v19 = vld [vmem:[#allocation12_spill] sm:$0xff] }
 0x27b   : > { %v3520_v10 = vpop.f32.mrf.mxu1 }
 0x27c   : > { %v3518_v32 = vadd.f32 %v3379_v38, %v1237_v46  ;;  %v4211_v38 = vld [vmem:[#allocation44_spill] sm:$0xff] }
 0x27d   : > { %v965_v37 = vadd.f32 %v3397_v1, %v4211_v38 }
 0x281   : > { %v1180_v36 = vpop.f32.mrf.mxu2 }
 0x282   : > { %v1238_v58 = vadd.f32 %v1180_v36, %v962_v35  ;;  %v3526_v41 = vpop.f32.mrf.mxu3  ;;  %v3541_v36 = vpop.f32.mrf.mxu0 }
 0x283   : > { %v3531_v26 = vpop.f32.mrf.mxu1  ;;  %4212 = vst [vmem:[#allocation37_spill] sm:$0xff] %v3541_v36 }
 0x284   : > { %v3529_v57 = vadd.f32 %v3391_v60, %v1238_v58 }
 0x286   : > { %2455 = vmatmul.msk.bf16.vlgmr.msra.gmra.mxu2 %vm738_vm1, %v4210_v44  ;;  %2443 = vmatmul.msk.bf16.gmra.mxu1 %vm738_vm1, %v3165_v6  ;;  %v4214_v6 = vld [vmem:[#allocation46_spill] sm:$0xff] }
 0x287   : > { %2494 = vmatmul.msk.bf16.gmra.mxu0 %vm738_vm1, %v3332_v0  ;;  %2474 = vmatmul.msk.bf16.gmra.mxu3 %vm738_vm1, %v4213_v19  ;;  %v967_v44 = vadd.f32 %v3419_v39, %v4214_v6 }
 0x289   : > { %v1183_v60 = vpop.f32.mrf.mxu2 }
 0x28a   : > { %v1239_v58 = vadd.f32 %v1183_v60, %v965_v37  ;;  %v3545_v46 = vpop.f32.mrf.mxu3  ;;  %v3554_v63 = vpop.f32.mrf.mxu0  ;;  %v4216_v60 = vld [vmem:[#allocation4_spill] sm:$0xff] }
 0x28b   : > { %v3550_v35 = vpop.f32.mrf.mxu1  ;;  %4215 = vst [vmem:[#allocation9_spill] sm:$0xff] %v3554_v63 }
 0x28c   : > { %v3548_v47 = vadd.f32 %v3412_v34, %v1239_v58  ;;  %v4217_v34 = vld [vmem:[#allocation48_spill] sm:$0xff] }
 0x28d   : > { %v970_v39 = vadd.f32 %v3430_v51, %v4217_v34 }
 0x291   : > { %v1185_v12 = vpop.f32.mrf.mxu2 }
 0x292   : > { %v1240_v1 = vadd.f32 %v1185_v12, %v967_v44  ;;  %v3556_v38 = vpop.f32.mrf.mxu3  ;;  %v4218_v12 = vld [vmem:[#allocation16_spill] sm:$0xff]  ;;  %v3575_v44 = vpop.f32.mrf.mxu0 }
 0x293   : > { %v3561_v37 = vpop.f32.mrf.mxu1  ;;  %4219 = vst [vmem:[#allocation40_spill] sm:$0xff] %v3575_v44 }
 0x294   : > { %v3559_v19 = vadd.f32 %v3424_v50, %v1240_v1 }
 0x296   : > { %2456 = vmatmul.msk.bf16.gmra.mxu2 %vm738_vm1, %v4216_v60  ;;  %2444 = vmatmul.msk.bf16.gmra.mxu1 %vm738_vm1, %v3192_v61  ;;  %v4221_v61 = vld [vmem:[#allocation50_spill] sm:$0xff] }
 0x297   : > { %2495 = vmatmul.msk.bf16.gmra.mxu0 %vm738_vm1, %v3365_v40  ;;  %2475 = vmatmul.msk.bf16.gmra.mxu3 %vm738_vm1, %v4218_v12  ;;  %v972_v63 = vadd.f32 %v3452_v45, %v4221_v61  ;;  %v4226_v45 = vld [vmem:[#allocation19_spill] sm:$0xff] }
 0x299   : > { %v1188_v58 = vpop.f32.mrf.mxu2 }
 0x29a   : > { %v1241_v50 = vadd.f32 %v1188_v58, %v970_v39  ;;  %v3573_v6 = vpop.f32.mrf.mxu3  ;;  %v3591_v12 = vpop.f32.mrf.mxu0  ;;  %v4224_v58 = vld [vmem:[#allocation5_spill] sm:$0xff] }
 0x29b   : > { %v3580_v60 = vpop.f32.mrf.mxu1  ;;  %4223 = vst [vmem:[#allocation12_spill] sm:$0xff] %v3591_v12 }
 0x29c   : > { %v3578_v1 = vadd.f32 %v3447_v4, %v1241_v50  ;;  %v4225_v4 = vld [vmem:[#allocation52_spill] sm:$0xff] }
 0x29e   : > { %4220 = vst [vmem:[#allocation3_spill] sm:$0xff] %v3578_v1 }
 0x2a1   : > { %v1190_v36 = vpop.f32.mrf.mxu2 }
 0x2a2   : > { %v1242_v49 = vadd.f32 %v1190_v36, %v972_v63  ;;  %v3584_v51 = vpop.f32.mrf.mxu3  ;;  %v975_v63 = vadd.f32 %v3465_v5, %v4225_v4  ;;  %v3612_v12 = vpop.f32.mrf.mxu0 }
 0x2a3   : > { %v3589_v39 = vpop.f32.mrf.mxu1 }
 0x2a4   : > { %v3587_v34 = vadd.f32 %v3459_v21, %v1242_v49 }
 0x2a6   : > { %4222 = vst [vmem:[#allocation44_spill] sm:$0xff] %v3587_v34  ;;  %2457 = vmatmul.msk.bf16.gmra.mxu2 %vm738_vm1, %v4224_v58  ;;  %2445 = vmatmul.msk.bf16.gmra.mxu1 %vm738_vm1, %v3232_v28  ;;  %v4228_v58 = vld [vmem:[#allocation54_spill] sm:$0xff] }
 0x2a7   : > { %2496 = vmatmul.msk.bf16.gmra.mxu0 %vm738_vm1, %v3400_v9  ;;  %2476 = vmatmul.msk.bf16.gmra.mxu3 %vm738_vm1, %v4226_v45  ;;  %v977_v28 = vadd.f32 %v3487_v42, %v4228_v58  ;;  %v4230_v45 = vld [vmem:[#allocation8_spill] sm:$0xff] }
 0x2a9   : > { %v1193_v49 = vpop.f32.mrf.mxu2 }
 0x2aa   : > { %v1243_v21 = vadd.f32 %v1193_v49, %v975_v63  ;;  %v3603_v36 = vpop.f32.mrf.mxu3 }
 0x2ab   : > { %v3608_v61 = vpop.f32.mrf.mxu1 }
 0x2ac   : > { %v3606_v50 = vadd.f32 %v3482_v16, %v1243_v21  ;;  %v4231_v16 = vld [vmem:[#allocation57_spill] sm:$0xff] }
 0x2ad   : > { %v980_v42 = vadd.f32 %v3500_v43, %v4231_v16  ;;  %v4234_v43 = vld [vmem:[#allocation24_spill] sm:$0xff] }
 0x2ae   : > { %4227 = vst [vmem:[#allocation46_spill] sm:$0xff] %v3606_v50  ;;  %v1488_v16 = vadd.f32 %v4234_v43, %v3279_v20  ;;  %v4237_v20 = vld [vmem:[#allocation25_spill] sm:$0xff] }
 0x2b1   : > { %v1195_v44 = vpop.f32.mrf.mxu2 }
 0x2b2   : > { %v1244_v34 = vadd.f32 %v1195_v44, %v977_v28  ;;  %v3614_v5 = vpop.f32.mrf.mxu3  ;;  %v4232_v44 = vld [vmem:[#allocation21_spill] sm:$0xff] }
 0x2b3   : > { %v3619_v63 = vpop.f32.mrf.mxu1 }
 0x2b4   : > { %v3617_v4 = vadd.f32 %v3492_v22, %v1244_v34  ;;  %v3631_v22 = vpop.f32.mrf.mxu0 }
 0x2b6   : > { %4229 = vst [vmem:[#allocation4_spill] sm:$0xff] %v3617_v4  ;;  %2458 = vmatmul.msk.bf16.gmra.mxu2 %vm738_vm1, %v4230_v45  ;;  %2446 = vmatmul.msk.bf16.gmra.mxu1 %vm738_vm1, %v3262_v62  ;;  %v4233_v62 = vld [vmem:[#allocation59_spill] sm:$0xff] }
 0x2b7   : > { %2497 = vmatmul.msk.bf16.gmra.mxu0 %vm738_vm1, %v3433_v29  ;;  %2477 = vmatmul.msk.bf16.gmra.mxu3 %vm738_vm1, %v4232_v44  ;;  %v982_v45 = vadd.f32 %v3520_v10, %v4233_v62  ;;  %v985_v10 = vadd.f32 %v3531_v26, %v4237_v20  ;;  %v4239_v62 = vld [vmem:[#allocation26_spill] sm:$0xff] }
 0x2b9   : > { %v1198_v49 = vpop.f32.mrf.mxu2 }
 0x2ba   : > { %v1245_v34 = vadd.f32 %v1198_v49, %v980_v42  ;;  %v3633_v21 = vpop.f32.mrf.mxu3 }
 0x2bb   : > { %v3638_v28 = vpop.f32.mrf.mxu1 }
 0x2bc   : > { %v3636_v58 = vadd.f32 %v3515_v56, %v1245_v34  ;;  %v3644_v44 = vpop.f32.mrf.mxu0  ;;  %v4236_v34 = vld [vmem:[#allocation11_spill] sm:$0xff] }
 0x2c1   : > { %v1200_v4 = vpop.f32.mrf.mxu2 }
 0x2c2   : > { %v1246_v50 = vadd.f32 %v1200_v4, %v982_v45  ;;  %v3649_v49 = vpop.f32.mrf.mxu3  ;;  %v4238_v4 = vld [vmem:[#allocation22_spill] sm:$0xff]  ;;  %v1489_v45 = vadd.f32 %v4239_v62, %v3292_v18 }
 0x2c3   : > { %v1540_v42 = vpop.f32.mrf.mxu1  ;;  %v4244_v62 = vld [vmem:[#allocation14_spill] sm:$0xff] }
 0x2c4   : > { %v3647_v1 = vadd.f32 %v3526_v41, %v1246_v50  ;;  %v3651_v56 = vadd.f32 %v1540_v42, %v1488_v16 }
 0x2c6   : > { %4235 = vst [vmem:[#allocation48_spill] sm:$0xff] %v3647_v1  ;;  %2459 = vmatmul.msk.bf16.gmra.mxu2 %vm738_vm1, %v4236_v34  ;;  %2447 = vmatmul.msk.bf16.gmra.mxu1 %vm738_vm1, %v3297_v31  ;;  %v3670_v31 = vpop.f32.mrf.mxu0  ;;  %v4241_v1 = vld [vmem:[#allocation27_spill] sm:$0xff] }
 0x2c7   : > { %2498 = vmatmul.msk.bf16.gmra.mxu0 %vm738_vm1, %v3468_v7  ;;  %2478 = vmatmul.msk.bf16.gmra.mxu3 %vm738_vm1, %v4238_v4  ;;  %v987_v26 = vadd.f32 %v3550_v35, %v4241_v1  ;;  %v4245_v35 = vld [vmem:[#allocation29_spill] sm:$0xff] }
 0x2c8   : > { %v990_v1 = vadd.f32 %v3561_v37, %v4245_v35 }
 0x2c9   : > { %v1203_v41 = vpop.f32.mrf.mxu2 }
 0x2ca   : > { %v1247_v50 = vadd.f32 %v1203_v41, %v985_v10  ;;  %v3672_v34 = vpop.f32.mrf.mxu3  ;;  %v4242_v10 = vld [vmem:[#allocation28_spill] sm:$0xff] }
 0x2cb   : > { %v1542_v16 = vpop.f32.mrf.mxu1  ;;  %v1490_v41 = vadd.f32 %v4242_v10, %v3314_v17  ;;  %v4246_v17 = vld [vmem:[#allocation23_spill] sm:$0xff] }
 0x2cc   : > { %v3666_v43 = vadd.f32 %v3545_v46, %v1247_v50  ;;  %v3668_v42 = vadd.f32 %v1542_v16, %v1489_v45 }
 0x2ce   : > { %4240 = vst [vmem:[#allocation16_spill] sm:$0xff] %v3666_v43  ;;  %v3691_v45 = vpop.f32.mrf.mxu0 }
 0x2d1   : > { %v1205_v20 = vpop.f32.mrf.mxu2 }
 0x2d2   : > { %v1248_v4 = vadd.f32 %v1205_v20, %v987_v26  ;;  %v4247_v20 = vld [vmem:[#allocation30_spill] sm:$0xff] }
 0x2d3   : > { %v1545_v46 = vpop.f32.mrf.mxu1 }
 0x2d4   : > { %v3679_v18 = vadd.f32 %v3556_v38, %v1248_v4  ;;  %v3681_v50 = vadd.f32 %v1545_v46, %v1490_v41  ;;  %v3695_v38 = vpop.f32.mrf.mxu3  ;;  %v1491_v4 = vadd.f32 %v4247_v20, %v3327_v24  ;;  %v4248_v46 = vld [vmem:[#allocation31_spill] sm:$0xff] }
 0x2d5   : > { %v992_v37 = vadd.f32 %v3580_v60, %v4248_v46  ;;  %v4251_v60 = vld [vmem:[#allocation18_spill] sm:$0xff]  ;;  %v4253_v46 = vld [vmem:[#allocation7_spill] sm:$0xff] }
 0x2d6   : > { %4243 = vst [vmem:[#allocation50_spill] sm:$0xff] %v3679_v18  ;;  %2460 = vmatmul.msk.bf16.gmra.mxu2 %vm738_vm1, %v4244_v62  ;;  %2448 = vmatmul.msk.bf16.gmra.mxu1 %vm738_vm1, %v3332_v0  ;;  %v3707_v18 = vpop.f32.mrf.mxu0 }
 0x2d7   : > { %2499 = vmatmul.msk.bf16.gmra.mxu0 %vm738_vm1, %v3503_v53  ;;  %2479 = vmatmul.msk.bf16.gmra.mxu3 %vm738_vm1, %v4246_v17  ;;  %v1522_v17 = vrot.slane %v3198_v54, 1 }
 0x2d9   : > { %v1208_v16 = vpop.f32.mrf.mxu2 }
 0x2da   : > { %v1249_v26 = vadd.f32 %v1208_v16, %v990_v1  ;;  %v4249_v1 = vld [vmem:[#allocation32_spill] sm:$0xff] }
 0x2db   : > { %v1547_v10 = vpop.f32.mrf.mxu1  ;;  %v1492_v24 = vadd.f32 %v4249_v1, %v3347_v48  ;;  %v4252_v48 = vld [vmem:[#allocation33_spill] sm:$0xff] }
 0x2dc   : > { %v3700_v0 = vadd.f32 %v3573_v6, %v1249_v26  ;;  %v3702_v41 = vadd.f32 %v1547_v10, %v1491_v4  ;;  %v3709_v43 = vpop.f32.mrf.mxu3  ;;  %v4250_v26 = vld [vmem:[#allocation53_spill] sm:$0xff] }
 0x2dd   : > { %v1523_v20 = vrot.slane %v4250_v26, 1 }
 0x2df   : > { %v3722_v10 = vsel %vm1035_vm6, %v1522_v17, %v1523_v20  ;;  %v4256_v20 = vld [vmem:[#allocation36_spill] sm:$0xff] }
 0x2e1   : > { %v1210_v62 = vpop.f32.mrf.mxu2 }
 0x2e2   : > { %v1250_v35 = vadd.f32 %v1210_v62, %v992_v37 }
 0x2e3   : > { %v1550_v16 = vpop.f32.mrf.mxu1 }
 0x2e4   : > { %v3714_v6 = vadd.f32 %v3584_v51, %v1250_v35  ;;  %v3717_v4 = vadd.f32 %v1550_v16, %v1492_v24  ;;  %v995_v51 = vadd.f32 %v3589_v39, %v4252_v48  ;;  %v4254_v35 = vld [vmem:[#allocation35_spill] sm:$0xff]  ;;  %v3737_v16 = vpop.f32.mrf.mxu0  ;;  %v997_v39 = vadd.f32 %v3608_v61, %v4256_v20  ;;  %v4260_v61 = vld [vmem:[#allocation2_spill] sm:$0xff] }
 0x2e5   : > { %v1493_v1 = vadd.f32 %v4254_v35, %v3360_v55 }
 0x2e6   : > { %2461 = vmatmul.msk.bf16.gmra.mxu2 %vm738_vm1, %v4251_v60  ;;  %2449 = vmatmul.msk.bf16.gmra.mxu1 %vm738_vm1, %v3365_v40  ;;  %v3739_v40 = vpop.f32.mrf.mxu3 }
 0x2e7   : > { %2500 = vmatmul.msk.bf16.gmra.mxu0 %vm738_vm1, %v3722_v10  ;;  %2480 = vmatmul.msk.bf16.gmra.mxu3 %vm738_vm1, %v4253_v46 }
 0x2e9   : > { %v1213_v37 = vpop.f32.mrf.mxu2 }
 0x2ea   : > { %v1251_v62 = vadd.f32 %v1213_v37, %v995_v51  ;;  %v4257_v51 = vld [vmem:[#allocation38_spill] sm:$0xff] }
 0x2eb   : > { %v1552_v24 = vpop.f32.mrf.mxu1  ;;  %v1494_v46 = vadd.f32 %v4257_v51, %v3382_v30  ;;  %v4261_v30 = vld [vmem:[#allocation39_spill] sm:$0xff] }
 0x2ec   : > { %v3735_v17 = vadd.f32 %v3603_v36, %v1251_v62  ;;  %v3741_v26 = vadd.f32 %v1552_v24, %v1493_v1  ;;  %v4259_v62 = vld [vmem:[#allocation20_spill] sm:$0xff]  ;;  %v3754_v35 = vpop.f32.mrf.mxu0  ;;  %v4262_v24 = vld [vmem:[#allocation10_spill] sm:$0xff] }
 0x2ee   : > { %4255 = vst [vmem:[#allocation5_spill] sm:$0xff] %v3735_v17  ;;  %v3756_v1 = vpop.f32.mrf.mxu3 }
 0x2f1   : > { %v1215_v60 = vpop.f32.mrf.mxu2 }
 0x2f2   : > { %v1252_v48 = vadd.f32 %v1215_v60, %v997_v39  ;;  %v4263_v60 = vld [vmem:[#allocation41_spill] sm:$0xff] }
 0x2f3   : > { %v1555_v36 = vpop.f32.mrf.mxu1 }
 0x2f4   : > { %v3748_v55 = vadd.f32 %v3614_v5, %v1252_v48  ;;  %v3750_v37 = vadd.f32 %v1555_v36, %v1494_v46  ;;  %v1000_v5 = vadd.f32 %v3619_v63, %v4261_v30  ;;  %v1495_v48 = vadd.f32 %v4263_v60, %v3395_v25 }
 0x2f6   : > { %4258 = vst [vmem:[#allocation52_spill] sm:$0xff] %v3748_v55  ;;  %2462 = vmatmul.msk.bf16.gmra.mxu2 %vm738_vm1, %v4259_v62  ;;  %2450 = vmatmul.msk.bf16.gmra.mxu1 %vm738_vm1, %v3400_v9  ;;  %v4264_v9 = vld [vmem:[#allocation42_spill] sm:$0xff]  ;;  %v3775_v55 = vpop.f32.mrf.mxu3 }
 0x2f7   : > { %2501 = vmatmul.msk.bf16.gmra.mxu0 %vm738_vm1, %v4260_v61  ;;  %2481 = vmatmul.msk.bf16.gmra.mxu3 %vm738_vm1, %v4262_v24  ;;  %v1002_v62 = vadd.f32 %v3638_v28, %v4264_v9  ;;  %v4265_v24 = vld [vmem:[#allocation43_spill] sm:$0xff] }
 0x2f8   : > { %v1496_v17 = vadd.f32 %v4265_v24, %v3417_v15  ;;  %v4267_v15 = vld [vmem:[#allocation45_spill] sm:$0xff] }
 0x2f9   : > { %v1218_v20 = vpop.f32.mrf.mxu2 }
 0x2fa   : > { %v1253_v39 = vadd.f32 %v1218_v20, %v1000_v5 }
 0x2fb   : > { %v1557_v46 = vpop.f32.mrf.mxu1 }
 0x2fc   : > { %v3769_v51 = vadd.f32 %v3633_v21, %v1253_v39  ;;  %v3771_v36 = vadd.f32 %v1557_v46, %v1495_v48  ;;  %v4266_v21 = vld [vmem:[#allocation13_spill] sm:$0xff] }
 0x2fe   : > { %v3791_v60 = vpop.f32.mrf.mxu3 }
 0x301   : > { %v1220_v63 = vpop.f32.mrf.mxu2 }
 0x302   : > { %v1254_v30 = vadd.f32 %v1220_v63, %v1002_v62  ;;  %v4268_v62 = vld [vmem:[#allocation47_spill] sm:$0xff] }
 0x303   : > { %v1560_v25 = vpop.f32.mrf.mxu1  ;;  %v1498_v63 = vadd.f32 %v4268_v62, %v3450_v52 }
 0x304   : > { %v3780_v5 = vadd.f32 %v3649_v49, %v1254_v30  ;;  %v3782_v20 = vadd.f32 %v1560_v25, %v1496_v17  ;;  %v1497_v49 = vadd.f32 %v4267_v15, %v3428_v14  ;;  %v4270_v15 = vld [vmem:[#allocation49_spill] sm:$0xff] }
 0x306   : > { %2463 = vmatmul.msk.bf16.gmra.mxu2 %vm738_vm1, %v2956_v27  ;;  %2451 = vmatmul.msk.bf16.gmra.mxu1 %vm738_vm1, %v3433_v29  ;;  %v3805_v24 = vpop.f32.mrf.mxu3 }
 0x307   : > { %2482 = vmatmul.msk.bf16.gmra.mxu3 %vm738_vm1, %v4266_v21 }
 0x309   : > { %v1664_v28 = vpop.f32.mrf.mxu2 }
 0x30a   : > { %v1744_v39 = vadd.f32 %v1664_v28, %v3651_v56 }
 0x30b   : > { %v1562_v48 = vpop.f32.mrf.mxu1 }
 0x30c   : > { %v1868_v17 = vadd.f32 %v3672_v34, %v1744_v39  ;;  %v3796_v46 = vadd.f32 %v1562_v48, %v1497_v49  ;;  %v1499_v49 = vadd.f32 %v4270_v15, %v3463_v3  ;;  %v4273_v15 = vld [vmem:[#allocation55_spill] sm:$0xff] }
 0x30e   : > { %v3799_v9 = vadd.f32 %v3612_v12, %v1868_v17  ;;  %v3837_v62 = vpop.f32.mrf.mxu3 }
 0x310   : > { %v2093_v34 = vmul.f32 %v3799_v9, %v3799_v9  ;;  %v2024_v52 = vsel %vm738_vm1, %v3799_v9, 0.0 }
 0x311   : > { %v1666_v27 = vpop.f32.mrf.mxu2 }
 0x312   : > { %v1745_v29 = vadd.f32 %v1666_v27, %v3668_v42  ;;  %v2125_v28 = vsel %vm738_vm1, %v2093_v34, 0.0 }
 0x313   : > { %v1565_v30 = vpop.f32.mrf.mxu1 }
 0x314   : > { %v1869_v56 = vadd.f32 %v3695_v38, %v1745_v29  ;;  %v3807_v14 = vadd.f32 %v1565_v30, %v1498_v63  ;;  %v4269_v38 = vld [vmem:[#allocation17_spill] sm:$0xff]  ;;  %v3839_v63 = vpop.f32.mrf.mxu0 }
 0x316   : > { %v3812_v25 = vadd.f32 %v3631_v22, %v1869_v56  ;;  %2464 = vmatmul.msk.bf16.gmra.mxu2 %vm738_vm1, %v2984_v59  ;;  %2452 = vmatmul.msk.bf16.gmra.mxu1 %vm738_vm1, %v3468_v7 }
 0x317   : > { %2483 = vmatmul.msk.bf16.gmra.mxu3 %vm738_vm1, %v4269_v38 }
 0x318   : > { %v2025_v12 = vsel %vm738_vm1, %v3812_v25, 0.0  ;;  %v2094_v42 = vmul.f32 %v3812_v25, %v3812_v25 }
 0x319   : > { %v2026_v22 = vadd.f32 %v2025_v12, %v2024_v52  ;;  %v1669_v21 = vpop.f32.mrf.mxu2 }
 0x31a   : > { %v2126_v59 = vsel %vm738_vm1, %v2094_v42, 0.0  ;;  %v1746_v7 = vadd.f32 %v1669_v21, %v3681_v50 }
 0x31b   : > { %v2127_v39 = vadd.f32 %v2126_v59, %v2125_v28  ;;  %v1567_v48 = vpop.f32.mrf.mxu1 }
 0x31c   : > { %v1870_v17 = vadd.f32 %v3709_v43, %v1746_v7  ;;  %v3832_v27 = vadd.f32 %v1567_v48, %v1499_v49  ;;  %v3867_v7 = vpop.f32.mrf.mxu0  ;;  %v1501_v49 = vadd.f32 %v4273_v15, %v3498_v8 }
 0x31e   : > { %v3835_v29 = vadd.f32 %v3644_v44, %v1870_v17  ;;  %v4271_v44 = vld [vmem:[#allocation51_spill] sm:$0xff] }
 0x31f   : > { %v1500_v12 = vadd.f32 %v4271_v44, %v3485_v2  ;;  %v4274_v44 = vld [vmem:[#allocation58_spill] sm:$0xff] }
 0x320   : > { %v2027_v56 = vsel %vm738_vm1, %v3835_v29, 0.0  ;;  %v2095_v50 = vmul.f32 %v3835_v29, %v3835_v29 }
 0x321   : > { %v2028_v30 = vadd.f32 %v2027_v56, %v2026_v22  ;;  %v1671_v3 = vpop.f32.mrf.mxu2  ;;  %v4272_v22 = vld [vmem:[#allocation56_spill] sm:$0xff] }
 0x322   : > { %v2128_v43 = vsel %vm738_vm1, %v2095_v50, 0.0  ;;  %v1747_v34 = vadd.f32 %v1671_v3, %v3702_v41 }
 0x323   : > { %v2129_v52 = vadd.f32 %v2128_v43, %v2127_v39  ;;  %v1570_v38 = vpop.f32.mrf.mxu1 }
 0x324   : > { %v1871_v42 = vadd.f32 %v3739_v40, %v1747_v34  ;;  %v3850_v21 = vadd.f32 %v1570_v38, %v1500_v12  ;;  %v3865_v40 = vpop.f32.mrf.mxu3  ;;  %v1502_v12 = vadd.f32 %v4274_v44, %v3518_v32 }
 0x326   : > { %v3853_v28 = vadd.f32 %v3670_v31, %v1871_v42  ;;  %2465 = vmatmul.msk.bf16.gmra.mxu2 %vm738_vm1, %v2763_v13  ;;  %2453 = vmatmul.msk.bf16.gmra.mxu1 %vm738_vm1, %v3503_v53 }
 0x327   : > { %2484 = vmatmul.msk.bf16.gmra.mxu3 %vm738_vm1, %v4272_v22 }
 0x328   : > { %v2029_v41 = vsel %vm738_vm1, %v3853_v28, 0.0  ;;  %v2096_v2 = vmul.f32 %v3853_v28, %v3853_v28 }
 0x329   : > { %v2030_v59 = vadd.f32 %v2029_v41, %v2028_v30  ;;  %v1674_v31 = vpop.f32.mrf.mxu2 }
 0x32a   : > { %v2130_v13 = vsel %vm738_vm1, %v2096_v2, 0.0  ;;  %v1748_v39 = vadd.f32 %v1674_v31, %v3717_v4 }
 0x32b   : > { %v2131_v53 = vadd.f32 %v2130_v13, %v2129_v52  ;;  %v1572_v48 = vpop.f32.mrf.mxu1 }
 0x32c   : > { %v1872_v17 = vadd.f32 %v3756_v1, %v1748_v39  ;;  %v3874_v56 = vadd.f32 %v1572_v48, %v1501_v49  ;;  %v3885_v52 = vpop.f32.mrf.mxu3 }
 0x32e   : > { %v3877_v50 = vadd.f32 %v3691_v45, %v1872_v17  ;;  %v3889_v45 = vpop.f32.mrf.mxu0 }
 0x330   : > { %v2031_v30 = vsel %vm738_vm1, %v3877_v50, 0.0  ;;  %v2097_v3 = vmul.f32 %v3877_v50, %v3877_v50 }
 0x331   : > { %v2032_v43 = vadd.f32 %v2031_v30, %v2030_v59  ;;  %v1676_v4 = vpop.f32.mrf.mxu2 }
 0x332   : > { %v2132_v34 = vsel %vm738_vm1, %v2097_v3, 0.0  ;;  %v1749_v8 = vadd.f32 %v1676_v4, %v3741_v26 }
 0x333   : > { %v2133_v1 = vadd.f32 %v2132_v34, %v2131_v53  ;;  %v1575_v38 = vpop.f32.mrf.mxu1 }
 0x334   : > { %v1873_v42 = vadd.f32 %v3775_v55, %v1749_v8  ;;  %v3892_v41 = vadd.f32 %v1575_v38, %v1502_v12  ;;  %v1815_v53 = vpop.f32.mrf.mxu3 }
 0x336   : > { %v3895_v2 = vadd.f32 %v3707_v18, %v1873_v42  ;;  %2466 = vmatmul.msk.bf16.gmra.mxu2 %vm738_vm1, %v2803_v11  ;;  %2454 = vmatmul.msk.bf16.gmra.mxu1 %vm738_vm1, %v3722_v10  ;;  %v4275_v11 = vld [vmem:[#allocation60_spill] sm:$0xff]  ;;  %v1939_v49 = vpop.f32.mrf.mxu0 }
 0x337   : > { %2485 = vmatmul.msk.bf16.gmra.mxu3 %vm738_vm1, %v4260_v61  ;;  %v1503_v13 = vadd.f32 %v4275_v11, %v3529_v57 }
 0x338   : > { %v2033_v26 = vsel %vm738_vm1, %v3895_v2, 0.0  ;;  %v2098_v32 = vmul.f32 %v3895_v2, %v3895_v2 }
 0x339   : > { %v2034_v55 = vadd.f32 %v2033_v26, %v2032_v43  ;;  %v1679_v22 = vpop.f32.mrf.mxu2 }
 0x33a   : > { %v2134_v18 = vsel %vm738_vm1, %v2098_v32, 0.0  ;;  %v1750_v59 = vadd.f32 %v1679_v22, %v3750_v37 }
 0x33b   : > { %v2135_v31 = vadd.f32 %v2134_v18, %v2133_v1  ;;  %v1577_v39 = vpop.f32.mrf.mxu1 }
 0x33c   : > { %v1874_v10 = vadd.f32 %v3791_v60, %v1750_v59  ;;  %v3912_v15 = vadd.f32 %v1577_v39, %v1503_v13 }
 0x33e   : > { %v3915_v17 = vadd.f32 %v3737_v16, %v1874_v10  ;;  %v1818_v16 = vpop.f32.mrf.mxu3  ;;  %v1942_v34 = vpop.f32.mrf.mxu0 }
 0x340   : > { %v2035_v61 = vsel %vm738_vm1, %v3915_v17, 0.0  ;;  %v2099_v37 = vmul.f32 %v3915_v17, %v3915_v17 }
 0x341   : > { %v2036_v48 = vadd.f32 %v2035_v61, %v2034_v55  ;;  %v1681_v30 = vpop.f32.mrf.mxu2 }
 0x342   : > { %v2136_v57 = vsel %vm738_vm1, %v2099_v37, 0.0  ;;  %v1751_v60 = vadd.f32 %v1681_v30, %v3771_v36 }
 0x343   : > { %v2137_v3 = vadd.f32 %v2136_v57, %v2135_v31 }
 0x344   : > { %v1875_v43 = vadd.f32 %v3805_v24, %v1751_v60 }
 0x346   : > { %v3925_v4 = vadd.f32 %v3754_v35, %v1875_v43  ;;  %2467 = vmatmul.msk.bf16.gmra.mxu2 %vm738_vm1, %v2845_v23  ;;  %v1820_v32 = vpop.f32.mrf.mxu3  ;;  %v1944_v18 = vpop.f32.mrf.mxu0 }
 0x348   : > { %v2037_v8 = vsel %vm738_vm1, %v3925_v4, 0.0  ;;  %v2100_v1 = vmul.f32 %v3925_v4, %v3925_v4 }
 0x349   : > { %v2038_v44 = vadd.f32 %v2037_v8, %v2036_v48  ;;  %v1684_v12 = vpop.f32.mrf.mxu2 }
 0x34a   : > { %v2138_v36 = vsel %vm738_vm1, %v2100_v1, 0.0  ;;  %v1752_v24 = vadd.f32 %v1684_v12, %v3782_v20 }
 0x34b   : > { %v2139_v42 = vadd.f32 %v2138_v36, %v2137_v3 }
 0x34c   : > { %v1876_v35 = vadd.f32 %v3837_v62, %v1752_v24 }
 0x34e   : > { %v3937_v38 = vadd.f32 %v3839_v63, %v1876_v35  ;;  %v1823_v37 = vpop.f32.mrf.mxu3  ;;  %v1947_v48 = vpop.f32.mrf.mxu0 }
 0x350   : > { %v2039_v23 = vsel %vm738_vm1, %v3937_v38, 0.0  ;;  %v2101_v26 = vmul.f32 %v3937_v38, %v3937_v38 }
 0x351   : > { %v2040_v55 = vadd.f32 %v2039_v23, %v2038_v44  ;;  %v1686_v22 = vpop.f32.mrf.mxu2 }
 0x352   : > { %v2140_v59 = vsel %vm738_vm1, %v2101_v26, 0.0  ;;  %v1753_v20 = vadd.f32 %v1686_v22, %v3796_v46 }
 0x353   : > { %v2141_v31 = vadd.f32 %v2140_v59, %v2139_v42 }
 0x354   : > { %v1877_v62 = vadd.f32 %v3865_v40, %v1753_v20 }
 0x356   : > { %v3947_v63 = vadd.f32 %v3867_v7, %v1877_v62  ;;  %2468 = vmatmul.msk.bf16.gmra.mxu2 %vm738_vm1, %v2889_v33  ;;  %v1825_v44 = vpop.f32.mrf.mxu3  ;;  %v1949_v12 = vpop.f32.mrf.mxu0 }
 0x358   : > { %v2041_v11 = vsel %vm738_vm1, %v3947_v63, 0.0  ;;  %v2102_v13 = vmul.f32 %v3947_v63, %v3947_v63 }
 0x359   : > { %v2042_v10 = vadd.f32 %v2041_v11, %v2040_v55  ;;  %v1689_v39 = vpop.f32.mrf.mxu2 }
 0x35a   : > { %v2142_v61 = vsel %vm738_vm1, %v2102_v13, 0.0  ;;  %v1754_v46 = vadd.f32 %v1689_v39, %v3807_v14 }
 0x35b   : > { %v2143_v40 = vadd.f32 %v2142_v61, %v2141_v31 }
 0x35c   : > { %v1878_v7 = vadd.f32 %v3885_v52, %v1754_v46 }
 0x35e   : > { %v3959_v30 = vadd.f32 %v3889_v45, %v1878_v7  ;;  %v1580_v45 = vpop.f32.mrf.mxu1  ;;  %v1828_v55 = vpop.f32.mrf.mxu3 }
 0x35f   : > { %v1952_v22 = vpop.f32.mrf.mxu0 }
 0x360   : > { %v2043_v33 = vsel %vm738_vm1, %v3959_v30, 0.0  ;;  %v2103_v57 = vmul.f32 %v3959_v30, %v3959_v30 }
 0x361   : > { %v2044_v60 = vadd.f32 %v2043_v33, %v2042_v10  ;;  %v1691_v3 = vpop.f32.mrf.mxu2 }
 0x362   : > { %v2144_v43 = vsel %vm738_vm1, %v2103_v57, 0.0  ;;  %v1755_v14 = vadd.f32 %v1691_v3, %v3832_v27 }
 0x363   : > { %v2145_v8 = vadd.f32 %v2144_v43, %v2143_v40 }
 0x364   : > { %v1879_v1 = vadd.f32 %v1815_v53, %v1755_v14 }
 0x366   : > { %v3967_v52 = vadd.f32 %v1939_v49, %v1879_v1  ;;  %2469 = vmatmul.msk.bf16.gmra.mxu2 %vm738_vm1, %v3198_v54  ;;  %v1582_v20 = vpop.f32.mrf.mxu1  ;;  %v1830_v46 = vpop.f32.mrf.mxu3 }
 0x367   : > { %v1954_v33 = vpop.f32.mrf.mxu0 }
 0x368   : > { %v2045_v36 = vsel %vm738_vm1, %v3967_v52, 0.0  ;;  %v2104_v24 = vmul.f32 %v3967_v52, %v3967_v52 }
 0x369   : > { %v2046_v42 = vadd.f32 %v2045_v36, %v2044_v60  ;;  %v1694_v35 = vpop.f32.mrf.mxu2 }
 0x36a   : > { %v2146_v27 = vsel %vm738_vm1, %v2104_v24, 0.0  ;;  %v1756_v53 = vadd.f32 %v1694_v35, %v3850_v21 }
 0x36b   : > { %v2147_v23 = vadd.f32 %v2146_v27, %v2145_v8 }
 0x36c   : > { %v1880_v26 = vadd.f32 %v1818_v16, %v1756_v53 }
 0x36e   : > { %v3977_v49 = vadd.f32 %v1942_v34, %v1880_v26  ;;  %v4276_v34 = vmov 0   ;;  %v1585_v60 = vpop.f32.mrf.mxu1 }
 0x370   : > { %v2047_v54 = vsel %vm738_vm1, %v3977_v49, 0.0  ;;  %v2105_v59 = vmul.f32 %v3977_v49, %v3977_v49 }
 0x371   : > { %v2048_v31 = vadd.f32 %v2047_v54, %v2046_v42  ;;  %v1696_v62 = vpop.f32.mrf.mxu2  ;;  %v1833_v42 = vpop.f32.mrf.mxu3 }
 0x372   : > { %v2148_v11 = vsel %vm738_vm1, %v2105_v59, 0.0  ;;  %v1757_v13 = vadd.f32 %v1696_v62, %v3874_v56 }
 0x373   : > { %v2149_v21 = vadd.f32 %v2148_v11, %v2147_v23 }
 0x374   : > { %v1881_v10 = vadd.f32 %v1820_v32, %v1757_v13 }
 0x376   : > { %v3985_v16 = vadd.f32 %v1944_v18, %v1881_v10  ;;  %1738 = vmatmul.bf16.gmra.mxu2 %v4276_v34  ;;  %v1587_v53 = vpop.f32.mrf.mxu1 }
 0x378   : > { %v2049_v39 = vsel %vm738_vm1, %v3985_v16, 0.0  ;;  %v2106_v61 = vmul.f32 %v3985_v16, %v3985_v16 }
 0x379   : > { %v2050_v40 = vadd.f32 %v2049_v39, %v2048_v31  ;;  %v1699_v7 = vpop.f32.mrf.mxu2 }
 0x37a   : > { %v2150_v57 = vsel %vm738_vm1, %v2106_v61, 0.0  ;;  %v1758_v56 = vadd.f32 %v1699_v7, %v3892_v41  ;;  %v1957_v41 = vpop.f32.mrf.mxu0 }
 0x37b   : > { %v2151_v32 = vadd.f32 %v2150_v57, %v2149_v21  ;;  %v1835_v21 = vpop.f32.mrf.mxu3 }
 0x37c   : > { %v1882_v18 = vadd.f32 %v1823_v37, %v1758_v56  ;;  %v4277_v37 = vld [vmem:[#allocation61_spill] sm:$0xff] }
 0x37e   : > { %v3994_v3 = vadd.f32 %v1947_v48, %v1882_v18  ;;  %v1504_v48 = vadd.f32 %v4277_v37, %v3548_v47  ;;  %v4278_v47 = vld [vmem:[#allocation62_spill] sm:$0xff] }
 0x380   : > { %v2051_v43 = vsel %vm738_vm1, %v3994_v3, 0.0  ;;  %v2107_v14 = vmul.f32 %v3994_v3, %v3994_v3  ;;  %v1636_v26 = vadd.f32 %v1580_v45, %v1504_v48  ;;  %v1590_v45 = vpop.f32.mrf.mxu1 }
 0x381   : > { %v2052_v8 = vadd.f32 %v2051_v43, %v2050_v40  ;;  %v1701_v1 = vpop.f32.mrf.mxu2 }
 0x382   : > { %v2152_v36 = vsel %vm738_vm1, %v2107_v14, 0.0  ;;  %v1759_v24 = vadd.f32 %v1701_v1, %v3912_v15  ;;  %v1959_v10 = vpop.f32.mrf.mxu0  ;;  %v4279_v14 = vld [vmem:[#allocation3_spill] sm:$0xff] }
 0x383   : > { %v2153_v35 = vadd.f32 %v2152_v36, %v2151_v32 }
 0x384   : > { %v1883_v27 = vadd.f32 %v1825_v44, %v1759_v24 }
 0x386   : > { %v4004_v23 = vadd.f32 %v1949_v12, %v1883_v27  ;;  %v1505_v12 = vadd.f32 %v4278_v47, %v3559_v19 }
 0x388   : > { %v2053_v54 = vsel %vm738_vm1, %v4004_v23, 0.0  ;;  %v2108_v59 = vmul.f32 %v4004_v23, %v4004_v23  ;;  %v1637_v39 = vadd.f32 %v1582_v20, %v1505_v12  ;;  %v1592_v27 = vpop.f32.mrf.mxu1 }
 0x389   : > { %v2054_v31 = vadd.f32 %v2053_v54, %v2052_v8  ;;  %v1704_v62 = vpop.f32.mrf.mxu2  ;;  %v4280_v8 = vld [vmem:[#allocation63_spill] sm:$0xff] }
 0x38a   : > { %v2154_v15 = vsel %vm738_vm1, %v2108_v59, 0.0  ;;  %v1760_v11 = vadd.f32 %v1704_v62, %v1636_v26  ;;  %v1506_v1 = vadd.f32 %v4280_v8, %v4279_v14  ;;  %v1962_v36 = vpop.f32.mrf.mxu0  ;;  %v4282_v62 = vld [vmem:[#allocation64_spill] sm:$0xff] }
 0x38b   : > { %v2155_v13 = vadd.f32 %v2154_v15, %v2153_v35 }
 0x38c   : > { %v1884_v44 = vadd.f32 %v1828_v55, %v1760_v11  ;;  %v1638_v20 = vadd.f32 %v1585_v60, %v1506_v1 }
 0x38e   : > { %v2008_v34 = vadd.f32 %v1952_v22, %v1884_v44  ;;  %v1838_v22 = vpop.f32.mrf.mxu3 }
 0x390   : > { %v2055_v61 = vsel %vm738_vm1, %v2008_v34, 0.0  ;;  %v2109_v40 = vmul.f32 %v2008_v34, %v2008_v34  ;;  %v2601_v7 = vpack.i.bf16 %v2008_v34, %v3799_v9 }
 0x391   : > { %v2056_v57 = vadd.f32 %v2055_v61, %v2054_v31  ;;  %v1706_v56 = vpop.f32.mrf.mxu2  ;;  %v4281_v31 = vld [vmem:[#allocation44_spill] sm:$0xff] }
 0x392   : > { %v2156_v32 = vsel %vm738_vm1, %v2109_v40, 0.0  ;;  %v1761_v18 = vadd.f32 %v1706_v56, %v1637_v39  ;;  %2602 = vxpose.xlu0.b32.start [1/16] (narrow) %v2601_v7, 8  ;;  %v1964_v34 = vpop.f32.mrf.mxu0  ;;  %v1595_v40 = vpop.f32.mrf.mxu1  ;;  %v4284_v56 = vld [vmem:[#allocation65_spill] sm:$0xff] }
 0x393   : > { %v2157_v55 = vadd.f32 %v2156_v32, %v2155_v13 }
 0x394   : > { %v1885_v43 = vadd.f32 %v1830_v46, %v1761_v18 }
 0x396   : > { %v2009_v19 = vadd.f32 %v1954_v33, %v1885_v43  ;;  %v1507_v33 = vadd.f32 %v4282_v62, %v4281_v31 }
 0x398   : > { %v2057_v24 = vsel %vm738_vm1, %v2009_v19, 0.0  ;;  %v2110_v35 = vmul.f32 %v2009_v19, %v2009_v19  ;;  %v2603_v9 = vpack.i.bf16 %v2009_v19, %v3812_v25  ;;  %v1639_v11 = vadd.f32 %v1587_v53, %v1507_v33  ;;  %v1840_v25 = vpop.f32.mrf.mxu3 }
 0x399   : > { %v2058_v37 = vadd.f32 %v2057_v24, %v2056_v57  ;;  %v1709_v48 = vpop.f32.mrf.mxu2  ;;  %v4283_v57 = vld [vmem:[#allocation46_spill] sm:$0xff] }
 0x39a   : > { %v2158_v26 = vsel %vm738_vm1, %v2110_v35, 0.0  ;;  %v1762_v54 = vadd.f32 %v1709_v48, %v1638_v20  ;;  %2604 = vxpose.xlu0.b32.cont [2/16] (narrow) %v2603_v9, 8  ;;  %v1967_v24 = vpop.f32.mrf.mxu0  ;;  %v1597_v35 = vpop.f32.mrf.mxu1  ;;  %v4285_v9 = vld [vmem:[#allocation4_spill] sm:$0xff] }
 0x39b   : > { %v2159_v46 = vadd.f32 %v2158_v26, %v2157_v55 }
 0x39c   : > { %v1886_v59 = vadd.f32 %v1833_v42, %v1762_v54 }
 0x39e   : > { %v2010_v15 = vadd.f32 %v1957_v41, %v1886_v59  ;;  %v1508_v41 = vadd.f32 %v4284_v56, %v4283_v57  ;;  %v4288_v56 = vld [vmem:[#allocation48_spill] sm:$0xff] }
 0x3a0   : > { %v2059_v60 = vsel %vm738_vm1, %v2010_v15, 0.0  ;;  %v2111_v13 = vmul.f32 %v2010_v15, %v2010_v15  ;;  %v2605_v44 = vpack.i.bf16 %v2010_v15, %v3835_v29  ;;  %v1640_v32 = vadd.f32 %v1590_v45, %v1508_v41  ;;  %v1843_v19 = vpop.f32.mrf.mxu3  ;;  %v4289_v41 = vld [vmem:[#allocation68_spill] sm:$0xff] }
 0x3a1   : > { %v2060_v47 = vadd.f32 %v2059_v60, %v2058_v37  ;;  %v1711_v12 = vpop.f32.mrf.mxu2  ;;  %v4286_v37 = vld [vmem:[#allocation66_spill] sm:$0xff]  ;;  %v4287_v60 = vld [vmem:[#allocation67_spill] sm:$0xff] }
 0x3a2   : > { %v2160_v39 = vsel %vm738_vm1, %v2111_v13, 0.0  ;;  %v1763_v61 = vadd.f32 %v1711_v12, %v1639_v11  ;;  %2606 = vxpose.xlu0.b32.cont [3/16] (narrow) %v2605_v44, 8  ;;  %v1969_v11 = vpop.f32.mrf.mxu0  ;;  %v1510_v13 = vadd.f32 %v4287_v60, %v3636_v58 }
 0x3a3   : > { %v2161_v42 = vadd.f32 %v2160_v39, %v2159_v46 }
 0x3a4   : > { %v1887_v7 = vadd.f32 %v1835_v21, %v1763_v61  ;;  %v1642_v44 = vadd.f32 %v1595_v40, %v1510_v13 }
 0x3a6   : > { %v2011_v53 = vadd.f32 %v1959_v10, %v1887_v7  ;;  %v1509_v10 = vadd.f32 %v4286_v37, %v4285_v9  ;;  %v4291_v9 = vld [vmem:[#allocation69_spill] sm:$0xff] }
 0x3a8   : > { %v2061_v18 = vsel %vm738_vm1, %v2011_v53, 0.0  ;;  %v2112_v55 = vmul.f32 %v2011_v53, %v2011_v53  ;;  %v2607_v29 = vpack.i.bf16 %v2011_v53, %v3853_v28  ;;  %v1641_v48 = vadd.f32 %v1592_v27, %v1509_v10  ;;  %v1600_v27 = vpop.f32.mrf.mxu1 }
 0x3a9   : > { %v2062_v43 = vadd.f32 %v2061_v18, %v2060_v47  ;;  %v1714_v14 = vpop.f32.mrf.mxu2  ;;  %v1511_v53 = vadd.f32 %v4289_v41, %v4288_v56 }
 0x3aa   : > { %v2162_v8 = vsel %vm738_vm1, %v2112_v55, 0.0  ;;  %v1764_v1 = vadd.f32 %v1714_v14, %v1640_v32  ;;  %2608 = vxpose.xlu0.b32.cont [4/16] (narrow) %v2607_v29, 8  ;;  %v1972_v32 = vpop.f32.mrf.mxu0 }
 0x3ab   : > { %v2163_v20 = vadd.f32 %v2162_v8, %v2161_v42  ;;  %v1643_v40 = vadd.f32 %v1597_v35, %v1511_v53 }
 0x3ac   : > { %v1888_v21 = vadd.f32 %v1838_v22, %v1764_v1  ;;  %v1845_v22 = vpop.f32.mrf.mxu3 }
 0x3ae   : > { %v2012_v45 = vadd.f32 %v1962_v36, %v1888_v21  ;;  %v4290_v21 = vld [vmem:[#allocation16_spill] sm:$0xff] }
 0x3b0   : > { %v2063_v26 = vsel %vm738_vm1, %v2012_v45, 0.0  ;;  %v2113_v54 = vmul.f32 %v2012_v45, %v2012_v45  ;;  %v2609_v28 = vpack.i.bf16 %v2012_v45, %v3877_v50  ;;  %v1602_v29 = vpop.f32.mrf.mxu1 }
 0x3b1   : > { %v2064_v46 = vadd.f32 %v2063_v26, %v2062_v43  ;;  %v1716_v59 = vpop.f32.mrf.mxu2 }
 0x3b2   : > { %v2164_v31 = vsel %vm738_vm1, %v2113_v54, 0.0  ;;  %v1765_v62 = vadd.f32 %v1716_v59, %v1641_v48  ;;  %2610 = vxpose.xlu0.b32.cont [5/16] (narrow) %v2609_v28, 8  ;;  %v1974_v28 = vpop.f32.mrf.mxu0 }
 0x3b3   : > { %v2165_v33 = vadd.f32 %v2164_v31, %v2163_v20 }
 0x3b4   : > { %v1889_v15 = vadd.f32 %v1840_v25, %v1765_v62 }
 0x3b6   : > { %v2013_v36 = vadd.f32 %v1964_v34, %v1889_v15  ;;  %v1848_v34 = vpop.f32.mrf.mxu3  ;;  %v4292_v15 = vld [vmem:[#allocation50_spill] sm:$0xff] }
 0x3b8   : > { %v2065_v47 = vsel %vm738_vm1, %v2013_v36, 0.0  ;;  %v2114_v12 = vmul.f32 %v2013_v36, %v2013_v36  ;;  %v2611_v50 = vpack.i.bf16 %v2013_v36, %v3895_v2  ;;  %v1605_v31 = vpop.f32.mrf.mxu1 }
 0x3b9   : > { %v2066_v39 = vadd.f32 %v2065_v47, %v2064_v46  ;;  %v1719_v61 = vpop.f32.mrf.mxu2 }
 0x3ba   : > { %v2166_v42 = vsel %vm738_vm1, %v2114_v12, 0.0  ;;  %v1766_v7 = vadd.f32 %v1719_v61, %v1642_v44  ;;  %2612 = vxpose.xlu0.b32.cont [6/16] (narrow) %v2611_v50, 8 }
 0x3bb   : > { %v2167_v25 = vadd.f32 %v2166_v42, %v2165_v33  ;;  %v1977_v42 = vpop.f32.mrf.mxu0 }
 0x3bc   : > { %v1890_v57 = vadd.f32 %v1843_v19, %v1766_v7 }
 0x3be   : > { %v2014_v58 = vadd.f32 %v1967_v24, %v1890_v57  ;;  %v1512_v24 = vadd.f32 %v4291_v9, %v4290_v21  ;;  %v4294_v57 = vld [vmem:[#allocation34_spill] sm:$0xff] }
 0x3bf   : > { %v1514_v56 = vadd.f32 %v4294_v57, %v3700_v0 }
 0x3c0   : > { %v2067_v18 = vsel %vm738_vm1, %v2014_v58, 0.0  ;;  %v2115_v55 = vmul.f32 %v2014_v58, %v2014_v58  ;;  %v2613_v2 = vpack.i.bf16 %v2014_v58, %v3915_v17  ;;  %v1644_v10 = vadd.f32 %v1600_v27, %v1512_v24  ;;  %v1850_v17 = vpop.f32.mrf.mxu3 }
 0x3c1   : > { %v2068_v43 = vadd.f32 %v2067_v18, %v2066_v39  ;;  %v1721_v14 = vpop.f32.mrf.mxu2  ;;  %v1646_v53 = vadd.f32 %v1605_v31, %v1514_v56 }
 0x3c2   : > { %v2168_v8 = vsel %vm738_vm1, %v2115_v55, 0.0  ;;  %v1767_v1 = vadd.f32 %v1721_v14, %v1643_v40  ;;  %2614 = vxpose.xlu0.b32.cont [7/16] (narrow) %v2613_v2, 8 }
 0x3c3   : > { %v2169_v19 = vadd.f32 %v2168_v8, %v2167_v25  ;;  %v1607_v25 = vpop.f32.mrf.mxu1  ;;  %v1979_v14 = vpop.f32.mrf.mxu0  ;;  %v4295_v8 = vld [vmem:[#allocation15_spill] sm:$0xff] }
 0x3c4   : > { %v1891_v20 = vadd.f32 %v1845_v22, %v1767_v1  ;;  %v4293_v22 = vld [vmem:[#allocation6_spill] sm:$0xff]  ;;  %v1515_v0 = vadd.f32 %v4295_v8, %v3714_v6 }
 0x3c6   : > { %v2015_v37 = vadd.f32 %v1969_v11, %v1891_v20  ;;  %v1513_v11 = vadd.f32 %v4293_v22, %v4292_v15  ;;  %v1647_v20 = vadd.f32 %v1607_v25, %v1515_v0 }
 0x3c8   : > { %v2069_v35 = vsel %vm738_vm1, %v2015_v37, 0.0  ;;  %v2116_v45 = vmul.f32 %v2015_v37, %v2015_v37  ;;  %v2615_v48 = vpack.i.bf16 %v2015_v37, %v3925_v4  ;;  %v1645_v13 = vadd.f32 %v1602_v29, %v1513_v11  ;;  %v1853_v39 = vpop.f32.mrf.mxu3 }
 0x3c9   : > { %v2070_v26 = vadd.f32 %v2069_v35, %v2068_v43  ;;  %v1724_v54 = vpop.f32.mrf.mxu2 }
 0x3ca   : > { %v2170_v46 = vsel %vm738_vm1, %v2116_v45, 0.0  ;;  %v1768_v59 = vadd.f32 %v1724_v54, %v1644_v10  ;;  %2616 = vxpose.xlu0.b32.cont [8/16] (narrow) %v2615_v48, 8 }
 0x3cb   : > { %v2171_v62 = vadd.f32 %v2170_v46, %v2169_v19  ;;  %v1610_v19 = vpop.f32.mrf.mxu1  ;;  %v1982_v46 = vpop.f32.mrf.mxu0 }
 0x3cc   : > { %v1892_v33 = vadd.f32 %v1848_v34, %v1768_v59 }
 0x3ce   : > { %v2016_v60 = vadd.f32 %v1972_v32, %v1892_v33 }
 0x3d0   : > { %v2071_v36 = vsel %vm738_vm1, %v2016_v60, 0.0  ;;  %v2117_v27 = vmul.f32 %v2016_v60, %v2016_v60  ;;  %v2617_v4 = vpack.i.bf16 %v2016_v60, %v3937_v38  ;;  %v1855_v43 = vpop.f32.mrf.mxu3 }
 0x3d1   : > { %v2072_v44 = vadd.f32 %v2071_v36, %v2070_v26  ;;  %v1726_v47 = vpop.f32.mrf.mxu2  ;;  %v4297_v26 = vld [vmem:[#allocation37_spill] sm:$0xff] }
 0x3d2   : > { %v2172_v12 = vsel %vm738_vm1, %v2117_v27, 0.0  ;;  %v1769_v50 = vadd.f32 %v1726_v47, %v1645_v13  ;;  %2618 = vxpose.xlu0.b32.cont [9/16] (narrow) %v2617_v4, 8  ;;  %v4298_v27 = vld [vmem:[#allocation52_spill] sm:$0xff]  ;;  %v4299_v4 = vld [vmem:[#allocation9_spill] sm:$0xff] }
 0x3d3   : > { %v2173_v61 = vadd.f32 %v2172_v12, %v2171_v62  ;;  %v1612_v33 = vpop.f32.mrf.mxu1  ;;  %v1984_v56 = vpop.f32.mrf.mxu0 }
 0x3d4   : > { %v1893_v7 = vadd.f32 %v1850_v17, %v1769_v50  ;;  %v4296_v17 = vld [vmem:[#allocation5_spill] sm:$0xff] }
 0x3d5   : > { %v1516_v54 = vadd.f32 %v4297_v26, %v4296_v17 }
 0x3d6   : > { %v2017_v41 = vadd.f32 %v1974_v28, %v1893_v7 }
 0x3d7   : > { %v1648_v59 = vadd.f32 %v1610_v19, %v1516_v54 }
 0x3d8   : > { %v2073_v58 = vsel %vm738_vm1, %v2017_v41, 0.0  ;;  %v2118_v34 = vmul.f32 %v2017_v41, %v2017_v41  ;;  %v2619_v38 = vpack.i.bf16 %v2017_v41, %v3947_v63  ;;  %v1858_v28 = vpop.f32.mrf.mxu3 }
 0x3d9   : > { %v2074_v32 = vadd.f32 %v2073_v58, %v2072_v44  ;;  %v1729_v40 = vpop.f32.mrf.mxu2  ;;  %v1517_v44 = vadd.f32 %v4299_v4, %v4298_v27 }
 0x3da   : > { %v2174_v18 = vsel %vm738_vm1, %v2118_v34, 0.0  ;;  %v1770_v55 = vadd.f32 %v1729_v40, %v1646_v53  ;;  %2620 = vxpose.xlu0.b32.cont [10/16] (narrow) %v2619_v38, 8  ;;  %v4300_v34 = vld [vmem:[#allocation40_spill] sm:$0xff] }
 0x3db   : > { %v2175_v2 = vadd.f32 %v2174_v18, %v2173_v61  ;;  %v1649_v12 = vadd.f32 %v1612_v33, %v1517_v44  ;;  %v1615_v41 = vpop.f32.mrf.mxu1  ;;  %v1518_v38 = vadd.f32 %v4300_v34, %v3769_v51  ;;  %v4301_v51 = vld [vmem:[#allocation12_spill] sm:$0xff] }
 0x3dc   : > { %v1894_v29 = vadd.f32 %v1853_v39, %v1770_v55 }
 0x3dd   : > { %v1650_v40 = vadd.f32 %v1615_v41, %v1518_v38 }
 0x3de   : > { %v2018_v1 = vadd.f32 %v1977_v42, %v1894_v29 }
 0x3e0   : > { %v2075_v21 = vsel %vm738_vm1, %v2018_v1, 0.0  ;;  %v2119_v9 = vmul.f32 %v2018_v1, %v2018_v1  ;;  %v2621_v63 = vpack.i.bf16 %v2018_v1, %v3959_v30  ;;  %v1987_v1 = vpop.f32.mrf.mxu0 }
 0x3e1   : > { %v2076_v24 = vadd.f32 %v2075_v21, %v2074_v32  ;;  %v1731_v37 = vpop.f32.mrf.mxu2  ;;  %v1519_v21 = vadd.f32 %v4301_v51, %v3780_v5 }
 0x3e2   : > { %v2176_v10 = vsel %vm738_vm1, %v2119_v9, 0.0  ;;  %v1771_v35 = vadd.f32 %v1731_v37, %v1647_v20  ;;  %2622 = vxpose.xlu0.b32.cont [11/16] (narrow) %v2621_v63, 8 }
 0x3e3   : > { %v2177_v45 = vadd.f32 %v2176_v10, %v2175_v2  ;;  %v1617_v20 = vpop.f32.mrf.mxu1 }
 0x3e4   : > { %v1895_v48 = vadd.f32 %v1855_v43, %v1771_v35  ;;  %v1651_v63 = vadd.f32 %v1617_v20, %v1519_v21 }
 0x3e6   : > { %v2019_v6 = vadd.f32 %v1979_v14, %v1895_v48 }
 0x3e8   : > { %v2077_v31 = vsel %vm738_vm1, %v2019_v6, 0.0  ;;  %v2120_v62 = vmul.f32 %v2019_v6, %v2019_v6  ;;  %v2623_v30 = vpack.i.bf16 %v2019_v6, %v3967_v52  ;;  %v1860_v52 = vpop.f32.mrf.mxu3  ;;  %v1989_v6 = vpop.f32.mrf.mxu0 }
 0x3e9   : > { %v2078_v15 = vadd.f32 %v2077_v31, %v2076_v24  ;;  %v1734_v22 = vpop.f32.mrf.mxu2 }
 0x3ea   : > { %v2178_v11 = vsel %vm738_vm1, %v2120_v62, 0.0  ;;  %v1772_v60 = vadd.f32 %v1734_v22, %v1648_v59  ;;  %2624 = vxpose.xlu0.b32.cont [12/16] (narrow) %v2623_v30, 8 }
 0x3eb   : > { %v2179_v13 = vadd.f32 %v2178_v11, %v2177_v45 }
 0x3ec   : > { %v1896_v36 = vadd.f32 %v1858_v28, %v1772_v60 }
 0x3ee   : > { %v2020_v47 = vadd.f32 %v1982_v46, %v1896_v36 }
 0x3f0   : > { %v2079_v50 = vsel %vm738_vm1, %v2020_v47, 0.0  ;;  %v2121_v39 = vmul.f32 %v2020_v47, %v2020_v47  ;;  %v2625_v61 = vpack.i.bf16 %v2020_v47, %v3977_v49  ;;  %v1863_v29 = vpop.f32.mrf.mxu3 }
 0x3f1   : > { %v2080_v42 = vadd.f32 %v2079_v50, %v2078_v15  ;;  %v1736_v7 = vpop.f32.mrf.mxu2 }
 0x3f2   : > { %v2180_v25 = vsel %vm738_vm1, %v2121_v39, 0.0  ;;  %v1773_v57 = vadd.f32 %v1736_v7, %v1649_v12  ;;  %2626 = vxpose.xlu0.b32.cont [13/16] (narrow) %v2625_v61, 8 }
 0x3f3   : > { %v2181_v53 = vadd.f32 %v2180_v25, %v2179_v13 }
 0x3f4   : > { %v1897_v58 = vadd.f32 %v1860_v52, %v1773_v57 }
 0x3f6   : > { %v2021_v32 = vadd.f32 %v1984_v56, %v1897_v58 }
 0x3f8   : > { %v2081_v18 = vsel %vm738_vm1, %v2021_v32, 0.0  ;;  %v2122_v55 = vmul.f32 %v2021_v32, %v2021_v32  ;;  %v2627_v49 = vpack.i.bf16 %v2021_v32, %v3985_v16  ;;  %v1865_v26 = vpop.f32.mrf.mxu3 }
 0x3f9   : > { %v2082_v2 = vadd.f32 %v2081_v18, %v2080_v42  ;;  %v1739_v43 = vpop.f32.mrf.mxu2 }
 0x3fa   : > { %v2182_v14 = vsel %vm738_vm1, %v2122_v55, 0.0  ;;  %v1774_v8 = vadd.f32 %v1739_v43, %v1650_v40  ;;  %2628 = vxpose.xlu0.b32.cont [14/16] (narrow) %v2627_v49, 8 }
 0x3fb   : > { %v2183_v0 = vadd.f32 %v2182_v14, %v2181_v53 }
 0x3fc   : > { %v1898_v19 = vadd.f32 %v1863_v29, %v1774_v8 }
 0x3fe   : > { %v2022_v9 = vadd.f32 %v1987_v1, %v1898_v19 }
 0x400   : > { %v2083_v24 = vsel %vm738_vm1, %v2022_v9, 0.0  ;;  %v2123_v37 = vmul.f32 %v2022_v9, %v2022_v9  ;;  %v2629_v16 = vpack.i.bf16 %v2022_v9, %v3994_v3 }
 0x401   : > { %v2084_v10 = vadd.f32 %v2083_v24, %v2082_v2  ;;  %v1741_v35 = vpop.f32.mrf.mxu2 }
 0x402   : > { %v2184_v45 = vsel %vm738_vm1, %v2123_v37, 0.0  ;;  %v1775_v48 = vadd.f32 %v1741_v35, %v1651_v63  ;;  %2630 = vxpose.xlu0.b32.cont [15/16] (narrow) %v2629_v16, 8 }
 0x403   : > { %v2185_v17 = vadd.f32 %v2184_v45, %v2183_v0 }
 0x404   : > { %v1899_v54 = vadd.f32 %v1865_v26, %v1775_v48 }
 0x406   : > { %v2023_v28 = vadd.f32 %v1989_v6, %v1899_v54 }
 0x408   : > { %v2085_v5 = vsel %vm738_vm1, %v2023_v28, 0.0  ;;  %v2124_v46 = vmul.f32 %v2023_v28, %v2023_v28  ;;  %v2631_v59 = vpack.i.bf16 %v2023_v28, %v4004_v23 }
 0x409   : > { %v2086_v31 = vadd.f32 %v2085_v5, %v2084_v10 }
 0x40a   : > { %v2186_v3 = vsel %vm738_vm1, %v2124_v46, 0.0  ;;  %2632 = vxpose.xlu0.b32.end [16/16] (narrow) %v2631_v59, 8 }
 0x40b   : > { %v2087_v62 = vrot.slane %v2086_v31, 4  ;;  %v2187_v30 = vadd.f32 %v2186_v3, %v2185_v17 }
 0x40d   : > { %v2088_v33 = vadd.f32 %v2087_v62, %v2086_v31  ;;  %v2188_v15 = vrot.slane %v2187_v30, 4 }
 0x40f   : > { %v2089_v22 = vrot.slane %v2088_v33, 2  ;;  %v2189_v11 = vadd.f32 %v2188_v15, %v2187_v30 }
 0x411   : > { %v2090_v60 = vadd.f32 %v2089_v22, %v2088_v33  ;;  %v2190_v13 = vrot.slane %v2189_v11, 2 }
 0x413   : > { %v2091_v36 = vrot.slane %v2090_v60, 1  ;;  %v2191_v27 = vadd.f32 %v2190_v13, %v2189_v11 }
 0x415   : > { %v2192_v4 = vrot.slane %v2191_v27, 1  ;;  %v2092_v23 = vadd.f32 %v2091_v36, %v2090_v60 }
 0x417   : > { %v2193_v44 = vadd.f32 %v2192_v4, %v2191_v27 }
 0x419   : > { %v2195_v47 = vsel %vm514_vm2, %v2092_v23, %v2193_v44 }
 0x41a   : > { %2197 = vst.msk [vmem:[%s181_s14] sm:$0x3] %vm2196_vm7, %v2195_v47 }
 0x436   : > { %v2633_v12 = vpop.trf.xlu0 }
 0x437   : > { %v2637_v50 = vunpack.i.h.bf16 %v2633_v12  ;;  %v2634_v39 = vunpack.i.l.bf16 %v2633_v12 }
 0x439   : > { %v2262_v61 = vpack.c.bf16 %v2637_v50, %v2634_v39 }
 0x43b   : > { %2263 = vst [vmem:[%s177_s18] sm:$0xff] %v2262_v61 }
 0x43c PF: > { %s14_s12 = sadd.s32 1, %s2644_s12  }
 0x43d   : > { %p11_p4 = scmp.ge.s32.totalorder %s14_s12, 4  }
 0x43f   :  { %13 = sbr.rel (!%p11_p4) target bundleno = 1 (0x1), region = 70 }

// kernel: basic_block.4
= control target key start
LH: loop header
LB: loop body
LE: loop exit
PB: predicated region body
PF: predicated region fallthrough
CT: control target
= control target key end

     0   :  { %s2751_s18 = smov 0   ;;  %s4195_s0 = inlined_call_operand.vmem [shape: bf16[2,8,256], index: 0, kind: input, shape index: {}]   ;;  %s4196_s1 = inlined_call_operand.vmem [shape: bf16[72,8], index: 1, kind: input, shape index: {}]   ;;  %s4197_s2 = inlined_call_operand.vmem [shape: f32[8,1], index: 2, kind: input, shape index: {}]   ;;  %s4198_s3 = inlined_call_operand.vmem [shape: f32[8,1], index: 3, kind: input, shape index: {}]   ;;  %s4199_s4 = inlined_call_operand.vmem [shape: bf16[2,8,256], index: 4, kind: output, shape index: {0}]   ;;  %s4200_s5 = inlined_call_operand.vmem [shape: f32[2,2,8], index: 5, kind: output, shape index: {1}]  }
   0x1 LB: > { %s2423_s19 = sadd.s32 4294967295, %s2718_s18   ;;  %p2427_p0 = scmp.ge.s32.totalorder %s2718_s18, 1  ;;  %s2718_s18 = sphi %s2751_s18, %s16_s18  }
   0x2   : > { %p190_p1 = scmp.lt.s32.totalorder %s2718_s18, 3 }
   0x4   : > { %p191_p2 = pnand %p2427_p0, %p190_p1 }
   0x6   : > { %194 = sbr.rel (%p191_p2) target bundleno = 1207 (0x4b7), region = 36 }
   0xb   : > { %v240_v0 = vld [vmem:[%s4197_s2] sm:$0xff]  ;;  %v4201_v1 = vmov 0   ;;  %p222_p3 = scmp.lt.s32.totalorder %s2423_s19, 1  ;;  %vm860_vm0 = vcmask 1043456   ;;  %vm811_vm1 = vcmask 64512   ;;  %vm587_vm2 = vcmask 1040384  }
   0xc   : > { %2592 = vset.pattern.permute.xlu0 %v4201_v1  ;;  %v248_v2 = vld [vmem:[%s4198_s3] sm:$0xff]  ;;  %v2779_v17 = vrot.slane %v4201_v1, 1  ;;  %vm588_vm3 = vsmask.f32 256  ;;  %vm622_vm5 = vsmask.f32 7424 }
   0xd   : > { %243 = vperm.xlu0 %2592, %v240_v0   ;;  %s4399_s19 = smov (!%p222_p3, %s2423_s19), 1  ;;  %v355_v15 = vld [vmem:[%s4196_s1 + $0x4] sm:$0xf]  ;;  %vm2786_vm4 = vmand %vm587_vm2, %vm588_vm3  ;;  %vm1108_vm6 = vcmask 1046528   ;;  %vm2269_vm7 = vcmask 58368  }
   0xe   : > { %s2577_s24 = sshll.u32 %s4399_s19, 3  ;;  %v862_v16 = vsel %vm860_vm0, %v355_v15, 0  ;;  %4227 = vst [vmem:[#allocation2_spill] sm:$0xff] %v2779_v17  ;;  %s2432_s23 = sshll.u32 %s4399_s19, 1 }
   0xf   : > { %s226_s27 = scalar_lea.vmem %s4195_s0, %s2577_s24  ;;  %871 = vmatpush.bf16.msra.mxu0 %v862_v16  ;;  %2579 = vmatpush.bf16.msra.mxu1 %v862_v16  ;;  %s231_s30 = scalar_lea.vmem %s4199_s4, %s2577_s24 }
  0x10   : > { %v237_v4 = vld [vmem:[%s226_s27] sm:$0xff]  ;;  %2581 = vmatpush.bf16.msra.mxu3 %v862_v16  ;;  %2580 = vmatpush.bf16.msra.mxu2 %v862_v16  ;;  %s235_s27 = scalar_lea.vmem %s4200_s5, %s2432_s23 }
  0x11   : > { %v238_v5 = vunpack.c.l.bf16 %v237_v4  ;;  %v239_v6 = vunpack.c.h.bf16 %v237_v4 }
  0x12   : > { %2433 = vmatmul.msk.bf16.vlgmr.msra.gmra.mxu0 %vm811_vm1, %v2779_v17 }
  0x15   : > { %251 = vperm.xlu0 %2592, %v248_v2  }
  0x7f   : > { %v244_v3 = vpop.permute.xlu0 %243 }
  0x80   : > { %v246_v7 = vmul.f32 %v244_v3, %v238_v5  ;;  %v247_v8 = vmul.f32 %v244_v3, %v239_v6 }
  0x87   : > { %v252_v9 = vpop.permute.xlu0 %251 }
  0x88   : > { %v254_v10 = vadd.f32 %v252_v9, %v246_v7  ;;  %v255_v11 = vadd.f32 %v252_v9, %v247_v8 }
  0x8a   : > { %v256_v12 = vmax.f32 %v254_v10, 0.0  ;;  %v257_v13 = vmax.f32 %v255_v11, 0.0 }
  0x8c   : > { %v2593_v14 = vpack.i.bf16 %v257_v13, %v256_v12 }
  0x8e   : > { %2594 = vxpose.xlu1.b32.start.end [1/1] (short) %v2593_v14, 128 }
 0x132   : > { %v2595_v18 = vpop.trf.xlu1 }
 0x133   : > { %v2599_v19 = vunpack.i.h.bf16 %v2595_v18  ;;  %v2596_v20 = vunpack.i.l.bf16 %v2595_v18 }
 0x135   : > { %v338_v21 = vpack.c.bf16 %v2599_v19, %v2599_v19  ;;  %v322_v22 = vpack.c.bf16 %v2596_v20, %v2596_v20 }
 0x137   : > { %v411_v28 = vunpack.c.l.b16 %v338_v21  ;;  %v395_v29 = vunpack.c.l.b16 %v322_v22 }
 0x13a   : > { %v2600_v23 = vpop.trf.xlu1 }
 0x13b   : > { %v2604_v24 = vunpack.i.h.bf16 %v2600_v23  ;;  %v2601_v25 = vunpack.i.l.bf16 %v2600_v23  ;;  %v358_v23 = vld [vmem:[%s4196_s1 + $0x10] sm:$0xf] }
 0x13d   : > { %v339_v26 = vpack.c.bf16 %v2604_v24, %v2604_v24  ;;  %v323_v27 = vpack.c.bf16 %v2601_v25, %v2601_v25 }
 0x13f   : > { %v412_v30 = vunpack.c.l.b16 %v339_v26  ;;  %v396_v31 = vunpack.c.l.b16 %v323_v27  ;;  %v1470_v27 = vsel %vm860_vm0, %v358_v23, 0 }
 0x140   : > { %1479 = vmatpush.bf16.msrb.mxu0 %v1470_v27 }
 0x141   : > { %v427_v32 = vpack.c.b16 %v396_v31, %v395_v29  ;;  %v2783_v33 = vpack.c.b16 %v412_v30, %v411_v28 }
 0x142   : > { %v2605_v34 = vpop.trf.xlu1 }
 0x143   : > { %v444_v35 = vshrl.u32 %v427_v32, 16  ;;  %v447_v36 = vshll.u32 %v427_v32, 16  ;;  %v2609_v37 = vunpack.i.h.bf16 %v2605_v34  ;;  %v2606_v38 = vunpack.i.l.bf16 %v2605_v34 }
 0x145   : > { %v446_v39 = vrot.slane %v444_v35, 7  ;;  %v340_v43 = vpack.c.bf16 %v2609_v37, %v2609_v37  ;;  %v324_v44 = vpack.c.bf16 %v2606_v38, %v2606_v38 }
 0x147   : > { %v449_v41 = vor.u32 %v447_v36, %v446_v39  ;;  %v2792_v42 = vsel %vm2786_vm4, %v446_v39, 0  ;;  %v413_v55 = vunpack.c.l.b16 %v340_v43  ;;  %v397_v56 = vunpack.c.l.b16 %v324_v44 }
 0x148   : > { %v639_v50 = vshll.u32 %v2792_v42, 16 }
 0x149   : > { %v2796_v46 = vsel %vm2786_vm4, 0, %v449_v41 }
 0x14a   : > { %v2610_v45 = vpop.trf.xlu1  ;;  %v634_v49 = vshll.u32 %v2796_v46, 16  ;;  %v632_v53 = vshrl.u32 %v2796_v46, 16  ;;  %v641_v60 = vrot.slane %v639_v50, 1 }
 0x14b   : > { %v2614_v47 = vunpack.i.h.bf16 %v2610_v45  ;;  %v2611_v48 = vunpack.i.l.bf16 %v2610_v45 }
 0x14c   : > { %v636_v54 = vrot.slane %v634_v49, 1 }
 0x14d   : > { %v341_v51 = vpack.c.bf16 %v2614_v47, %v2614_v47  ;;  %v325_v52 = vpack.c.bf16 %v2611_v48, %v2611_v48 }
 0x14e   : > { %v637_v59 = vor.u32 %v636_v54, %v632_v53 }
 0x14f   : > { %v414_v57 = vunpack.c.l.b16 %v341_v51  ;;  %v398_v58 = vunpack.c.l.b16 %v325_v52 }
 0x150   : > { %v2804_v63 = vsel %vm622_vm5, %v637_v59, %v641_v60 }
 0x151   : > { %v428_v61 = vpack.c.b16 %v398_v58, %v397_v56  ;;  %v2801_v62 = vpack.c.b16 %v414_v57, %v413_v55  ;;  %2434 = vmatmul.msk.bf16.gmra.mxu0 %vm811_vm1, %v2804_v63 }
 0x152   : > { %v2615_v0 = vpop.trf.xlu1 }
 0x153   : > { %v451_v2 = vshrl.u32 %v428_v61, 16  ;;  %v454_v3 = vshll.u32 %v428_v61, 16  ;;  %v2619_v4 = vunpack.i.h.bf16 %v2615_v0  ;;  %v2616_v5 = vunpack.i.l.bf16 %v2615_v0 }
 0x155   : > { %v453_v6 = vrot.slane %v451_v2, 7  ;;  %v342_v9 = vpack.c.bf16 %v2619_v4, %v2619_v4  ;;  %v326_v10 = vpack.c.bf16 %v2616_v5, %v2616_v5 }
 0x157   : > { %v456_v7 = vor.u32 %v454_v3, %v453_v6  ;;  %v2810_v8 = vsel %vm2786_vm4, %v453_v6, 0  ;;  %v415_v20 = vunpack.c.l.b16 %v342_v9  ;;  %v399_v24 = vunpack.c.l.b16 %v326_v10 }
 0x158   : > { %v651_v16 = vshll.u32 %v2810_v8, 16 }
 0x159   : > { %v2814_v12 = vsel %vm2786_vm4, 0, %v456_v7 }
 0x15a   : > { %v2620_v11 = vpop.trf.xlu1  ;;  %4230 = vst [vmem:[#allocation3_spill] sm:$0xff] %v2814_v12  ;;  %v646_v15 = vshll.u32 %v2814_v12, 16  ;;  %v644_v21 = vshrl.u32 %v2814_v12, 16  ;;  %v653_v29 = vrot.slane %v651_v16, 1 }
 0x15b   : > { %v2624_v13 = vunpack.i.h.bf16 %v2620_v11  ;;  %v2621_v14 = vunpack.i.l.bf16 %v2620_v11 }
 0x15c   : > { %v648_v22 = vrot.slane %v646_v15, 1 }
 0x15d   : > { %v343_v18 = vpack.c.bf16 %v2624_v13, %v2624_v13  ;;  %v327_v19 = vpack.c.bf16 %v2621_v14, %v2621_v14 }
 0x15e   : > { %v649_v28 = vor.u32 %v648_v22, %v644_v21 }
 0x15f   : > { %v416_v25 = vunpack.c.l.b16 %v343_v18  ;;  %v400_v26 = vunpack.c.l.b16 %v327_v19 }
 0x160   : > { %v2826_v32 = vsel %vm622_vm5, %v649_v28, %v653_v29 }
 0x161   : > { %v429_v30 = vpack.c.b16 %v400_v26, %v399_v24  ;;  %v2823_v31 = vpack.c.b16 %v416_v25, %v415_v20  ;;  %2435 = vmatmul.msk.bf16.gmra.mxu0 %vm811_vm1, %v2826_v32 }
 0x162   : > { %v2625_v34 = vpop.trf.xlu1 }
 0x163   : > { %v458_v35 = vshrl.u32 %v429_v30, 16  ;;  %v461_v36 = vshll.u32 %v429_v30, 16  ;;  %v2629_v37 = vunpack.i.h.bf16 %v2625_v34  ;;  %v2626_v38 = vunpack.i.l.bf16 %v2625_v34 }
 0x165   : > { %v460_v39 = vrot.slane %v458_v35, 7  ;;  %v344_v44 = vpack.c.bf16 %v2629_v37, %v2629_v37  ;;  %v328_v45 = vpack.c.bf16 %v2626_v38, %v2626_v38 }
 0x167   : > { %v463_v41 = vor.u32 %v461_v36, %v460_v39  ;;  %v2832_v43 = vsel %vm2786_vm4, %v460_v39, 0  ;;  %v417_v57 = vunpack.c.l.b16 %v344_v44  ;;  %v401_v58 = vunpack.c.l.b16 %v328_v45 }
 0x168   : > { %v663_v52 = vshll.u32 %v2832_v43, 16 }
 0x169   : > { %v2836_v48 = vsel %vm2786_vm4, 0, %v463_v41 }
 0x16a   : > { %v2630_v47 = vpop.trf.xlu1  ;;  %4231 = vst [vmem:[#allocation4_spill] sm:$0xff] %v2836_v48  ;;  %v658_v51 = vshll.u32 %v2836_v48, 16  ;;  %v656_v55 = vshrl.u32 %v2836_v48, 16  ;;  %v665_v0 = vrot.slane %v663_v52, 1 }
 0x16b   : > { %v2634_v49 = vunpack.i.h.bf16 %v2630_v47  ;;  %v2631_v50 = vunpack.i.l.bf16 %v2630_v47 }
 0x16c   : > { %v660_v56 = vrot.slane %v658_v51, 1 }
 0x16d   : > { %v345_v53 = vpack.c.bf16 %v2634_v49, %v2634_v49  ;;  %v329_v54 = vpack.c.bf16 %v2631_v50, %v2631_v50 }
 0x16e   : > { %v661_v61 = vor.u32 %v660_v56, %v656_v55 }
 0x16f   : > { %v418_v59 = vunpack.c.l.b16 %v345_v53  ;;  %v402_v60 = vunpack.c.l.b16 %v329_v54 }
 0x170   : > { %v2842_v4 = vsel %vm622_vm5, %v661_v61, %v665_v0 }
 0x171   : > { %v430_v2 = vpack.c.b16 %v402_v60, %v401_v58  ;;  %v438_v3 = vpack.c.b16 %v418_v59, %v417_v57  ;;  %2436 = vmatmul.msk.bf16.gmra.mxu0 %vm811_vm1, %v2842_v4 }
 0x172   : > { %v2635_v5 = vpop.trf.xlu1 }
 0x173   : > { %v465_v6 = vshrl.u32 %v430_v2, 16  ;;  %v521_v7 = vshrl.u32 %v438_v3, 16  ;;  %v468_v9 = vshll.u32 %v430_v2, 16  ;;  %v2639_v10 = vunpack.i.h.bf16 %v2635_v5 }
 0x174   : > { %v524_v11 = vshll.u32 %v438_v3, 16  ;;  %v2636_v13 = vunpack.i.l.bf16 %v2635_v5 }
 0x175   : > { %v467_v14 = vrot.slane %v465_v6, 7  ;;  %v523_v15 = vrot.slane %v521_v7, 7  ;;  %v346_v19 = vpack.c.bf16 %v2639_v10, %v2639_v10 }
 0x176   : > { %v330_v21 = vpack.c.bf16 %v2636_v13, %v2636_v13 }
 0x177   : > { %v470_v16 = vor.u32 %v468_v9, %v467_v14  ;;  %v526_v18 = vor.u32 %v524_v11, %v523_v15  ;;  %v2848_v20 = vsel %vm2786_vm4, %v467_v14, 0  ;;  %v2860_v25 = vsel %vm2786_vm4, %v523_v15, 0 }
 0x178   : > { %v675_v29 = vshll.u32 %v2848_v20, 16  ;;  %v771_v36 = vshll.u32 %v2860_v25, 16  ;;  %v419_v37 = vunpack.c.l.b16 %v346_v19  ;;  %v403_v38 = vunpack.c.l.b16 %v330_v21 }
 0x179   : > { %v2852_v23 = vsel %vm2786_vm4, 0, %v470_v16  ;;  %v2856_v24 = vsel %vm2786_vm4, 0, %v526_v18 }
 0x17a   : > { %v2640_v22 = vpop.trf.xlu1  ;;  %4232 = vst [vmem:[#allocation5_spill] sm:$0xff] %v2852_v23  ;;  %v670_v28 = vshll.u32 %v2852_v23, 16  ;;  %v766_v35 = vshll.u32 %v2856_v24, 16  ;;  %v668_v39 = vshrl.u32 %v2852_v23, 16  ;;  %v764_v47 = vshrl.u32 %v2856_v24, 16 }
 0x17b   : > { %v2644_v26 = vunpack.i.h.bf16 %v2640_v22  ;;  %v2641_v27 = vunpack.i.l.bf16 %v2640_v22  ;;  %v677_v51 = vrot.slane %v675_v29, 1  ;;  %v773_v55 = vrot.slane %v771_v36, 1 }
 0x17c   : > { %v672_v41 = vrot.slane %v670_v28, 1  ;;  %v768_v49 = vrot.slane %v766_v35, 1 }
 0x17d   : > { %v347_v30 = vpack.c.bf16 %v2644_v26, %v2644_v26  ;;  %v331_v34 = vpack.c.bf16 %v2641_v27, %v2641_v27 }
 0x17e   : > { %v673_v50 = vor.u32 %v672_v41, %v668_v39  ;;  %v769_v54 = vor.u32 %v768_v49, %v764_v47 }
 0x17f   : > { %v420_v44 = vunpack.c.l.b16 %v347_v30  ;;  %v404_v45 = vunpack.c.l.b16 %v331_v34 }
 0x180   : > { %v2869_v56 = vsel %vm622_vm5, %v673_v50, %v677_v51  ;;  %v2874_v58 = vsel %vm622_vm5, %v769_v54, %v773_v55 }
 0x181   : > { %v431_v52 = vpack.c.b16 %v404_v45, %v403_v38  ;;  %v439_v53 = vpack.c.b16 %v420_v44, %v419_v37  ;;  %4233 = vst [vmem:[#allocation6_spill] sm:$0xff] %v2869_v56  ;;  %2437 = vmatmul.msk.bf16.vlgmr.msra.gmra.mxu1 %vm811_vm1, %v2869_v56  ;;  %2496 = vmatmul.msk.bf16.vlgmr.msrb.gmra.mxu0 %vm811_vm1, %v2804_v63 }
 0x182   : > { %v2645_v57 = vpop.trf.xlu1  ;;  %4234 = vst [vmem:[#allocation7_spill] sm:$0xff] %v2874_v58  ;;  %2445 = vmatmul.msk.bf16.vlgmr.msra.gmra.mxu3 %vm811_vm1, %v2874_v58 }
 0x183   : > { %v472_v59 = vshrl.u32 %v431_v52, 16  ;;  %v528_v60 = vshrl.u32 %v439_v53, 16  ;;  %v475_v61 = vshll.u32 %v431_v52, 16  ;;  %v2649_v0 = vunpack.i.h.bf16 %v2645_v57 }
 0x184   : > { %v2646_v2 = vunpack.i.l.bf16 %v2645_v57  ;;  %v531_v5 = vshll.u32 %v439_v53, 16 }
 0x185   : > { %v474_v3 = vrot.slane %v472_v59, 7  ;;  %v530_v6 = vrot.slane %v528_v60, 7  ;;  %v348_v11 = vpack.c.bf16 %v2649_v0, %v2649_v0 }
 0x186   : > { %v332_v13 = vpack.c.bf16 %v2646_v2, %v2646_v2 }
 0x187   : > { %v477_v7 = vor.u32 %v475_v61, %v474_v3  ;;  %v2882_v9 = vsel %vm2786_vm4, %v474_v3, 0  ;;  %v533_v10 = vor.u32 %v531_v5, %v530_v6  ;;  %v2890_v15 = vsel %vm2786_vm4, %v530_v6, 0 }
 0x188   : > { %v687_v21 = vshll.u32 %v2882_v9, 16  ;;  %v783_v29 = vshll.u32 %v2890_v15, 16  ;;  %v421_v30 = vunpack.c.l.b16 %v348_v11  ;;  %v405_v34 = vunpack.c.l.b16 %v332_v13  ;;  %v354_v13 = vld [vmem:[%s4196_s1] sm:$0xf] }
 0x189   : > { %v2886_v14 = vsel %vm2786_vm4, 0, %v477_v7  ;;  %v2896_v22 = vsel %vm2786_vm4, 0, %v533_v10 }
 0x18a   : > { %v2650_v63 = vpop.trf.xlu1  ;;  %4235 = vst [vmem:[#allocation8_spill] sm:$0xff] %v2886_v14  ;;  %v682_v19 = vshll.u32 %v2886_v14, 16  ;;  %v778_v28 = vshll.u32 %v2896_v22, 16  ;;  %v680_v35 = vshrl.u32 %v2886_v14, 16  ;;  %v776_v39 = vshrl.u32 %v2896_v22, 16 }
 0x18b   : > { %v2654_v16 = vunpack.i.h.bf16 %v2650_v63  ;;  %v2651_v18 = vunpack.i.l.bf16 %v2650_v63  ;;  %v689_v45 = vrot.slane %v687_v21, 1  ;;  %v785_v51 = vrot.slane %v783_v29, 1  ;;  %v357_v63 = vld [vmem:[%s4196_s1 + $0xc] sm:$0xf] }
 0x18c   : > { %v684_v36 = vrot.slane %v682_v19, 1  ;;  %v780_v41 = vrot.slane %v778_v28, 1  ;;  %v986_v21 = vsel %vm860_vm0, %v354_v13, 0 }
 0x18d   : > { %v349_v26 = vpack.c.bf16 %v2654_v16, %v2654_v16  ;;  %v333_v27 = vpack.c.bf16 %v2651_v18, %v2651_v18  ;;  %995 = vmatpush.bf16.msrb.mxu1 %v986_v21 }
 0x18e   : > { %v685_v44 = vor.u32 %v684_v36, %v680_v35  ;;  %v781_v50 = vor.u32 %v780_v41, %v776_v39 }
 0x18f   : > { %v422_v37 = vunpack.c.l.b16 %v349_v26  ;;  %v406_v38 = vunpack.c.l.b16 %v333_v27  ;;  %v1332_v26 = vsel %vm860_vm0, %v357_v63, 0 }
 0x190   : > { %v2903_v52 = vsel %vm622_vm5, %v685_v44, %v689_v45  ;;  %v2908_v54 = vsel %vm622_vm5, %v781_v50, %v785_v51  ;;  %1341 = vmatpush.bf16.msrb.mxu3 %v1332_v26 }
 0x191   : > { %v432_v47 = vpack.c.b16 %v406_v38, %v405_v34  ;;  %v440_v49 = vpack.c.b16 %v422_v37, %v421_v30  ;;  %4236 = vst [vmem:[#allocation9_spill] sm:$0xff] %v2903_v52  ;;  %2438 = vmatmul.msk.bf16.gmra.mxu1 %vm811_vm1, %v2903_v52  ;;  %2497 = vmatmul.msk.bf16.gmra.mxu0 %vm811_vm1, %v2826_v32 }
 0x192   : > { %v2655_v53 = vpop.trf.xlu1  ;;  %4237 = vst [vmem:[#allocation10_spill] sm:$0xff] %v2908_v54  ;;  %2446 = vmatmul.msk.bf16.gmra.mxu3 %vm811_vm1, %v2908_v54 }
 0x193   : > { %v479_v55 = vshrl.u32 %v432_v47, 16  ;;  %v2659_v57 = vunpack.i.h.bf16 %v2655_v53  ;;  %v2656_v59 = vunpack.i.l.bf16 %v2655_v53  ;;  %v535_v60 = vshrl.u32 %v440_v49, 16 }
 0x194   : > { %v482_v61 = vshll.u32 %v432_v47, 16  ;;  %v538_v2 = vshll.u32 %v440_v49, 16 }
 0x195   : > { %v481_v0 = vrot.slane %v479_v55, 7  ;;  %v537_v3 = vrot.slane %v535_v60, 7  ;;  %v350_v6 = vpack.c.bf16 %v2659_v57, %v2659_v57  ;;  %v334_v7 = vpack.c.bf16 %v2656_v59, %v2656_v59 }
 0x197   : > { %v484_v5 = vor.u32 %v482_v61, %v481_v0  ;;  %v2916_v10 = vsel %vm2786_vm4, %v481_v0, 0  ;;  %v540_v11 = vor.u32 %v538_v2, %v537_v3  ;;  %v2930_v19 = vsel %vm2786_vm4, %v537_v3, 0 }
 0x198   : > { %v699_v30 = vshll.u32 %v2916_v10, 16  ;;  %v795_v38 = vshll.u32 %v2930_v19, 16  ;;  %v423_v39 = vunpack.c.l.b16 %v350_v6  ;;  %v407_v41 = vunpack.c.l.b16 %v334_v7 }
 0x199   : > { %v2926_v18 = vsel %vm2786_vm4, 0, %v484_v5  ;;  %v2938_v34 = vsel %vm2786_vm4, 0, %v540_v11  ;;  %v356_v5 = vld [vmem:[%s4196_s1 + $0x8] sm:$0xf] }
 0x19a   : > { %v2660_v16 = vpop.trf.xlu1  ;;  %4238 = vst [vmem:[#allocation11_spill] sm:$0xff] %v2926_v18  ;;  %v694_v29 = vshll.u32 %v2926_v18, 16  ;;  %v790_v37 = vshll.u32 %v2938_v34, 16  ;;  %v692_v44 = vshrl.u32 %v2926_v18, 16  ;;  %v788_v50 = vshrl.u32 %v2938_v34, 16 }
 0x19b   : > { %v2664_v27 = vunpack.i.h.bf16 %v2660_v16  ;;  %v2661_v28 = vunpack.i.l.bf16 %v2660_v16  ;;  %v701_v55 = vrot.slane %v699_v30, 1  ;;  %v797_v61 = vrot.slane %v795_v38, 1 }
 0x19c   : > { %v696_v45 = vrot.slane %v694_v29, 1  ;;  %v792_v51 = vrot.slane %v790_v37, 1  ;;  %v1205_v11 = vsel %vm860_vm0, %v356_v5, 0 }
 0x19d   : > { %v351_v35 = vpack.c.bf16 %v2664_v27, %v2664_v27  ;;  %v335_v36 = vpack.c.bf16 %v2661_v28, %v2661_v28  ;;  %1214 = vmatpush.bf16.msrb.mxu2 %v1205_v11 }
 0x19e   : > { %v697_v53 = vor.u32 %v696_v45, %v692_v44  ;;  %v793_v60 = vor.u32 %v792_v51, %v788_v50 }
 0x19f   : > { %v424_v47 = vunpack.c.l.b16 %v351_v35  ;;  %v408_v49 = vunpack.c.l.b16 %v335_v36 }
 0x1a0   : > { %v2945_v0 = vsel %vm622_vm5, %v697_v53, %v701_v55  ;;  %v2952_v3 = vsel %vm622_vm5, %v793_v60, %v797_v61 }
 0x1a1   : > { %v433_v57 = vpack.c.b16 %v408_v49, %v407_v41  ;;  %v441_v59 = vpack.c.b16 %v424_v47, %v423_v39  ;;  %4239 = vst [vmem:[#allocation12_spill] sm:$0xff] %v2945_v0  ;;  %2439 = vmatmul.msk.bf16.gmra.mxu1 %vm811_vm1, %v2945_v0  ;;  %2498 = vmatmul.msk.bf16.gmra.mxu0 %vm811_vm1, %v2842_v4 }
 0x1a2   : > { %v2947_v2 = vpop.trf.xlu1  ;;  %4240 = vst [vmem:[#allocation13_spill] sm:$0xff] %v2952_v3  ;;  %2447 = vmatmul.msk.bf16.gmra.mxu3 %vm811_vm1, %v2952_v3 }
 0x1a3   : > { %v486_v6 = vshrl.u32 %v433_v57, 16  ;;  %v542_v7 = vshrl.u32 %v441_v59, 16  ;;  %v489_v13 = vshll.u32 %v433_v57, 16  ;;  %v545_v16 = vshll.u32 %v441_v59, 16 }
 0x1a4   : > { %v2666_v21 = vunpack.i.l.bf16 %v2947_v2 }
 0x1a5   : > { %v488_v63 = vrot.slane %v486_v6, 7  ;;  %v544_v26 = vrot.slane %v542_v7, 7 }
 0x1a6   : > { %v336_v37 = vpack.c.bf16 %v2666_v21, %v2666_v21 }
 0x1a7   : > { %v491_v27 = vor.u32 %v489_v13, %v488_v63  ;;  %v2965_v28 = vsel %vm2786_vm4, %v488_v63, 0  ;;  %v547_v29 = vor.u32 %v545_v16, %v544_v26  ;;  %v2975_v36 = vsel %vm2786_vm4, %v544_v26, 0 }
 0x1a8   : > { %4242 = vst [vmem:[#allocation15_spill] sm:$0xff] %v2975_v36  ;;  %v711_v41 = vshll.u32 %v2965_v28, 16  ;;  %v807_v49 = vshll.u32 %v2975_v36, 16  ;;  %v409_v53 = vunpack.c.l.b16 %v336_v37  ;;  %v500_v26 = vshrl.u32 %v2783_v33, 16 }
 0x1a9   : > { %v2971_v35 = vsel %vm2786_vm4, 0, %v491_v27  ;;  %v2982_v44 = vsel %vm2786_vm4, 0, %v547_v29 }
 0x1aa   : > { %v2967_v30 = vpop.trf.xlu1  ;;  %4241 = vst [vmem:[#allocation14_spill] sm:$0xff] %v2971_v35  ;;  %v706_v39 = vshll.u32 %v2971_v35, 16  ;;  %v802_v47 = vshll.u32 %v2982_v44, 16  ;;  %v704_v50 = vshrl.u32 %v2971_v35, 16  ;;  %v800_v57 = vshrl.u32 %v2982_v44, 16 }
 0x1ab   : > { %v2671_v38 = vunpack.i.l.bf16 %v2967_v30  ;;  %v713_v61 = vrot.slane %v711_v41, 1  ;;  %v809_v7 = vrot.slane %v807_v49, 1 }
 0x1ac   : > { %v708_v51 = vrot.slane %v706_v39, 1  ;;  %v804_v59 = vrot.slane %v802_v47, 1  ;;  %v3012_v47 = vpop.f32.mrf.mxu0 }
 0x1ad   : > { %v337_v45 = vpack.c.bf16 %v2671_v38, %v2671_v38  ;;  %v502_v38 = vrot.slane %v500_v26, 7 }
 0x1ae   : > { %v709_v60 = vor.u32 %v708_v51, %v704_v50  ;;  %v805_v6 = vor.u32 %v804_v59, %v800_v57 }
 0x1af   : > { %v410_v55 = vunpack.c.l.b16 %v337_v45  ;;  %v503_v45 = vshll.u32 %v2783_v33, 16 }
 0x1b0   : > { %v2989_v11 = vsel %vm622_vm5, %v709_v60, %v713_v61  ;;  %v2994_v13 = vsel %vm622_vm5, %v805_v6, %v809_v7  ;;  %v507_v61 = vshrl.u32 %v2801_v62, 16 }
 0x1b1   : > { %v434_v5 = vpack.c.b16 %v410_v55, %v409_v53  ;;  %4243 = vst [vmem:[#allocation16_spill] sm:$0xff] %v2989_v11  ;;  %2440 = vmatmul.msk.bf16.gmra.mxu1 %vm811_vm1, %v2989_v11  ;;  %2499 = vmatmul.msk.bf16.gmra.mxu0 %vm811_vm1, %v2869_v56  ;;  %v505_v51 = vor.u32 %v503_v45, %v502_v38 }
 0x1b2   : > { %4244 = vst [vmem:[#allocation17_spill] sm:$0xff] %v2994_v13  ;;  %2448 = vmatmul.msk.bf16.gmra.mxu3 %vm811_vm1, %v2994_v13  ;;  %v509_v7 = vrot.slane %v507_v61, 7 }
 0x1b3   : > { %v493_v63 = vshrl.u32 %v434_v5, 16  ;;  %v496_v16 = vshll.u32 %v434_v5, 16  ;;  %v3022_v59 = vsel %vm2786_vm4, 0, %v505_v51  ;;  %v3035_v5 = vsel %vm2786_vm4, %v502_v38, 0 }
 0x1b4   : > { %4247 = vst [vmem:[#allocation20_spill] sm:$0xff] %v3022_v59  ;;  %v730_v33 = vshll.u32 %v3022_v59, 16  ;;  %v3030_v60 = vpop.f32.mrf.mxu0  ;;  %v3063_v51 = vsel %vm2786_vm4, %v509_v7, 0 }
 0x1b5   : > { %v495_v21 = vrot.slane %v493_v63, 7  ;;  %v728_v63 = vshrl.u32 %v3022_v59, 16  ;;  %v747_v61 = vshll.u32 %v3063_v51, 16 }
 0x1b6   : > { %v732_v6 = vrot.slane %v730_v33, 1 }
 0x1b7   : > { %v498_v27 = vor.u32 %v496_v16, %v495_v21  ;;  %v3003_v29 = vsel %vm2786_vm4, %v495_v21, 0  ;;  %v735_v16 = vshll.u32 %v3035_v5, 16  ;;  %v510_v21 = vshll.u32 %v2801_v62, 16 }
 0x1b8   : > { %v723_v41 = vshll.u32 %v3003_v29, 16  ;;  %v733_v26 = vor.u32 %v732_v6, %v728_v63  ;;  %v517_v6 = vshll.u32 %v2823_v31, 16 }
 0x1b9   : > { %v3007_v37 = vsel %vm2786_vm4, 0, %v498_v27  ;;  %v512_v27 = vor.u32 %v510_v21, %v509_v7  ;;  %v749_v21 = vrot.slane %v747_v61, 1 }
 0x1ba   : > { %4245 = vst [vmem:[#allocation18_spill] sm:$0xff] %v3007_v37  ;;  %v718_v39 = vshll.u32 %v3007_v37, 16  ;;  %v716_v49 = vshrl.u32 %v3007_v37, 16  ;;  %v725_v55 = vrot.slane %v723_v41, 1 }
 0x1bb   : > { %v3049_v38 = vsel %vm2786_vm4, 0, %v512_v27 }
 0x1bc   : > { %v720_v50 = vrot.slane %v718_v39, 1  ;;  %v737_v39 = vrot.slane %v735_v16, 1  ;;  %v742_v62 = vshll.u32 %v3049_v38, 16  ;;  %v740_v33 = vshrl.u32 %v3049_v38, 16 }
 0x1be   : > { %v721_v53 = vor.u32 %v720_v50, %v716_v49  ;;  %v3043_v45 = vsel %vm622_vm5, %v733_v26, %v737_v39  ;;  %v514_v49 = vshrl.u32 %v2823_v31, 16  ;;  %v360_v31 = vld [vmem:[%s4196_s1 + $0x18] sm:$0xf]  ;;  %v361_v39 = vld [vmem:[%s4196_s1 + $0x1c] sm:$0xf] }
 0x1bf   : > { %4248 = vst [vmem:[#allocation21_spill] sm:$0xff] %v3043_v45 }
 0x1c0   : > { %v3016_v57 = vsel %vm622_vm5, %v721_v53, %v725_v55  ;;  %v744_v53 = vrot.slane %v742_v62, 1  ;;  %v516_v55 = vrot.slane %v514_v49, 7  ;;  %v1726_v49 = vsel %vm860_vm0, %v360_v31, 0 }
 0x1c1   : > { %4246 = vst [vmem:[#allocation19_spill] sm:$0xff] %v3016_v57  ;;  %2441 = vmatmul.msk.bf16.vlgmr.msra.gmra.mxu2 %vm811_vm1, %v3016_v57  ;;  %996 = vmatmul.bf16.vlgmr.msrb.gmra.mxu1 %v4201_v1 }
 0x1c2   : > { %2500 = vmatmul.msk.bf16.gmra.mxu0 %vm811_vm1, %v2903_v52  ;;  %2480 = vmatmul.msk.bf16.vlgmr.msrb.gmra.mxu3 %vm811_vm1, %v2796_v46  ;;  %v745_v63 = vor.u32 %v744_v53, %v740_v33  ;;  %v519_v16 = vor.u32 %v517_v6, %v516_v55  ;;  %v1850_v53 = vsel %vm860_vm0, %v361_v39, 0  ;;  %v359_v33 = vld [vmem:[%s4196_s1 + $0x14] sm:$0xf]  ;;  %v3101_v6 = vsel %vm2786_vm4, %v516_v55, 0 }
 0x1c3   : > { %1735 = vmatpush.bf16.msra.mxu2 %v1726_v49  ;;  %1859 = vmatpush.bf16.msra.mxu3 %v1850_v53  ;;  %v759_v49 = vshll.u32 %v3101_v6, 16 }
 0x1c4   : > { %v3071_v27 = vsel %vm622_vm5, %v745_v63, %v749_v21  ;;  %v3077_v7 = vsel %vm2786_vm4, 0, %v519_v16  ;;  %v1602_v63 = vsel %vm860_vm0, %v359_v33, 0  ;;  %v362_v16 = vld [vmem:[%s4196_s1 + $0x20] sm:$0xf] }
 0x1c5   : > { %4249 = vst [vmem:[#allocation22_spill] sm:$0xff] %v3071_v27  ;;  %v754_v62 = vshll.u32 %v3077_v7, 16  ;;  %1611 = vmatpush.bf16.msra.mxu1 %v1602_v63  ;;  %v1974_v31 = vsel %vm860_vm0, %v362_v16, 0  ;;  %v752_v39 = vshrl.u32 %v3077_v7, 16  ;;  %v761_v1 = vrot.slane %v759_v49, 1 }
 0x1c6   : > { %1983 = vmatpush.bf16.msra.mxu0 %v1974_v31  ;;  %v1111_v31 = vrot.slane %v2796_v46, 1  ;;  %v1112_v49 = vrot.slane %v2792_v42, 1 }
 0x1c7   : > { %v756_v21 = vrot.slane %v754_v62, 1 }
 0x1c9   : > { %v757_v53 = vor.u32 %v756_v21, %v752_v39 }
 0x1cb   : > { %v3113_v55 = vsel %vm622_vm5, %v757_v53, %v761_v1 }
 0x1cc   : > { %4250 = vst [vmem:[#allocation23_spill] sm:$0xff] %v3113_v55 }
 0x1ce   : > { %v3040_v41 = vpop.f32.mrf.mxu0 }
 0x1d1   : > { %2442 = vmatmul.msk.bf16.gmra.mxu2 %vm811_vm1, %v3043_v45  ;;  %2449 = vmatmul.msk.bf16.gmra.mxu1 %vm811_vm1, %v2796_v46 }
 0x1d2   : > { %2501 = vmatmul.msk.bf16.gmra.mxu0 %vm811_vm1, %v2945_v0  ;;  %2481 = vmatmul.msk.bf16.gmra.mxu3 %vm811_vm1, %v2814_v12 }
 0x1d6   : > { %v3059_v50 = vpop.f32.mrf.mxu0 }
 0x1de   : > { %v3068_v26 = vpop.f32.mrf.mxu0 }
 0x1e1   : > { %2443 = vmatmul.msk.bf16.gmra.mxu2 %vm811_vm1, %v3071_v27  ;;  %2450 = vmatmul.msk.bf16.gmra.mxu1 %vm811_vm1, %v2814_v12 }
 0x1e2   : > { %2502 = vmatmul.msk.bf16.gmra.mxu0 %vm811_vm1, %v2989_v11  ;;  %2482 = vmatmul.msk.bf16.gmra.mxu3 %vm811_vm1, %v2836_v48 }
 0x1e6   : > { %v3097_v61 = vpop.f32.mrf.mxu0 }
 0x1ee   : > { %v3110_v11 = vpop.f32.mrf.mxu0 }
 0x1f1   : > { %2444 = vmatmul.msk.bf16.gmra.mxu2 %vm811_vm1, %v3113_v55  ;;  %2451 = vmatmul.msk.bf16.gmra.mxu1 %vm811_vm1, %v2836_v48 }
 0x1f2   : > { %2503 = vmatmul.msk.bf16.gmra.mxu0 %vm811_vm1, %v3016_v57  ;;  %2483 = vmatmul.msk.bf16.gmra.mxu3 %vm811_vm1, %v2852_v23 }
 0x1f6   : > { %v3123_v62 = vpop.f32.mrf.mxu0 }
 0x1fe   : > { %v3125_v33 = vpop.f32.mrf.mxu1  ;;  %v3127_v63 = vpop.f32.mrf.mxu0 }
 0x1ff   : > { %4251 = vst [vmem:[#allocation24_spill] sm:$0xff] %v3127_v63  ;;  %v3152_v63 = vsel %vm1108_vm6, %v1111_v31, %v1112_v49  ;;  %v1114_v31 = vrot.slane %v2814_v12, 1 }
 0x201   : > { %2464 = vmatmul.msk.bf16.vlgmr.msrb.gmra.mxu2 %vm811_vm1, %v2779_v17  ;;  %2452 = vmatmul.msk.bf16.gmra.mxu1 %vm811_vm1, %v2852_v23 }
 0x202   : > { %2504 = vmatmul.msk.bf16.gmra.mxu0 %vm811_vm1, %v3043_v45  ;;  %2484 = vmatmul.msk.bf16.gmra.mxu3 %vm811_vm1, %v2886_v14 }
 0x205   : > { %v3137_v1 = vpop.f32.mrf.mxu3 }
 0x206   : > { %4252 = vst [vmem:[#allocation25_spill] sm:$0xff] %v3137_v1  ;;  %v3139_v16 = vpop.f32.mrf.mxu1  ;;  %v3141_v21 = vpop.f32.mrf.mxu0 }
 0x207   : > { %4253 = vst [vmem:[#allocation26_spill] sm:$0xff] %v3141_v21 }
 0x20d   : > { %v3144_v39 = vpop.f32.mrf.mxu3 }
 0x20e   : > { %4254 = vst [vmem:[#allocation27_spill] sm:$0xff] %v3144_v39  ;;  %v3147_v53 = vpop.f32.mrf.mxu1  ;;  %v3149_v17 = vpop.f32.mrf.mxu0  ;;  %v1115_v39 = vrot.slane %v2810_v8, 1 }
 0x20f   : > { %4255 = vst [vmem:[#allocation28_spill] sm:$0xff] %v3149_v17 }
 0x211   : > { %2465 = vmatmul.msk.bf16.gmra.mxu2 %vm811_vm1, %v3152_v63  ;;  %2453 = vmatmul.msk.bf16.gmra.mxu1 %vm811_vm1, %v2886_v14 }
 0x212   : > { %2505 = vmatmul.msk.bf16.gmra.mxu0 %vm811_vm1, %v3071_v27  ;;  %2485 = vmatmul.msk.bf16.gmra.mxu3 %vm811_vm1, %v2926_v18  ;;  %v3177_v27 = vsel %vm1108_vm6, %v1114_v31, %v1115_v39  ;;  %v1117_v39 = vrot.slane %v2836_v48, 1 }
 0x215   : > { %v3162_v42 = vpop.f32.mrf.mxu3 }
 0x216   : > { %4256 = vst [vmem:[#allocation29_spill] sm:$0xff] %v3162_v42  ;;  %v3164_v46 = vpop.f32.mrf.mxu1  ;;  %v3166_v17 = vpop.f32.mrf.mxu0 }
 0x217   : > { %4257 = vst [vmem:[#allocation30_spill] sm:$0xff] %v3166_v17  ;;  %v1118_v17 = vrot.slane %v2832_v43, 1 }
 0x21d   : > { %v3169_v49 = vpop.f32.mrf.mxu3 }
 0x21e   : > { %4258 = vst [vmem:[#allocation31_spill] sm:$0xff] %v3169_v49  ;;  %v3172_v21 = vpop.f32.mrf.mxu1  ;;  %v3174_v1 = vpop.f32.mrf.mxu0 }
 0x21f   : > { %4259 = vst [vmem:[#allocation32_spill] sm:$0xff] %v3174_v1 }
 0x221   : > { %2466 = vmatmul.msk.bf16.gmra.mxu2 %vm811_vm1, %v3177_v27  ;;  %2454 = vmatmul.msk.bf16.gmra.mxu1 %vm811_vm1, %v2926_v18 }
 0x222   : > { %2506 = vmatmul.msk.bf16.gmra.mxu0 %vm811_vm1, %v3113_v55  ;;  %2486 = vmatmul.msk.bf16.gmra.mxu3 %vm811_vm1, %v2971_v35  ;;  %v3202_v55 = vsel %vm1108_vm6, %v1117_v39, %v1118_v17  ;;  %v1120_v17 = vrot.slane %v2852_v23, 1 }
 0x225   : > { %v3187_v8 = vpop.f32.mrf.mxu3 }
 0x226   : > { %4260 = vst [vmem:[#allocation33_spill] sm:$0xff] %v3187_v8  ;;  %v3189_v49 = vpop.f32.mrf.mxu1  ;;  %v3191_v1 = vpop.f32.mrf.mxu0 }
 0x227   : > { %4261 = vst [vmem:[#allocation34_spill] sm:$0xff] %v3189_v49  ;;  %v1130_v49 = vrot.slane %v2965_v28, 1 }
 0x228   : > { %4262 = vst [vmem:[#allocation35_spill] sm:$0xff] %v3191_v1  ;;  %v1121_v1 = vrot.slane %v2848_v20, 1 }
 0x22d   : > { %v3194_v31 = vpop.f32.mrf.mxu3 }
 0x22e   : > { %4263 = vst [vmem:[#allocation36_spill] sm:$0xff] %v3194_v31  ;;  %v3197_v42 = vpop.f32.mrf.mxu1  ;;  %v3199_v45 = vpop.f32.mrf.mxu0 }
 0x22f   : > { %4264 = vst [vmem:[#allocation37_spill] sm:$0xff] %v3197_v42 }
 0x230   : > { %4265 = vst [vmem:[#allocation38_spill] sm:$0xff] %v3199_v45 }
 0x231   : > { %2467 = vmatmul.msk.bf16.gmra.mxu2 %vm811_vm1, %v3202_v55  ;;  %2455 = vmatmul.msk.bf16.gmra.mxu1 %vm811_vm1, %v2971_v35 }
 0x232   : > { %2507 = vmatmul.msk.bf16.gmra.mxu0 %vm811_vm1, %v2874_v58  ;;  %2487 = vmatmul.msk.bf16.gmra.mxu3 %vm811_vm1, %v3007_v37  ;;  %v3227_v58 = vsel %vm1108_vm6, %v1120_v17, %v1121_v1 }
 0x235   : > { %v3212_v43 = vpop.f32.mrf.mxu3 }
 0x236   : > { %4266 = vst [vmem:[#allocation39_spill] sm:$0xff] %v3212_v43  ;;  %v3214_v31 = vpop.f32.mrf.mxu1  ;;  %v3216_v45 = vpop.f32.mrf.mxu0 }
 0x237   : > { %4267 = vst [vmem:[#allocation40_spill] sm:$0xff] %v3214_v31 }
 0x238   : > { %4268 = vst [vmem:[#allocation41_spill] sm:$0xff] %v3216_v45  ;;  %v2669_v45 = vunpack.i.h.bf16 %v2947_v2 }
 0x23a   : > { %v352_v23 = vpack.c.bf16 %v2669_v45, %v2669_v45 }
 0x23c   : > { %v425_v52 = vunpack.c.l.b16 %v352_v23 }
 0x23d   : > { %v3219_v39 = vpop.f32.mrf.mxu3 }
 0x23e   : > { %4269 = vst [vmem:[#allocation42_spill] sm:$0xff] %v3219_v39  ;;  %v3222_v8 = vpop.f32.mrf.mxu1  ;;  %v2674_v39 = vunpack.i.h.bf16 %v2967_v30 }
 0x23f   : > { %v3224_v57 = vpop.f32.mrf.mxu0 }
 0x240   : > { %4270 = vst [vmem:[#allocation43_spill] sm:$0xff] %v3224_v57  ;;  %v353_v43 = vpack.c.bf16 %v2674_v39, %v2674_v39 }
 0x241   : > { %2468 = vmatmul.msk.bf16.gmra.mxu2 %vm811_vm1, %v3227_v58  ;;  %2456 = vmatmul.msk.bf16.gmra.mxu1 %vm811_vm1, %v3007_v37 }
 0x242   : > { %2508 = vmatmul.msk.bf16.gmra.mxu0 %vm811_vm1, %v2908_v54  ;;  %2488 = vmatmul.msk.bf16.gmra.mxu3 %vm811_vm1, %v3022_v59  ;;  %v1123_v54 = vrot.slane %v2886_v14, 1  ;;  %v426_v0 = vunpack.c.l.b16 %v353_v43  ;;  %v1127_v14 = vrot.slane %v2916_v10, 1 }
 0x244   : > { %v3237_v20 = vpop.f32.mrf.mxu2  ;;  %v442_v2 = vpack.c.b16 %v426_v0, %v425_v52 }
 0x245   : > { %4271 = vst [vmem:[#allocation44_spill] sm:$0xff] %v3237_v20  ;;  %v3240_v57 = vpop.f32.mrf.mxu3  ;;  %v1124_v20 = vrot.slane %v2882_v9, 1 }
 0x246   : > { %v3242_v1 = vpop.f32.mrf.mxu1  ;;  %v549_v45 = vshrl.u32 %v442_v2, 16  ;;  %v552_v52 = vshll.u32 %v442_v2, 16 }
 0x247   : > { %v3244_v17 = vpop.f32.mrf.mxu0 }
 0x248   : > { %4272 = vst [vmem:[#allocation45_spill] sm:$0xff] %v3244_v17  ;;  %v3258_v17 = vsel %vm1108_vm6, %v1123_v54, %v1124_v20  ;;  %v551_v39 = vrot.slane %v549_v45, 7  ;;  %v1126_v20 = vrot.slane %v2926_v18, 1 }
 0x24c   : > { %v3247_v48 = vpop.f32.mrf.mxu2 }
 0x24d   : > { %4273 = vst [vmem:[#allocation46_spill] sm:$0xff] %v3247_v48  ;;  %v3250_v12 = vpop.f32.mrf.mxu3 }
 0x24e   : > { %v3253_v30 = vpop.f32.mrf.mxu1 }
 0x24f   : > { %v3255_v31 = vpop.f32.mrf.mxu0 }
 0x250   : > { %4274 = vst [vmem:[#allocation47_spill] sm:$0xff] %v3255_v31  ;;  %v554_v31 = vor.u32 %v552_v52, %v551_v39 }
 0x251   : > { %2469 = vmatmul.msk.bf16.gmra.mxu2 %vm811_vm1, %v3258_v17  ;;  %2457 = vmatmul.msk.bf16.gmra.mxu1 %vm811_vm1, %v3022_v59 }
 0x252   : > { %2509 = vmatmul.msk.bf16.gmra.mxu0 %vm811_vm1, %v2952_v3  ;;  %2489 = vmatmul.msk.bf16.gmra.mxu3 %vm811_vm1, %v3049_v38  ;;  %v3291_v2 = vsel %vm2786_vm4, 0, %v554_v31  ;;  %v3310_v31 = vsel %vm2786_vm4, %v551_v39, 0 }
 0x253   : > { %v1457_v10 = vshll.u32 %v3291_v2, 16  ;;  %4280 = vst [vmem:[#allocation53_spill] sm:$0xff] %v3310_v31 }
 0x254   : > { %v3268_v9 = vpop.f32.mrf.mxu2 }
 0x255   : > { %4275 = vst [vmem:[#allocation48_spill] sm:$0xff] %v3268_v9  ;;  %v3270_v23 = vpop.f32.mrf.mxu3  ;;  %v3285_v9 = vsel %vm1108_vm6, %v1126_v20, %v1127_v14 }
 0x256   : > { %v3272_v54 = vpop.f32.mrf.mxu1 }
 0x257   : > { %v3274_v43 = vpop.f32.mrf.mxu0 }
 0x258   : > { %4276 = vst [vmem:[#allocation49_spill] sm:$0xff] %v3274_v43  ;;  %v1459_v43 = vrot.slane %v1457_v10, 1 }
 0x25c   : > { %v3276_v0 = vpop.f32.mrf.mxu2 }
 0x25d   : > { %4277 = vst [vmem:[#allocation50_spill] sm:$0xff] %v3276_v0  ;;  %v3279_v3 = vpop.f32.mrf.mxu3  ;;  %v1129_v0 = vrot.slane %v2971_v35, 1  ;;  %v1000_v35 = vadd.f32 %v3242_v1, %v3030_v60 }
 0x25e   : > { %v3282_v48 = vpop.f32.mrf.mxu1 }
 0x25f   : > { %v3297_v45 = vpop.f32.mrf.mxu0  ;;  %v3325_v39 = vsel %vm1108_vm6, %v1129_v0, %v1130_v49 }
 0x260   : > { %4278 = vst [vmem:[#allocation51_spill] sm:$0xff] %v3297_v45  ;;  %v1462_v45 = vshll.u32 %v3310_v31, 16 }
 0x261   : > { %2470 = vmatmul.msk.bf16.gmra.mxu2 %vm811_vm1, %v3285_v9  ;;  %2458 = vmatmul.msk.bf16.gmra.mxu1 %vm811_vm1, %v3049_v38 }
 0x262   : > { %2510 = vmatmul.msk.bf16.gmra.mxu0 %vm811_vm1, %v2994_v13  ;;  %2490 = vmatmul.msk.bf16.gmra.mxu3 %vm811_vm1, %v3077_v7  ;;  %v1455_v13 = vshrl.u32 %v3291_v2, 16  ;;  %v1464_v40 = vrot.slane %v1462_v45, 1 }
 0x264   : > { %v3301_v14 = vpop.f32.mrf.mxu2  ;;  %v1460_v42 = vor.u32 %v1459_v43, %v1455_v13 }
 0x265   : > { %4279 = vst [vmem:[#allocation52_spill] sm:$0xff] %v3301_v14  ;;  %v3304_v52 = vpop.f32.mrf.mxu3 }
 0x266   : > { %v3306_v20 = vpop.f32.mrf.mxu1  ;;  %v3330_v10 = vsel %vm622_vm5, %v1460_v42, %v1464_v40  ;;  %v1132_v42 = vrot.slane %v3007_v37, 1  ;;  %v1133_v40 = vrot.slane %v3003_v29, 1 }
 0x267   : > { %v3317_v14 = vpop.f32.mrf.mxu0  ;;  %4283 = vst [vmem:[#allocation56_spill] sm:$0xff] %v3330_v10 }
 0x268   : > { %4282 = vst [vmem:[#allocation55_spill] sm:$0xff] %v3317_v14 }
 0x26c   : > { %v3314_v18 = vpop.f32.mrf.mxu2 }
 0x26d   : > { %4281 = vst [vmem:[#allocation54_spill] sm:$0xff] %v3314_v18  ;;  %v3319_v36 = vpop.f32.mrf.mxu3 }
 0x26e   : > { %v3322_v56 = vpop.f32.mrf.mxu1 }
 0x26f   : > { %v3342_v49 = vpop.f32.mrf.mxu0 }
 0x270   : > { %4285 = vst [vmem:[#allocation58_spill] sm:$0xff] %v3342_v49  ;;  %v998_v49 = vadd.f32 %v3222_v8, %v3012_v47  ;;  %v1135_v47 = vrot.slane %v3022_v59, 1  ;;  %v1139_v59 = vrot.slane %v3063_v51, 1 }
 0x271   : > { %2471 = vmatmul.msk.bf16.gmra.mxu2 %vm811_vm1, %v3325_v39  ;;  %2459 = vmatmul.msk.bf16.gmra.mxu1 %vm811_vm1, %v3077_v7 }
 0x272   : > { %2511 = vmatmul.msk.bf16.gmra.mxu0 %vm811_vm1, %v3330_v10  ;;  %2491 = vmatmul.msk.bf16.gmra.mxu3 %vm811_vm1, %v2856_v24  ;;  %v3355_v10 = vsel %vm1108_vm6, %v1132_v42, %v1133_v40 }
 0x274   : > { %v3338_v28 = vpop.f32.mrf.mxu2 }
 0x275   : > { %4284 = vst [vmem:[#allocation57_spill] sm:$0xff] %v3338_v28  ;;  %v3340_v13 = vpop.f32.mrf.mxu3 }
 0x276   : > { %v3344_v43 = vpop.f32.mrf.mxu1 }
 0x277   : > { %v3357_v31 = vpop.f32.mrf.mxu0 }
 0x278   : > { %4287 = vst [vmem:[#allocation60_spill] sm:$0xff] %v3357_v31 }
 0x27c   : > { %v3346_v0 = vpop.f32.mrf.mxu2 }
 0x27d   : > { %4286 = vst [vmem:[#allocation59_spill] sm:$0xff] %v3346_v0  ;;  %v3349_v45 = vpop.f32.mrf.mxu3 }
 0x27e   : > { %v3352_v14 = vpop.f32.mrf.mxu1 }
 0x27f   : > { %v3378_v0 = vpop.f32.mrf.mxu0 }
 0x280   : > { %4288 = vst [vmem:[#allocation61_spill] sm:$0xff] %v3378_v0 }
 0x281   : > { %2472 = vmatmul.msk.bf16.gmra.mxu2 %vm811_vm1, %v3355_v10  ;;  %2460 = vmatmul.msk.bf16.gmra.mxu1 %vm811_vm1, %v2856_v24 }
 0x282   : > { %2559 = vmatmul.msk.bf16.vlgmr.msra.gmra.mxu0 %vm811_vm1, %v3177_v27  ;;  %2492 = vmatmul.msk.bf16.gmra.mxu3 %vm811_vm1, %v2896_v22 }
 0x284   : > { %v1216_v29 = vpop.f32.mrf.mxu2 }
 0x285   : > { %v1296_v42 = vadd.f32 %v1216_v29, %v998_v49  ;;  %v3369_v40 = vpop.f32.mrf.mxu3  ;;  %v1136_v49 = vrot.slane %v3035_v5, 1 }
 0x286   : > { %v3374_v37 = vpop.f32.mrf.mxu1 }
 0x287   : > { %v3372_v31 = vadd.f32 %v3240_v57, %v1296_v42  ;;  %v3390_v42 = vsel %vm1108_vm6, %v1135_v47, %v1136_v49  ;;  %v3402_v60 = vpop.f32.mrf.mxu0 }
 0x288   : > { %4289 = vst [vmem:[#allocation62_spill] sm:$0xff] %v3402_v60 }
 0x28c   : > { %v1218_v28 = vpop.f32.mrf.mxu2 }
 0x28d   : > { %v1297_v8 = vadd.f32 %v1218_v28, %v1000_v35  ;;  %v3381_v18 = vpop.f32.mrf.mxu3  ;;  %v1003_v35 = vadd.f32 %v3253_v30, %v3040_v41  ;;  %v1138_v41 = vrot.slane %v3049_v38, 1 }
 0x28e   : > { %v3387_v57 = vpop.f32.mrf.mxu1 }
 0x28f   : > { %v3385_v29 = vadd.f32 %v3250_v12, %v1297_v8  ;;  %v1005_v8 = vadd.f32 %v3272_v54, %v3059_v50  ;;  %v3417_v60 = vpop.f32.mrf.mxu0  ;;  %v1008_v50 = vadd.f32 %v3282_v48, %v3068_v26  ;;  %v1141_v48 = vrot.slane %v3077_v7, 1 }
 0x290   : > { %4290 = vst [vmem:[#allocation63_spill] sm:$0xff] %v3417_v60 }
 0x291   : > { %2473 = vmatmul.msk.bf16.gmra.mxu2 %vm811_vm1, %v3390_v42  ;;  %2461 = vmatmul.msk.bf16.gmra.mxu1 %vm811_vm1, %v2896_v22 }
 0x292   : > { %2560 = vmatmul.msk.bf16.gmra.mxu0 %vm811_vm1, %v3202_v55  ;;  %2493 = vmatmul.msk.bf16.gmra.mxu3 %vm811_vm1, %v2938_v34 }
 0x294   : > { %v1221_v12 = vpop.f32.mrf.mxu2 }
 0x295   : > { %v1298_v5 = vadd.f32 %v1221_v12, %v1003_v35  ;;  %v3404_v1 = vpop.f32.mrf.mxu3  ;;  %v3425_v12 = vsel %vm1108_vm6, %v1138_v41, %v1139_v59 }
 0x296   : > { %v3409_v47 = vpop.f32.mrf.mxu1 }
 0x297   : > { %v3407_v28 = vadd.f32 %v3270_v23, %v1298_v5 }
 0x29c   : > { %v1223_v49 = vpop.f32.mrf.mxu2 }
 0x29d   : > { %v1299_v30 = vadd.f32 %v1223_v49, %v1005_v8  ;;  %v3414_v0 = vpop.f32.mrf.mxu3  ;;  %v3444_v8 = vpop.f32.mrf.mxu0  ;;  %v1010_v49 = vadd.f32 %v3306_v20, %v3097_v61  ;;  %v1013_v61 = vadd.f32 %v3322_v56, %v3110_v11  ;;  %v1144_v56 = vrot.slane %v2856_v24, 1 }
 0x29e   : > { %v3422_v23 = vpop.f32.mrf.mxu1  ;;  %4291 = vst [vmem:[#allocation64_spill] sm:$0xff] %v3444_v8 }
 0x29f   : > { %v3420_v35 = vadd.f32 %v3279_v3, %v1299_v30 }
 0x2a1   : > { %2474 = vmatmul.msk.bf16.gmra.mxu2 %vm811_vm1, %v3425_v12  ;;  %2462 = vmatmul.msk.bf16.gmra.mxu1 %vm811_vm1, %v2938_v34 }
 0x2a2   : > { %2561 = vmatmul.msk.bf16.gmra.mxu0 %vm811_vm1, %v3227_v58  ;;  %2494 = vmatmul.msk.bf16.gmra.mxu3 %vm811_vm1, %v2982_v44 }
 0x2a4   : > { %v1226_v3 = vpop.f32.mrf.mxu2 }
 0x2a5   : > { %v1300_v51 = vadd.f32 %v1226_v3, %v1008_v50  ;;  %v3437_v54 = vpop.f32.mrf.mxu3  ;;  %v1142_v50 = vrot.slane %v3101_v6, 1  ;;  %v3468_v6 = vpop.f32.mrf.mxu0 }
 0x2a6   : > { %v3442_v5 = vpop.f32.mrf.mxu1  ;;  %4292 = vst [vmem:[#allocation65_spill] sm:$0xff] %v3468_v6 }
 0x2a7   : > { %v3440_v59 = vadd.f32 %v3304_v52, %v1300_v51  ;;  %v3458_v51 = vsel %vm1108_vm6, %v1141_v48, %v1142_v50 }
 0x2ac   : > { %v1228_v41 = vpop.f32.mrf.mxu2 }
 0x2ad   : > { %v1301_v26 = vadd.f32 %v1228_v41, %v1010_v49  ;;  %v3449_v30 = vpop.f32.mrf.mxu3  ;;  %v3482_v11 = vpop.f32.mrf.mxu0 }
 0x2ae   : > { %v3455_v52 = vpop.f32.mrf.mxu1  ;;  %4293 = vst [vmem:[#allocation66_spill] sm:$0xff] %v3482_v11 }
 0x2af   : > { %v3453_v3 = vadd.f32 %v3319_v36, %v1301_v26  ;;  %v1015_v26 = vadd.f32 %v3344_v43, %v3123_v62 }
 0x2b1   : > { %2475 = vmatmul.msk.bf16.gmra.mxu2 %vm811_vm1, %v3458_v51  ;;  %2463 = vmatmul.msk.bf16.gmra.mxu1 %vm811_vm1, %v2982_v44 }
 0x2b2   : > { %2562 = vmatmul.msk.bf16.gmra.mxu0 %vm811_vm1, %v3258_v17  ;;  %2495 = vmatmul.msk.bf16.gmra.mxu3 %vm811_vm1, %v3291_v2 }
 0x2b4   : > { %v1231_v36 = vpop.f32.mrf.mxu2 }
 0x2b5   : > { %v1302_v20 = vadd.f32 %v1231_v36, %v1013_v61  ;;  %v3472_v49 = vpop.f32.mrf.mxu3  ;;  %v1145_v61 = vrot.slane %v2860_v25, 1  ;;  %v1018_v25 = vadd.f32 %v3352_v14, %v3125_v33  ;;  %v1147_v33 = vrot.slane %v2896_v22, 1 }
 0x2b6   : > { %v3477_v48 = vpop.f32.mrf.mxu1 }
 0x2b7   : > { %v3475_v41 = vadd.f32 %v3340_v13, %v1302_v20  ;;  %v3493_v20 = vsel %vm1108_vm6, %v1144_v56, %v1145_v61 }
 0x2bc   : > { %v1233_v50 = vpop.f32.mrf.mxu2 }
 0x2bd   : > { %v1303_v6 = vadd.f32 %v1233_v50, %v1015_v26  ;;  %v3484_v8 = vpop.f32.mrf.mxu3 }
 0x2be   : > { %v3490_v13 = vpop.f32.mrf.mxu1 }
 0x2bf   : > { %v3488_v36 = vadd.f32 %v3349_v45, %v1303_v6  ;;  %v3507_v6 = vpop.f32.mrf.mxu0 }
 0x2c0   : > { %4294 = vst [vmem:[#allocation67_spill] sm:$0xff] %v3507_v6 }
 0x2c1   : > { %2476 = vmatmul.msk.bf16.gmra.mxu2 %vm811_vm1, %v3493_v20  ;;  %2512 = vmatmul.msk.bf16.vlgmr.msra.gmra.mxu1 %vm811_vm1, %v3152_v63  ;;  %v1020_v63 = vadd.f32 %v3374_v37, %v3139_v16 }
 0x2c2   : > { %2563 = vmatmul.msk.bf16.gmra.mxu0 %vm811_vm1, %v3285_v9  ;;  %2543 = vmatmul.msk.bf16.vlgmr.msra.gmra.mxu3 %vm811_vm1, %v2826_v32  ;;  %v1148_v32 = vrot.slane %v2890_v15, 1  ;;  %v1023_v15 = vadd.f32 %v3387_v57, %v3147_v53  ;;  %v1150_v53 = vrot.slane %v2938_v34, 1 }
 0x2c4   : > { %v1236_v62 = vpop.f32.mrf.mxu2 }
 0x2c5   : > { %v1304_v43 = vadd.f32 %v1236_v62, %v1018_v25  ;;  %v3505_v45 = vpop.f32.mrf.mxu3 }
 0x2c6   : > { %v3512_v50 = vpop.f32.mrf.mxu1 }
 0x2c7   : > { %v3510_v26 = vadd.f32 %v3369_v40, %v1304_v43  ;;  %v3526_v40 = vsel %vm1108_vm6, %v1147_v33, %v1148_v32  ;;  %v3528_v43 = vpop.f32.mrf.mxu0 }
 0x2c8   : > { %4295 = vst [vmem:[#allocation68_spill] sm:$0xff] %v3528_v43 }
 0x2cc   : > { %v1238_v56 = vpop.f32.mrf.mxu2 }
 0x2cd   : > { %v1305_v14 = vadd.f32 %v1238_v56, %v1020_v63  ;;  %v3517_v61 = vpop.f32.mrf.mxu3 }
 0x2ce   : > { %v3523_v62 = vpop.f32.mrf.mxu1 }
 0x2cf   : > { %v3521_v25 = vadd.f32 %v3381_v18, %v1305_v14  ;;  %v3549_v33 = vpop.f32.mrf.mxu0 }
 0x2d0   : > { %4296 = vst [vmem:[#allocation69_spill] sm:$0xff] %v3549_v33 }
 0x2d1   : > { %2477 = vmatmul.msk.bf16.gmra.mxu2 %vm811_vm1, %v3526_v40  ;;  %2513 = vmatmul.msk.bf16.gmra.mxu1 %vm811_vm1, %v3177_v27  ;;  %v1025_v27 = vadd.f32 %v3409_v47, %v3164_v46  ;;  %v4297_v46 = vld [vmem:[#allocation6_spill] sm:$0xff] }
 0x2d2   : > { %2564 = vmatmul.msk.bf16.gmra.mxu0 %vm811_vm1, %v3325_v39  ;;  %2544 = vmatmul.msk.bf16.gmra.mxu3 %vm811_vm1, %v2842_v4  ;;  %v1151_v4 = vrot.slane %v2930_v19, 1  ;;  %v1028_v19 = vadd.f32 %v3422_v23, %v3172_v21  ;;  %v1153_v21 = vrot.slane %v2982_v44, 1 }
 0x2d4   : > { %v1241_v18 = vpop.f32.mrf.mxu2 }
 0x2d5   : > { %v1306_v37 = vadd.f32 %v1241_v18, %v1023_v15  ;;  %v3540_v16 = vpop.f32.mrf.mxu3  ;;  %v3561_v18 = vsel %vm1108_vm6, %v1150_v53, %v1151_v4 }
 0x2d6   : > { %v3545_v56 = vpop.f32.mrf.mxu1 }
 0x2d7   : > { %v3543_v63 = vadd.f32 %v3404_v1, %v1306_v37  ;;  %v3573_v47 = vpop.f32.mrf.mxu0 }
 0x2d8   : > { %4298 = vst [vmem:[#allocation6_spill] sm:$0xff] %v3573_v47 }
 0x2dc   : > { %v1243_v14 = vpop.f32.mrf.mxu2 }
 0x2dd   : > { %v1307_v57 = vadd.f32 %v1243_v14, %v1025_v27  ;;  %v3552_v32 = vpop.f32.mrf.mxu3 }
 0x2de   : > { %v3558_v1 = vpop.f32.mrf.mxu1 }
 0x2df   : > { %v3556_v15 = vadd.f32 %v3414_v0, %v1307_v57  ;;  %v3588_v47 = vpop.f32.mrf.mxu0 }
 0x2e1   : > { %2478 = vmatmul.msk.bf16.gmra.mxu2 %vm811_vm1, %v3561_v18  ;;  %2514 = vmatmul.msk.bf16.gmra.mxu1 %vm811_vm1, %v3202_v55  ;;  %v4299_v55 = vld [vmem:[#allocation34_spill] sm:$0xff] }
 0x2e2   : > { %2565 = vmatmul.msk.bf16.gmra.mxu0 %vm811_vm1, %v3355_v10  ;;  %2545 = vmatmul.msk.bf16.gmra.mxu3 %vm811_vm1, %v4297_v46  ;;  %v1030_v57 = vadd.f32 %v3442_v5, %v4299_v55  ;;  %v4300_v46 = vld [vmem:[#allocation15_spill] sm:$0xff]  ;;  %4301 = vst [vmem:[#allocation34_spill] sm:$0xff] %v3588_v47  ;;  %v4302_v5 = vld [vmem:[#allocation37_spill] sm:$0xff] }
 0x2e3   : > { %v1154_v43 = vrot.slane %v4300_v46, 1  ;;  %v4303_v55 = vld [vmem:[#allocation9_spill] sm:$0xff] }
 0x2e4   : > { %v1246_v0 = vpop.f32.mrf.mxu2 }
 0x2e5   : > { %v1308_v37 = vadd.f32 %v1246_v0, %v1028_v19  ;;  %v3575_v27 = vpop.f32.mrf.mxu3  ;;  %v3596_v0 = vsel %vm1108_vm6, %v1153_v21, %v1154_v43 }
 0x2e6   : > { %v3580_v53 = vpop.f32.mrf.mxu1 }
 0x2e7   : > { %v3578_v14 = vadd.f32 %v3437_v54, %v1308_v37  ;;  %v1033_v37 = vadd.f32 %v3455_v52, %v4302_v5 }
 0x2ec   : > { %v1248_v4 = vpop.f32.mrf.mxu2 }
 0x2ed   : > { %v1309_v23 = vadd.f32 %v1248_v4, %v1030_v57  ;;  %v3585_v33 = vpop.f32.mrf.mxu3 }
 0x2ee   : > { %v3593_v54 = vpop.f32.mrf.mxu1 }
 0x2ef   : > { %v3591_v19 = vadd.f32 %v3449_v30, %v1309_v23  ;;  %v3615_v23 = vpop.f32.mrf.mxu0 }
 0x2f0   : > { %4304 = vst [vmem:[#allocation15_spill] sm:$0xff] %v3615_v23 }
 0x2f1   : > { %2479 = vmatmul.msk.bf16.gmra.mxu2 %vm811_vm1, %v3596_v0  ;;  %2515 = vmatmul.msk.bf16.gmra.mxu1 %vm811_vm1, %v3227_v58  ;;  %v4305_v58 = vld [vmem:[#allocation40_spill] sm:$0xff] }
 0x2f2   : > { %2566 = vmatmul.msk.bf16.gmra.mxu0 %vm811_vm1, %v3390_v42  ;;  %2546 = vmatmul.msk.bf16.gmra.mxu3 %vm811_vm1, %v4303_v55  ;;  %v1035_v46 = vadd.f32 %v3477_v48, %v4305_v58  ;;  %v4306_v55 = vld [vmem:[#allocation3_spill] sm:$0xff] }
 0x2f4   : > { %v1251_v30 = vpop.f32.mrf.mxu2 }
 0x2f5   : > { %v1310_v57 = vadd.f32 %v1251_v30, %v1033_v37  ;;  %v3608_v4 = vpop.f32.mrf.mxu3  ;;  %v4309_v30 = vld [vmem:[#allocation12_spill] sm:$0xff] }
 0x2f6   : > { %v3613_v21 = vpop.f32.mrf.mxu1 }
 0x2f7   : > { %v3611_v43 = vadd.f32 %v3472_v49, %v1310_v57  ;;  %v4307_v49 = vld [vmem:[#allocation44_spill] sm:$0xff] }
 0x2f8   : > { %v1038_v48 = vadd.f32 %v3490_v13, %v4307_v49 }
 0x2fc   : > { %v1253_v47 = vpop.f32.mrf.mxu2 }
 0x2fd   : > { %v1311_v6 = vadd.f32 %v1253_v47, %v1035_v46  ;;  %v3619_v52 = vpop.f32.mrf.mxu3  ;;  %v3634_v47 = vpop.f32.mrf.mxu0 }
 0x2fe   : > { %v3624_v37 = vpop.f32.mrf.mxu1  ;;  %4308 = vst [vmem:[#allocation37_spill] sm:$0xff] %v3634_v47 }
 0x2ff   : > { %v3622_v5 = vadd.f32 %v3484_v8, %v1311_v6 }
 0x301   : > { %2528 = vmatmul.msk.bf16.vlgmr.msra.gmra.mxu2 %vm811_vm1, %v4306_v55  ;;  %2516 = vmatmul.msk.bf16.gmra.mxu1 %vm811_vm1, %v3258_v17  ;;  %v4310_v17 = vld [vmem:[#allocation46_spill] sm:$0xff] }
 0x302   : > { %2567 = vmatmul.msk.bf16.gmra.mxu0 %vm811_vm1, %v3425_v12  ;;  %2547 = vmatmul.msk.bf16.gmra.mxu3 %vm811_vm1, %v4309_v30  ;;  %v1040_v55 = vadd.f32 %v3512_v50, %v4310_v17 }
 0x304   : > { %v1256_v8 = vpop.f32.mrf.mxu2 }
 0x305   : > { %v1312_v6 = vadd.f32 %v1256_v8, %v1038_v48  ;;  %v3638_v57 = vpop.f32.mrf.mxu3  ;;  %v3647_v11 = vpop.f32.mrf.mxu0  ;;  %v4312_v8 = vld [vmem:[#allocation4_spill] sm:$0xff] }
 0x306   : > { %v3643_v46 = vpop.f32.mrf.mxu1  ;;  %4311 = vst [vmem:[#allocation9_spill] sm:$0xff] %v3647_v11 }
 0x307   : > { %v3641_v58 = vadd.f32 %v3505_v45, %v1312_v6  ;;  %v4313_v45 = vld [vmem:[#allocation48_spill] sm:$0xff] }
 0x308   : > { %v1043_v50 = vadd.f32 %v3523_v62, %v4313_v45 }
 0x30c   : > { %v1258_v23 = vpop.f32.mrf.mxu2 }
 0x30d   : > { %v1313_v13 = vadd.f32 %v1258_v23, %v1040_v55  ;;  %v3649_v49 = vpop.f32.mrf.mxu3  ;;  %v4314_v23 = vld [vmem:[#allocation16_spill] sm:$0xff]  ;;  %v3668_v55 = vpop.f32.mrf.mxu0 }
 0x30e   : > { %v3654_v48 = vpop.f32.mrf.mxu1  ;;  %4315 = vst [vmem:[#allocation40_spill] sm:$0xff] %v3668_v55 }
 0x30f   : > { %v3652_v30 = vadd.f32 %v3517_v61, %v1313_v13 }
 0x311   : > { %2529 = vmatmul.msk.bf16.gmra.mxu2 %vm811_vm1, %v4312_v8  ;;  %2517 = vmatmul.msk.bf16.gmra.mxu1 %vm811_vm1, %v3285_v9  ;;  %v4317_v9 = vld [vmem:[#allocation50_spill] sm:$0xff] }
 0x312   : > { %2568 = vmatmul.msk.bf16.gmra.mxu0 %vm811_vm1, %v3458_v51  ;;  %2548 = vmatmul.msk.bf16.gmra.mxu3 %vm811_vm1, %v4314_v23  ;;  %v1045_v11 = vadd.f32 %v3545_v56, %v4317_v9  ;;  %v4322_v56 = vld [vmem:[#allocation19_spill] sm:$0xff] }
 0x314   : > { %v1261_v6 = vpop.f32.mrf.mxu2 }
 0x315   : > { %v1314_v61 = vadd.f32 %v1261_v6, %v1043_v50  ;;  %v3666_v17 = vpop.f32.mrf.mxu3  ;;  %v3684_v23 = vpop.f32.mrf.mxu0  ;;  %v4320_v6 = vld [vmem:[#allocation5_spill] sm:$0xff] }
 0x316   : > { %v3673_v8 = vpop.f32.mrf.mxu1  ;;  %4319 = vst [vmem:[#allocation12_spill] sm:$0xff] %v3684_v23 }
 0x317   : > { %v3671_v13 = vadd.f32 %v3540_v16, %v1314_v61  ;;  %v4321_v16 = vld [vmem:[#allocation52_spill] sm:$0xff] }
 0x319   : > { %4316 = vst [vmem:[#allocation3_spill] sm:$0xff] %v3671_v13 }
 0x31c   : > { %v1263_v47 = vpop.f32.mrf.mxu2 }
 0x31d   : > { %v1315_v60 = vadd.f32 %v1263_v47, %v1045_v11  ;;  %v3677_v62 = vpop.f32.mrf.mxu3  ;;  %v1048_v11 = vadd.f32 %v3558_v1, %v4321_v16  ;;  %v3705_v23 = vpop.f32.mrf.mxu0 }
 0x31e   : > { %v3682_v50 = vpop.f32.mrf.mxu1 }
 0x31f   : > { %v3680_v45 = vadd.f32 %v3552_v32, %v1315_v60 }
 0x321   : > { %4318 = vst [vmem:[#allocation44_spill] sm:$0xff] %v3680_v45  ;;  %2530 = vmatmul.msk.bf16.gmra.mxu2 %vm811_vm1, %v4320_v6  ;;  %2518 = vmatmul.msk.bf16.gmra.mxu1 %vm811_vm1, %v3325_v39  ;;  %v4324_v6 = vld [vmem:[#allocation54_spill] sm:$0xff] }
 0x322   : > { %2569 = vmatmul.msk.bf16.gmra.mxu0 %vm811_vm1, %v3493_v20  ;;  %2549 = vmatmul.msk.bf16.gmra.mxu3 %vm811_vm1, %v4322_v56  ;;  %v1050_v39 = vadd.f32 %v3580_v53, %v4324_v6  ;;  %v4326_v56 = vld [vmem:[#allocation8_spill] sm:$0xff] }
 0x324   : > { %v1266_v60 = vpop.f32.mrf.mxu2 }
 0x325   : > { %v1316_v32 = vadd.f32 %v1266_v60, %v1048_v11  ;;  %v3696_v47 = vpop.f32.mrf.mxu3 }
 0x326   : > { %v3701_v9 = vpop.f32.mrf.mxu1 }
 0x327   : > { %v3699_v61 = vadd.f32 %v3575_v27, %v1316_v32  ;;  %v4327_v27 = vld [vmem:[#allocation57_spill] sm:$0xff] }
 0x328   : > { %v1053_v53 = vadd.f32 %v3593_v54, %v4327_v27  ;;  %v4330_v54 = vld [vmem:[#allocation24_spill] sm:$0xff] }
 0x329   : > { %4323 = vst [vmem:[#allocation46_spill] sm:$0xff] %v3699_v61  ;;  %v1561_v27 = vadd.f32 %v4330_v54, %v3372_v31  ;;  %v4333_v31 = vld [vmem:[#allocation25_spill] sm:$0xff] }
 0x32c   : > { %v1268_v55 = vpop.f32.mrf.mxu2 }
 0x32d   : > { %v1317_v45 = vadd.f32 %v1268_v55, %v1050_v39  ;;  %v3707_v1 = vpop.f32.mrf.mxu3  ;;  %v4328_v55 = vld [vmem:[#allocation21_spill] sm:$0xff] }
 0x32e   : > { %v3712_v11 = vpop.f32.mrf.mxu1 }
 0x32f   : > { %v3710_v16 = vadd.f32 %v3585_v33, %v1317_v45  ;;  %v3724_v33 = vpop.f32.mrf.mxu0 }
 0x331   : > { %4325 = vst [vmem:[#allocation4_spill] sm:$0xff] %v3710_v16  ;;  %2531 = vmatmul.msk.bf16.gmra.mxu2 %vm811_vm1, %v4326_v56  ;;  %2519 = vmatmul.msk.bf16.gmra.mxu1 %vm811_vm1, %v3355_v10  ;;  %v4329_v10 = vld [vmem:[#allocation59_spill] sm:$0xff] }
 0x332   : > { %2570 = vmatmul.msk.bf16.gmra.mxu0 %vm811_vm1, %v3526_v40  ;;  %2550 = vmatmul.msk.bf16.gmra.mxu3 %vm811_vm1, %v4328_v55  ;;  %v1055_v56 = vadd.f32 %v3613_v21, %v4329_v10  ;;  %v1058_v21 = vadd.f32 %v3624_v37, %v4333_v31  ;;  %v4335_v10 = vld [vmem:[#allocation26_spill] sm:$0xff] }
 0x334   : > { %v1271_v60 = vpop.f32.mrf.mxu2 }
 0x335   : > { %v1318_v45 = vadd.f32 %v1271_v60, %v1053_v53  ;;  %v3726_v32 = vpop.f32.mrf.mxu3 }
 0x336   : > { %v3731_v39 = vpop.f32.mrf.mxu1 }
 0x337   : > { %v3729_v6 = vadd.f32 %v3608_v4, %v1318_v45  ;;  %v3737_v55 = vpop.f32.mrf.mxu0  ;;  %v4332_v45 = vld [vmem:[#allocation11_spill] sm:$0xff] }
 0x33c   : > { %v1273_v16 = vpop.f32.mrf.mxu2 }
 0x33d   : > { %v1319_v61 = vadd.f32 %v1273_v16, %v1055_v56  ;;  %v3742_v60 = vpop.f32.mrf.mxu3  ;;  %v4334_v16 = vld [vmem:[#allocation22_spill] sm:$0xff]  ;;  %v1562_v56 = vadd.f32 %v4335_v10, %v3385_v29 }
 0x33e   : > { %v1613_v53 = vpop.f32.mrf.mxu1  ;;  %v4340_v10 = vld [vmem:[#allocation14_spill] sm:$0xff] }
 0x33f   : > { %v3740_v13 = vadd.f32 %v3619_v52, %v1319_v61  ;;  %v3744_v4 = vadd.f32 %v1613_v53, %v1561_v27 }
 0x341   : > { %4331 = vst [vmem:[#allocation48_spill] sm:$0xff] %v3740_v13  ;;  %2532 = vmatmul.msk.bf16.gmra.mxu2 %vm811_vm1, %v4332_v45  ;;  %2520 = vmatmul.msk.bf16.gmra.mxu1 %vm811_vm1, %v3390_v42  ;;  %v3763_v42 = vpop.f32.mrf.mxu0  ;;  %v4337_v13 = vld [vmem:[#allocation27_spill] sm:$0xff] }
 0x342   : > { %2571 = vmatmul.msk.bf16.gmra.mxu0 %vm811_vm1, %v3561_v18  ;;  %2551 = vmatmul.msk.bf16.gmra.mxu3 %vm811_vm1, %v4334_v16  ;;  %v1060_v37 = vadd.f32 %v3643_v46, %v4337_v13  ;;  %v4341_v46 = vld [vmem:[#allocation29_spill] sm:$0xff] }
 0x343   : > { %v1063_v13 = vadd.f32 %v3654_v48, %v4341_v46 }
 0x344   : > { %v1276_v52 = vpop.f32.mrf.mxu2 }
 0x345   : > { %v1320_v61 = vadd.f32 %v1276_v52, %v1058_v21  ;;  %v3765_v45 = vpop.f32.mrf.mxu3  ;;  %v4338_v21 = vld [vmem:[#allocation28_spill] sm:$0xff] }
 0x346   : > { %v1615_v27 = vpop.f32.mrf.mxu1  ;;  %v1563_v52 = vadd.f32 %v4338_v21, %v3407_v28  ;;  %v4342_v28 = vld [vmem:[#allocation23_spill] sm:$0xff] }
 0x347   : > { %v3759_v54 = vadd.f32 %v3638_v57, %v1320_v61  ;;  %v3761_v53 = vadd.f32 %v1615_v27, %v1562_v56 }
 0x349   : > { %4336 = vst [vmem:[#allocation16_spill] sm:$0xff] %v3759_v54  ;;  %v3784_v56 = vpop.f32.mrf.mxu0 }
 0x34c   : > { %v1278_v31 = vpop.f32.mrf.mxu2 }
 0x34d   : > { %v1321_v16 = vadd.f32 %v1278_v31, %v1060_v37  ;;  %v4343_v31 = vld [vmem:[#allocation30_spill] sm:$0xff] }
 0x34e   : > { %v1618_v57 = vpop.f32.mrf.mxu1 }
 0x34f   : > { %v3772_v29 = vadd.f32 %v3649_v49, %v1321_v16  ;;  %v3774_v61 = vadd.f32 %v1618_v57, %v1563_v52  ;;  %v3788_v49 = vpop.f32.mrf.mxu3  ;;  %v1564_v16 = vadd.f32 %v4343_v31, %v3420_v35  ;;  %v4344_v57 = vld [vmem:[#allocation31_spill] sm:$0xff] }
 0x350   : > { %v1065_v48 = vadd.f32 %v3673_v8, %v4344_v57  ;;  %v4347_v8 = vld [vmem:[#allocation18_spill] sm:$0xff]  ;;  %v4349_v57 = vld [vmem:[#allocation7_spill] sm:$0xff] }
 0x351   : > { %4339 = vst [vmem:[#allocation50_spill] sm:$0xff] %v3772_v29  ;;  %2533 = vmatmul.msk.bf16.gmra.mxu2 %vm811_vm1, %v4340_v10  ;;  %2521 = vmatmul.msk.bf16.gmra.mxu1 %vm811_vm1, %v3425_v12  ;;  %v3800_v29 = vpop.f32.mrf.mxu0 }
 0x352   : > { %2572 = vmatmul.msk.bf16.gmra.mxu0 %vm811_vm1, %v3596_v0  ;;  %2552 = vmatmul.msk.bf16.gmra.mxu3 %vm811_vm1, %v4342_v28  ;;  %v1595_v28 = vrot.slane %v3291_v2, 1 }
 0x354   : > { %v1281_v27 = vpop.f32.mrf.mxu2 }
 0x355   : > { %v1322_v37 = vadd.f32 %v1281_v27, %v1063_v13  ;;  %v4345_v13 = vld [vmem:[#allocation32_spill] sm:$0xff] }
 0x356   : > { %v1620_v21 = vpop.f32.mrf.mxu1  ;;  %v1565_v35 = vadd.f32 %v4345_v13, %v3440_v59  ;;  %v4348_v59 = vld [vmem:[#allocation33_spill] sm:$0xff] }
 0x357   : > { %v3793_v12 = vadd.f32 %v3666_v17, %v1322_v37  ;;  %v3795_v52 = vadd.f32 %v1620_v21, %v1564_v16  ;;  %v3802_v54 = vpop.f32.mrf.mxu3  ;;  %v4346_v37 = vld [vmem:[#allocation53_spill] sm:$0xff] }
 0x358   : > { %v1596_v31 = vrot.slane %v4346_v37, 1 }
 0x35a   : > { %v3815_v21 = vsel %vm1108_vm6, %v1595_v28, %v1596_v31  ;;  %v4352_v31 = vld [vmem:[#allocation36_spill] sm:$0xff] }
 0x35c   : > { %v1283_v10 = vpop.f32.mrf.mxu2 }
 0x35d   : > { %v1323_v46 = vadd.f32 %v1283_v10, %v1065_v48 }
 0x35e   : > { %v1623_v27 = vpop.f32.mrf.mxu1 }
 0x35f   : > { %v3807_v17 = vadd.f32 %v3677_v62, %v1323_v46  ;;  %v3810_v16 = vadd.f32 %v1623_v27, %v1565_v35  ;;  %v1068_v62 = vadd.f32 %v3682_v50, %v4348_v59  ;;  %v4350_v46 = vld [vmem:[#allocation35_spill] sm:$0xff]  ;;  %v3830_v27 = vpop.f32.mrf.mxu0  ;;  %v1070_v50 = vadd.f32 %v3701_v9, %v4352_v31  ;;  %v4356_v9 = vld [vmem:[#allocation2_spill] sm:$0xff] }
 0x360   : > { %v1566_v13 = vadd.f32 %v4350_v46, %v3453_v3 }
 0x361   : > { %2534 = vmatmul.msk.bf16.gmra.mxu2 %vm811_vm1, %v4347_v8  ;;  %2522 = vmatmul.msk.bf16.gmra.mxu1 %vm811_vm1, %v3458_v51  ;;  %v3832_v51 = vpop.f32.mrf.mxu3 }
 0x362   : > { %2573 = vmatmul.msk.bf16.gmra.mxu0 %vm811_vm1, %v3815_v21  ;;  %2553 = vmatmul.msk.bf16.gmra.mxu3 %vm811_vm1, %v4349_v57 }
 0x364   : > { %v1286_v48 = vpop.f32.mrf.mxu2 }
 0x365   : > { %v1324_v10 = vadd.f32 %v1286_v48, %v1068_v62  ;;  %v4353_v62 = vld [vmem:[#allocation38_spill] sm:$0xff] }
 0x366   : > { %v1625_v35 = vpop.f32.mrf.mxu1  ;;  %v1567_v57 = vadd.f32 %v4353_v62, %v3475_v41  ;;  %v4357_v41 = vld [vmem:[#allocation39_spill] sm:$0xff] }
 0x367   : > { %v3828_v28 = vadd.f32 %v3696_v47, %v1324_v10  ;;  %v3834_v37 = vadd.f32 %v1625_v35, %v1566_v13  ;;  %v4355_v10 = vld [vmem:[#allocation20_spill] sm:$0xff]  ;;  %v3847_v46 = vpop.f32.mrf.mxu0  ;;  %v4358_v35 = vld [vmem:[#allocation10_spill] sm:$0xff] }
 0x369   : > { %4351 = vst [vmem:[#allocation5_spill] sm:$0xff] %v3828_v28  ;;  %v3849_v13 = vpop.f32.mrf.mxu3 }
 0x36c   : > { %v1288_v8 = vpop.f32.mrf.mxu2 }
 0x36d   : > { %v1325_v59 = vadd.f32 %v1288_v8, %v1070_v50  ;;  %v4359_v8 = vld [vmem:[#allocation41_spill] sm:$0xff] }
 0x36e   : > { %v1628_v47 = vpop.f32.mrf.mxu1 }
 0x36f   : > { %v3841_v3 = vadd.f32 %v3707_v1, %v1325_v59  ;;  %v3843_v48 = vadd.f32 %v1628_v47, %v1567_v57  ;;  %v1073_v1 = vadd.f32 %v3712_v11, %v4357_v41  ;;  %v1568_v59 = vadd.f32 %v4359_v8, %v3488_v36 }
 0x371   : > { %4354 = vst [vmem:[#allocation52_spill] sm:$0xff] %v3841_v3  ;;  %2535 = vmatmul.msk.bf16.gmra.mxu2 %vm811_vm1, %v4355_v10  ;;  %2523 = vmatmul.msk.bf16.gmra.mxu1 %vm811_vm1, %v3493_v20  ;;  %v4360_v20 = vld [vmem:[#allocation42_spill] sm:$0xff]  ;;  %v3868_v3 = vpop.f32.mrf.mxu3 }
 0x372   : > { %2574 = vmatmul.msk.bf16.gmra.mxu0 %vm811_vm1, %v4356_v9  ;;  %2554 = vmatmul.msk.bf16.gmra.mxu3 %vm811_vm1, %v4358_v35  ;;  %v1075_v10 = vadd.f32 %v3731_v39, %v4360_v20  ;;  %v4361_v35 = vld [vmem:[#allocation43_spill] sm:$0xff] }
 0x373   : > { %v1569_v28 = vadd.f32 %v4361_v35, %v3510_v26  ;;  %v4363_v26 = vld [vmem:[#allocation45_spill] sm:$0xff] }
 0x374   : > { %v1291_v31 = vpop.f32.mrf.mxu2 }
 0x375   : > { %v1326_v50 = vadd.f32 %v1291_v31, %v1073_v1 }
 0x376   : > { %v1630_v57 = vpop.f32.mrf.mxu1 }
 0x377   : > { %v3862_v62 = vadd.f32 %v3726_v32, %v1326_v50  ;;  %v3864_v47 = vadd.f32 %v1630_v57, %v1568_v59  ;;  %v4362_v32 = vld [vmem:[#allocation13_spill] sm:$0xff] }
 0x379   : > { %v3884_v8 = vpop.f32.mrf.mxu3 }
 0x37c   : > { %v1293_v11 = vpop.f32.mrf.mxu2 }
 0x37d   : > { %v1327_v41 = vadd.f32 %v1293_v11, %v1075_v10  ;;  %v4364_v10 = vld [vmem:[#allocation47_spill] sm:$0xff] }
 0x37e   : > { %v1633_v36 = vpop.f32.mrf.mxu1  ;;  %v1571_v11 = vadd.f32 %v4364_v10, %v3543_v63 }
 0x37f   : > { %v3873_v1 = vadd.f32 %v3742_v60, %v1327_v41  ;;  %v3875_v31 = vadd.f32 %v1633_v36, %v1569_v28  ;;  %v1570_v60 = vadd.f32 %v4363_v26, %v3521_v25  ;;  %v4366_v26 = vld [vmem:[#allocation49_spill] sm:$0xff] }
 0x381   : > { %2536 = vmatmul.msk.bf16.gmra.mxu2 %vm811_vm1, %v3049_v38  ;;  %2524 = vmatmul.msk.bf16.gmra.mxu1 %vm811_vm1, %v3526_v40  ;;  %v3898_v35 = vpop.f32.mrf.mxu3 }
 0x382   : > { %2555 = vmatmul.msk.bf16.gmra.mxu3 %vm811_vm1, %v4362_v32 }
 0x384   : > { %v1737_v39 = vpop.f32.mrf.mxu2 }
 0x385   : > { %v1817_v50 = vadd.f32 %v1737_v39, %v3744_v4 }
 0x386   : > { %v1635_v59 = vpop.f32.mrf.mxu1 }
 0x387   : > { %v1941_v28 = vadd.f32 %v3765_v45, %v1817_v50  ;;  %v3889_v57 = vadd.f32 %v1635_v59, %v1570_v60  ;;  %v1572_v60 = vadd.f32 %v4366_v26, %v3556_v15  ;;  %v4369_v26 = vld [vmem:[#allocation55_spill] sm:$0xff] }
 0x389   : > { %v3892_v20 = vadd.f32 %v3705_v23, %v1941_v28  ;;  %v3930_v10 = vpop.f32.mrf.mxu3 }
 0x38b   : > { %v2166_v45 = vmul.f32 %v3892_v20, %v3892_v20  ;;  %v2097_v63 = vsel %vm811_vm1, %v3892_v20, 0.0 }
 0x38c   : > { %v1739_v38 = vpop.f32.mrf.mxu2 }
 0x38d   : > { %v1818_v40 = vadd.f32 %v1739_v38, %v3761_v53  ;;  %v2198_v39 = vsel %vm811_vm1, %v2166_v45, 0.0 }
 0x38e   : > { %v1638_v41 = vpop.f32.mrf.mxu1 }
 0x38f   : > { %v1942_v4 = vadd.f32 %v3788_v49, %v1818_v40  ;;  %v3900_v25 = vadd.f32 %v1638_v41, %v1571_v11  ;;  %v4365_v49 = vld [vmem:[#allocation17_spill] sm:$0xff]  ;;  %v3932_v11 = vpop.f32.mrf.mxu0 }
 0x391   : > { %v3905_v36 = vadd.f32 %v3724_v33, %v1942_v4  ;;  %2537 = vmatmul.msk.bf16.gmra.mxu2 %vm811_vm1, %v3077_v7  ;;  %2525 = vmatmul.msk.bf16.gmra.mxu1 %vm811_vm1, %v3561_v18 }
 0x392   : > { %2556 = vmatmul.msk.bf16.gmra.mxu3 %vm811_vm1, %v4365_v49 }
 0x393   : > { %v2098_v23 = vsel %vm811_vm1, %v3905_v36, 0.0  ;;  %v2167_v53 = vmul.f32 %v3905_v36, %v3905_v36 }
 0x394   : > { %v2099_v33 = vadd.f32 %v2098_v23, %v2097_v63  ;;  %v1742_v32 = vpop.f32.mrf.mxu2 }
 0x395   : > { %v2199_v7 = vsel %vm811_vm1, %v2167_v53, 0.0  ;;  %v1819_v18 = vadd.f32 %v1742_v32, %v3774_v61 }
 0x396   : > { %v2200_v50 = vadd.f32 %v2199_v7, %v2198_v39  ;;  %v1640_v59 = vpop.f32.mrf.mxu1 }
 0x397   : > { %v1943_v28 = vadd.f32 %v3802_v54, %v1819_v18  ;;  %v3925_v38 = vadd.f32 %v1640_v59, %v1572_v60  ;;  %v3960_v18 = vpop.f32.mrf.mxu0  ;;  %v1574_v60 = vadd.f32 %v4369_v26, %v3591_v19 }
 0x399   : > { %v3928_v40 = vadd.f32 %v3737_v55, %v1943_v28  ;;  %v4367_v55 = vld [vmem:[#allocation51_spill] sm:$0xff] }
 0x39a   : > { %v1573_v23 = vadd.f32 %v4367_v55, %v3578_v14  ;;  %v4370_v55 = vld [vmem:[#allocation58_spill] sm:$0xff] }
 0x39b   : > { %v2100_v4 = vsel %vm811_vm1, %v3928_v40, 0.0  ;;  %v2168_v61 = vmul.f32 %v3928_v40, %v3928_v40 }
 0x39c   : > { %v2101_v41 = vadd.f32 %v2100_v4, %v2099_v33  ;;  %v1744_v15 = vpop.f32.mrf.mxu2  ;;  %v4368_v33 = vld [vmem:[#allocation56_spill] sm:$0xff] }
 0x39d   : > { %v2201_v54 = vsel %vm811_vm1, %v2168_v61, 0.0  ;;  %v1820_v45 = vadd.f32 %v1744_v15, %v3795_v52 }
 0x39e   : > { %v2202_v63 = vadd.f32 %v2201_v54, %v2200_v50  ;;  %v1643_v49 = vpop.f32.mrf.mxu1 }
 0x39f   : > { %v1944_v53 = vadd.f32 %v3832_v51, %v1820_v45  ;;  %v3943_v32 = vadd.f32 %v1643_v49, %v1573_v23  ;;  %v3958_v51 = vpop.f32.mrf.mxu3  ;;  %v1575_v23 = vadd.f32 %v4370_v55, %v3611_v43 }
 0x3a1   : > { %v3946_v39 = vadd.f32 %v3763_v42, %v1944_v53  ;;  %2538 = vmatmul.msk.bf16.gmra.mxu2 %vm811_vm1, %v2856_v24  ;;  %2526 = vmatmul.msk.bf16.gmra.mxu1 %vm811_vm1, %v3596_v0 }
 0x3a2   : > { %2557 = vmatmul.msk.bf16.gmra.mxu3 %vm811_vm1, %v4368_v33 }
 0x3a3   : > { %v2102_v52 = vsel %vm811_vm1, %v3946_v39, 0.0  ;;  %v2169_v14 = vmul.f32 %v3946_v39, %v3946_v39 }
 0x3a4   : > { %v2103_v7 = vadd.f32 %v2102_v52, %v2101_v41  ;;  %v1747_v42 = vpop.f32.mrf.mxu2 }
 0x3a5   : > { %v2203_v24 = vsel %vm811_vm1, %v2169_v14, 0.0  ;;  %v1821_v50 = vadd.f32 %v1747_v42, %v3810_v16 }
 0x3a6   : > { %v2204_v0 = vadd.f32 %v2203_v24, %v2202_v63  ;;  %v1645_v59 = vpop.f32.mrf.mxu1 }
 0x3a7   : > { %v1945_v28 = vadd.f32 %v3849_v13, %v1821_v50  ;;  %v3967_v4 = vadd.f32 %v1645_v59, %v1574_v60  ;;  %v3978_v63 = vpop.f32.mrf.mxu3 }
 0x3a9   : > { %v3970_v61 = vadd.f32 %v3784_v56, %v1945_v28  ;;  %v3982_v56 = vpop.f32.mrf.mxu0 }
 0x3ab   : > { %v2104_v41 = vsel %vm811_vm1, %v3970_v61, 0.0  ;;  %v2170_v15 = vmul.f32 %v3970_v61, %v3970_v61 }
 0x3ac   : > { %v2105_v54 = vadd.f32 %v2104_v41, %v2103_v7  ;;  %v1749_v16 = vpop.f32.mrf.mxu2 }
 0x3ad   : > { %v2205_v45 = vsel %vm811_vm1, %v2170_v15, 0.0  ;;  %v1822_v19 = vadd.f32 %v1749_v16, %v3834_v37 }
 0x3ae   : > { %v2206_v13 = vadd.f32 %v2205_v45, %v2204_v0  ;;  %v1648_v49 = vpop.f32.mrf.mxu1 }
 0x3af   : > { %v1946_v53 = vadd.f32 %v3868_v3, %v1822_v19  ;;  %v3985_v52 = vadd.f32 %v1648_v49, %v1575_v23  ;;  %v1888_v0 = vpop.f32.mrf.mxu3 }
 0x3b1   : > { %v3988_v14 = vadd.f32 %v3800_v29, %v1946_v53  ;;  %2539 = vmatmul.msk.bf16.gmra.mxu2 %vm811_vm1, %v2896_v22  ;;  %2527 = vmatmul.msk.bf16.gmra.mxu1 %vm811_vm1, %v3815_v21  ;;  %v4371_v22 = vld [vmem:[#allocation60_spill] sm:$0xff]  ;;  %v2012_v60 = vpop.f32.mrf.mxu0 }
 0x3b2   : > { %2558 = vmatmul.msk.bf16.gmra.mxu3 %vm811_vm1, %v4356_v9  ;;  %v1576_v24 = vadd.f32 %v4371_v22, %v3622_v5 }
 0x3b3   : > { %v2106_v37 = vsel %vm811_vm1, %v3988_v14, 0.0  ;;  %v2171_v43 = vmul.f32 %v3988_v14, %v3988_v14 }
 0x3b4   : > { %v2107_v3 = vadd.f32 %v2106_v37, %v2105_v54  ;;  %v1752_v33 = vpop.f32.mrf.mxu2 }
 0x3b5   : > { %v2207_v29 = vsel %vm811_vm1, %v2171_v43, 0.0  ;;  %v1823_v7 = vadd.f32 %v1752_v33, %v3843_v48 }
 0x3b6   : > { %v2208_v42 = vadd.f32 %v2207_v29, %v2206_v13  ;;  %v1650_v50 = vpop.f32.mrf.mxu1 }
 0x3b7   : > { %v1947_v21 = vadd.f32 %v3884_v8, %v1823_v7  ;;  %v4005_v26 = vadd.f32 %v1650_v50, %v1576_v24 }
 0x3b9   : > { %v4008_v28 = vadd.f32 %v3830_v27, %v1947_v21  ;;  %v1891_v27 = vpop.f32.mrf.mxu3  ;;  %v2015_v45 = vpop.f32.mrf.mxu0 }
 0x3bb   : > { %v2108_v9 = vsel %vm811_vm1, %v4008_v28, 0.0  ;;  %v2172_v48 = vmul.f32 %v4008_v28, %v4008_v28 }
 0x3bc   : > { %v2109_v59 = vadd.f32 %v2108_v9, %v2107_v3  ;;  %v1754_v41 = vpop.f32.mrf.mxu2 }
 0x3bd   : > { %v2209_v5 = vsel %vm811_vm1, %v2172_v48, 0.0  ;;  %v1824_v8 = vadd.f32 %v1754_v41, %v3864_v47 }
 0x3be   : > { %v2210_v15 = vadd.f32 %v2209_v5, %v2208_v42 }
 0x3bf   : > { %v1948_v54 = vadd.f32 %v3898_v35, %v1824_v8 }
 0x3c1   : > { %v4018_v16 = vadd.f32 %v3847_v46, %v1948_v54  ;;  %2540 = vmatmul.msk.bf16.gmra.mxu2 %vm811_vm1, %v2938_v34  ;;  %v1893_v43 = vpop.f32.mrf.mxu3  ;;  %v2017_v29 = vpop.f32.mrf.mxu0 }
 0x3c3   : > { %v2110_v19 = vsel %vm811_vm1, %v4018_v16, 0.0  ;;  %v2173_v13 = vmul.f32 %v4018_v16, %v4018_v16 }
 0x3c4   : > { %v2111_v55 = vadd.f32 %v2110_v19, %v2109_v59  ;;  %v1757_v23 = vpop.f32.mrf.mxu2 }
 0x3c5   : > { %v2211_v47 = vsel %vm811_vm1, %v2173_v13, 0.0  ;;  %v1825_v35 = vadd.f32 %v1757_v23, %v3875_v31 }
 0x3c6   : > { %v2212_v53 = vadd.f32 %v2211_v47, %v2210_v15 }
 0x3c7   : > { %v1949_v46 = vadd.f32 %v3930_v10, %v1825_v35 }
 0x3c9   : > { %v4030_v49 = vadd.f32 %v3932_v11, %v1949_v46  ;;  %v1896_v48 = vpop.f32.mrf.mxu3  ;;  %v2020_v59 = vpop.f32.mrf.mxu0 }
 0x3cb   : > { %v2112_v34 = vsel %vm811_vm1, %v4030_v49, 0.0  ;;  %v2174_v37 = vmul.f32 %v4030_v49, %v4030_v49 }
 0x3cc   : > { %v2113_v3 = vadd.f32 %v2112_v34, %v2111_v55  ;;  %v1759_v33 = vpop.f32.mrf.mxu2 }
 0x3cd   : > { %v2213_v7 = vsel %vm811_vm1, %v2174_v37, 0.0  ;;  %v1826_v31 = vadd.f32 %v1759_v33, %v3889_v57 }
 0x3ce   : > { %v2214_v42 = vadd.f32 %v2213_v7, %v2212_v53 }
 0x3cf   : > { %v1950_v10 = vadd.f32 %v3958_v51, %v1826_v31 }
 0x3d1   : > { %v4040_v11 = vadd.f32 %v3960_v18, %v1950_v10  ;;  %2541 = vmatmul.msk.bf16.gmra.mxu2 %vm811_vm1, %v2982_v44  ;;  %v1898_v55 = vpop.f32.mrf.mxu3  ;;  %v2022_v23 = vpop.f32.mrf.mxu0 }
 0x3d3   : > { %v2114_v22 = vsel %vm811_vm1, %v4040_v11, 0.0  ;;  %v2175_v24 = vmul.f32 %v4040_v11, %v4040_v11 }
 0x3d4   : > { %v2115_v21 = vadd.f32 %v2114_v22, %v2113_v3  ;;  %v1762_v50 = vpop.f32.mrf.mxu2 }
 0x3d5   : > { %v2215_v9 = vsel %vm811_vm1, %v2175_v24, 0.0  ;;  %v1827_v57 = vadd.f32 %v1762_v50, %v3900_v25 }
 0x3d6   : > { %v2216_v51 = vadd.f32 %v2215_v9, %v2214_v42 }
 0x3d7   : > { %v1951_v18 = vadd.f32 %v3978_v63, %v1827_v57 }
 0x3d9   : > { %v4052_v41 = vadd.f32 %v3982_v56, %v1951_v18  ;;  %v1653_v56 = vpop.f32.mrf.mxu1  ;;  %v1901_v3 = vpop.f32.mrf.mxu3 }
 0x3da   : > { %v2025_v33 = vpop.f32.mrf.mxu0 }
 0x3db   : > { %v2116_v44 = vsel %vm811_vm1, %v4052_v41, 0.0  ;;  %v2176_v5 = vmul.f32 %v4052_v41, %v4052_v41 }
 0x3dc   : > { %v2117_v8 = vadd.f32 %v2116_v44, %v2115_v21  ;;  %v1764_v15 = vpop.f32.mrf.mxu2 }
 0x3dd   : > { %v2217_v54 = vsel %vm811_vm1, %v2176_v5, 0.0  ;;  %v1828_v25 = vadd.f32 %v1764_v15, %v3925_v38 }
 0x3de   : > { %v2218_v19 = vadd.f32 %v2217_v54, %v2216_v51 }
 0x3df   : > { %v1952_v13 = vadd.f32 %v1888_v0, %v1828_v25 }
 0x3e1   : > { %v4060_v63 = vadd.f32 %v2012_v60, %v1952_v13  ;;  %2542 = vmatmul.msk.bf16.gmra.mxu2 %vm811_vm1, %v3291_v2  ;;  %v1655_v31 = vpop.f32.mrf.mxu1  ;;  %v1903_v57 = vpop.f32.mrf.mxu3 }
 0x3e2   : > { %v2027_v44 = vpop.f32.mrf.mxu0 }
 0x3e3   : > { %v2118_v47 = vsel %vm811_vm1, %v4060_v63, 0.0  ;;  %v2177_v35 = vmul.f32 %v4060_v63, %v4060_v63 }
 0x3e4   : > { %v2119_v53 = vadd.f32 %v2118_v47, %v2117_v8  ;;  %v1767_v46 = vpop.f32.mrf.mxu2 }
 0x3e5   : > { %v2219_v38 = vsel %vm811_vm1, %v2177_v35, 0.0  ;;  %v1829_v0 = vadd.f32 %v1767_v46, %v3943_v32 }
 0x3e6   : > { %v2220_v34 = vadd.f32 %v2219_v38, %v2218_v19 }
 0x3e7   : > { %v1953_v37 = vadd.f32 %v1891_v27, %v1829_v0 }
 0x3e9   : > { %v4070_v60 = vadd.f32 %v2015_v45, %v1953_v37  ;;  %v4372_v45 = vmov 0   ;;  %v1658_v8 = vpop.f32.mrf.mxu1 }
 0x3eb   : > { %v2120_v2 = vsel %vm811_vm1, %v4070_v60, 0.0  ;;  %v2178_v7 = vmul.f32 %v4070_v60, %v4070_v60 }
 0x3ec   : > { %v2121_v42 = vadd.f32 %v2120_v2, %v2119_v53  ;;  %v1769_v10 = vpop.f32.mrf.mxu2  ;;  %v1906_v53 = vpop.f32.mrf.mxu3 }
 0x3ed   : > { %v2221_v22 = vsel %vm811_vm1, %v2178_v7, 0.0  ;;  %v1830_v24 = vadd.f32 %v1769_v10, %v3967_v4 }
 0x3ee   : > { %v2222_v32 = vadd.f32 %v2221_v22, %v2220_v34 }
 0x3ef   : > { %v1954_v21 = vadd.f32 %v1893_v43, %v1830_v24 }
 0x3f1   : > { %v4078_v27 = vadd.f32 %v2017_v29, %v1954_v21  ;;  %1811 = vmatmul.bf16.gmra.mxu2 %v4372_v45  ;;  %v1660_v0 = vpop.f32.mrf.mxu1 }
 0x3f3   : > { %v2122_v50 = vsel %vm811_vm1, %v4078_v27, 0.0  ;;  %v2179_v9 = vmul.f32 %v4078_v27, %v4078_v27 }
 0x3f4   : > { %v2123_v51 = vadd.f32 %v2122_v50, %v2121_v42  ;;  %v1772_v18 = vpop.f32.mrf.mxu2 }
 0x3f5   : > { %v2223_v5 = vsel %vm811_vm1, %v2179_v9, 0.0  ;;  %v1831_v4 = vadd.f32 %v1772_v18, %v3985_v52  ;;  %v2030_v52 = vpop.f32.mrf.mxu0 }
 0x3f6   : > { %v2224_v43 = vadd.f32 %v2223_v5, %v2222_v32  ;;  %v1908_v32 = vpop.f32.mrf.mxu3 }
 0x3f7   : > { %v1955_v29 = vadd.f32 %v1896_v48, %v1831_v4  ;;  %v4373_v48 = vld [vmem:[#allocation61_spill] sm:$0xff] }
 0x3f9   : > { %v4087_v15 = vadd.f32 %v2020_v59, %v1955_v29  ;;  %v1577_v59 = vadd.f32 %v4373_v48, %v3641_v58  ;;  %v4374_v58 = vld [vmem:[#allocation62_spill] sm:$0xff] }
 0x3fb   : > { %v2124_v54 = vsel %vm811_vm1, %v4087_v15, 0.0  ;;  %v2180_v25 = vmul.f32 %v4087_v15, %v4087_v15  ;;  %v1709_v37 = vadd.f32 %v1653_v56, %v1577_v59  ;;  %v1663_v56 = vpop.f32.mrf.mxu1 }
 0x3fc   : > { %v2125_v19 = vadd.f32 %v2124_v54, %v2123_v51  ;;  %v1774_v13 = vpop.f32.mrf.mxu2 }
 0x3fd   : > { %v2225_v47 = vsel %vm811_vm1, %v2180_v25, 0.0  ;;  %v1832_v35 = vadd.f32 %v1774_v13, %v4005_v26  ;;  %v2032_v21 = vpop.f32.mrf.mxu0  ;;  %v4375_v25 = vld [vmem:[#allocation3_spill] sm:$0xff] }
 0x3fe   : > { %v2226_v46 = vadd.f32 %v2225_v47, %v2224_v43 }
 0x3ff   : > { %v1956_v38 = vadd.f32 %v1898_v55, %v1832_v35 }
 0x401   : > { %v4097_v34 = vadd.f32 %v2022_v23, %v1956_v38  ;;  %v1578_v23 = vadd.f32 %v4374_v58, %v3652_v30 }
 0x403   : > { %v2126_v2 = vsel %vm811_vm1, %v4097_v34, 0.0  ;;  %v2181_v7 = vmul.f32 %v4097_v34, %v4097_v34  ;;  %v1710_v50 = vadd.f32 %v1655_v31, %v1578_v23  ;;  %v1665_v38 = vpop.f32.mrf.mxu1 }
 0x404   : > { %v2127_v42 = vadd.f32 %v2126_v2, %v2125_v19  ;;  %v1777_v10 = vpop.f32.mrf.mxu2  ;;  %v4376_v19 = vld [vmem:[#allocation63_spill] sm:$0xff] }
 0x405   : > { %v2227_v26 = vsel %vm811_vm1, %v2181_v7, 0.0  ;;  %v1833_v22 = vadd.f32 %v1777_v10, %v1709_v37  ;;  %v1579_v13 = vadd.f32 %v4376_v19, %v4375_v25  ;;  %v2035_v47 = vpop.f32.mrf.mxu0  ;;  %v4378_v10 = vld [vmem:[#allocation64_spill] sm:$0xff] }
 0x406   : > { %v2228_v24 = vadd.f32 %v2227_v26, %v2226_v46 }
 0x407   : > { %v1957_v55 = vadd.f32 %v1901_v3, %v1833_v22  ;;  %v1711_v31 = vadd.f32 %v1658_v8, %v1579_v13 }
 0x409   : > { %v2081_v45 = vadd.f32 %v2025_v33, %v1957_v55  ;;  %v1911_v33 = vpop.f32.mrf.mxu3 }
 0x40b   : > { %v2128_v9 = vsel %vm811_vm1, %v2081_v45, 0.0  ;;  %v2182_v51 = vmul.f32 %v2081_v45, %v2081_v45  ;;  %v2675_v18 = vpack.i.bf16 %v2081_v45, %v3892_v20 }
 0x40c   : > { %v2129_v5 = vadd.f32 %v2128_v9, %v2127_v42  ;;  %v1779_v4 = vpop.f32.mrf.mxu2  ;;  %v4377_v42 = vld [vmem:[#allocation44_spill] sm:$0xff] }
 0x40d   : > { %v2229_v43 = vsel %vm811_vm1, %v2182_v51, 0.0  ;;  %v1834_v29 = vadd.f32 %v1779_v4, %v1710_v50  ;;  %2676 = vxpose.xlu1.b32.start [1/16] (narrow) %v2675_v18, 8  ;;  %v2037_v45 = vpop.f32.mrf.mxu0  ;;  %v1668_v51 = vpop.f32.mrf.mxu1  ;;  %v4380_v4 = vld [vmem:[#allocation65_spill] sm:$0xff] }
 0x40e   : > { %v2230_v3 = vadd.f32 %v2229_v43, %v2228_v24 }
 0x40f   : > { %v1958_v54 = vadd.f32 %v1903_v57, %v1834_v29 }
 0x411   : > { %v2082_v30 = vadd.f32 %v2027_v44, %v1958_v54  ;;  %v1580_v44 = vadd.f32 %v4378_v10, %v4377_v42 }
 0x413   : > { %v2130_v35 = vsel %vm811_vm1, %v2082_v30, 0.0  ;;  %v2183_v46 = vmul.f32 %v2082_v30, %v2082_v30  ;;  %v2677_v20 = vpack.i.bf16 %v2082_v30, %v3905_v36  ;;  %v1712_v22 = vadd.f32 %v1660_v0, %v1580_v44  ;;  %v1913_v36 = vpop.f32.mrf.mxu3 }
 0x414   : > { %v2131_v48 = vadd.f32 %v2130_v35, %v2129_v5  ;;  %v1782_v59 = vpop.f32.mrf.mxu2  ;;  %v4379_v5 = vld [vmem:[#allocation46_spill] sm:$0xff] }
 0x415   : > { %v2231_v37 = vsel %vm811_vm1, %v2183_v46, 0.0  ;;  %v1835_v2 = vadd.f32 %v1782_v59, %v1711_v31  ;;  %2678 = vxpose.xlu1.b32.cont [2/16] (narrow) %v2677_v20, 8  ;;  %v2040_v35 = vpop.f32.mrf.mxu0  ;;  %v1670_v46 = vpop.f32.mrf.mxu1  ;;  %v4381_v20 = vld [vmem:[#allocation4_spill] sm:$0xff] }
 0x416   : > { %v2232_v57 = vadd.f32 %v2231_v37, %v2230_v3 }
 0x417   : > { %v1959_v7 = vadd.f32 %v1906_v53, %v1835_v2 }
 0x419   : > { %v2083_v26 = vadd.f32 %v2030_v52, %v1959_v7  ;;  %v1581_v52 = vadd.f32 %v4380_v4, %v4379_v5  ;;  %v4384_v4 = vld [vmem:[#allocation48_spill] sm:$0xff] }
 0x41b   : > { %v2132_v8 = vsel %vm811_vm1, %v2083_v26, 0.0  ;;  %v2184_v24 = vmul.f32 %v2083_v26, %v2083_v26  ;;  %v2679_v55 = vpack.i.bf16 %v2083_v26, %v3928_v40  ;;  %v1713_v43 = vadd.f32 %v1663_v56, %v1581_v52  ;;  %v1916_v30 = vpop.f32.mrf.mxu3  ;;  %v4385_v52 = vld [vmem:[#allocation68_spill] sm:$0xff] }
 0x41c   : > { %v2133_v58 = vadd.f32 %v2132_v8, %v2131_v48  ;;  %v1784_v23 = vpop.f32.mrf.mxu2  ;;  %v4382_v48 = vld [vmem:[#allocation66_spill] sm:$0xff]  ;;  %v4383_v8 = vld [vmem:[#allocation67_spill] sm:$0xff] }
 0x41d   : > { %v2233_v50 = vsel %vm811_vm1, %v2184_v24, 0.0  ;;  %v1836_v9 = vadd.f32 %v1784_v23, %v1712_v22  ;;  %2680 = vxpose.xlu1.b32.cont [3/16] (narrow) %v2679_v55, 8  ;;  %v2042_v22 = vpop.f32.mrf.mxu0  ;;  %v1583_v24 = vadd.f32 %v4383_v8, %v3729_v6 }
 0x41e   : > { %v2234_v53 = vadd.f32 %v2233_v50, %v2232_v57 }
 0x41f   : > { %v1960_v18 = vadd.f32 %v1908_v32, %v1836_v9  ;;  %v1715_v55 = vadd.f32 %v1668_v51, %v1583_v24 }
 0x421   : > { %v2084_v0 = vadd.f32 %v2032_v21, %v1960_v18  ;;  %v1582_v21 = vadd.f32 %v4382_v48, %v4381_v20  ;;  %v4387_v20 = vld [vmem:[#allocation69_spill] sm:$0xff] }
 0x423   : > { %v2134_v29 = vsel %vm811_vm1, %v2084_v0, 0.0  ;;  %v2185_v3 = vmul.f32 %v2084_v0, %v2084_v0  ;;  %v2681_v40 = vpack.i.bf16 %v2084_v0, %v3946_v39  ;;  %v1714_v59 = vadd.f32 %v1665_v38, %v1582_v21  ;;  %v1673_v38 = vpop.f32.mrf.mxu1 }
 0x424   : > { %v2135_v54 = vadd.f32 %v2134_v29, %v2133_v58  ;;  %v1787_v25 = vpop.f32.mrf.mxu2  ;;  %v1584_v0 = vadd.f32 %v4385_v52, %v4384_v4 }
 0x425   : > { %v2235_v19 = vsel %vm811_vm1, %v2185_v3, 0.0  ;;  %v1837_v13 = vadd.f32 %v1787_v25, %v1713_v43  ;;  %2682 = vxpose.xlu1.b32.cont [4/16] (narrow) %v2681_v40, 8  ;;  %v2045_v43 = vpop.f32.mrf.mxu0 }
 0x426   : > { %v2236_v31 = vadd.f32 %v2235_v19, %v2234_v53  ;;  %v1716_v51 = vadd.f32 %v1670_v46, %v1584_v0 }
 0x427   : > { %v1961_v32 = vadd.f32 %v1911_v33, %v1837_v13  ;;  %v1918_v33 = vpop.f32.mrf.mxu3 }
 0x429   : > { %v2085_v56 = vadd.f32 %v2035_v47, %v1961_v32  ;;  %v4386_v32 = vld [vmem:[#allocation16_spill] sm:$0xff] }
 0x42b   : > { %v2136_v37 = vsel %vm811_vm1, %v2085_v56, 0.0  ;;  %v2186_v2 = vmul.f32 %v2085_v56, %v2085_v56  ;;  %v2683_v39 = vpack.i.bf16 %v2085_v56, %v3970_v61  ;;  %v1675_v40 = vpop.f32.mrf.mxu1 }
 0x42c   : > { %v2137_v57 = vadd.f32 %v2136_v37, %v2135_v54  ;;  %v1789_v7 = vpop.f32.mrf.mxu2 }
 0x42d   : > { %v2237_v42 = vsel %vm811_vm1, %v2186_v2, 0.0  ;;  %v1838_v10 = vadd.f32 %v1789_v7, %v1714_v59  ;;  %2684 = vxpose.xlu1.b32.cont [5/16] (narrow) %v2683_v39, 8  ;;  %v2047_v39 = vpop.f32.mrf.mxu0 }
 0x42e   : > { %v2238_v44 = vadd.f32 %v2237_v42, %v2236_v31 }
 0x42f   : > { %v1962_v26 = vadd.f32 %v1913_v36, %v1838_v10 }
 0x431   : > { %v2086_v47 = vadd.f32 %v2037_v45, %v1962_v26  ;;  %v1921_v45 = vpop.f32.mrf.mxu3  ;;  %v4388_v26 = vld [vmem:[#allocation50_spill] sm:$0xff] }
 0x433   : > { %v2138_v58 = vsel %vm811_vm1, %v2086_v47, 0.0  ;;  %v2187_v23 = vmul.f32 %v2086_v47, %v2086_v47  ;;  %v2685_v61 = vpack.i.bf16 %v2086_v47, %v3988_v14  ;;  %v1678_v42 = vpop.f32.mrf.mxu1 }
 0x434   : > { %v2139_v50 = vadd.f32 %v2138_v58, %v2137_v57  ;;  %v1792_v9 = vpop.f32.mrf.mxu2 }
 0x435   : > { %v2239_v53 = vsel %vm811_vm1, %v2187_v23, 0.0  ;;  %v1839_v18 = vadd.f32 %v1792_v9, %v1715_v55  ;;  %2686 = vxpose.xlu1.b32.cont [6/16] (narrow) %v2685_v61, 8 }
 0x436   : > { %v2240_v36 = vadd.f32 %v2239_v53, %v2238_v44  ;;  %v2050_v53 = vpop.f32.mrf.mxu0 }
 0x437   : > { %v1963_v5 = vadd.f32 %v1916_v30, %v1839_v18 }
 0x439   : > { %v2087_v6 = vadd.f32 %v2040_v35, %v1963_v5  ;;  %v1585_v35 = vadd.f32 %v4387_v20, %v4386_v32  ;;  %v4390_v5 = vld [vmem:[#allocation34_spill] sm:$0xff] }
 0x43a   : > { %v1587_v4 = vadd.f32 %v4390_v5, %v3793_v12 }
 0x43b   : > { %v2140_v29 = vsel %vm811_vm1, %v2087_v6, 0.0  ;;  %v2188_v3 = vmul.f32 %v2087_v6, %v2087_v6  ;;  %v2687_v14 = vpack.i.bf16 %v2087_v6, %v4008_v28  ;;  %v1717_v21 = vadd.f32 %v1673_v38, %v1585_v35  ;;  %v1923_v28 = vpop.f32.mrf.mxu3 }
 0x43c   : > { %v2141_v54 = vadd.f32 %v2140_v29, %v2139_v50  ;;  %v1794_v25 = vpop.f32.mrf.mxu2  ;;  %v1719_v0 = vadd.f32 %v1678_v42, %v1587_v4 }
 0x43d   : > { %v2241_v19 = vsel %vm811_vm1, %v2188_v3, 0.0  ;;  %v1840_v13 = vadd.f32 %v1794_v25, %v1716_v51  ;;  %2688 = vxpose.xlu1.b32.cont [7/16] (narrow) %v2687_v14, 8 }
 0x43e   : > { %v2242_v30 = vadd.f32 %v2241_v19, %v2240_v36  ;;  %v1680_v36 = vpop.f32.mrf.mxu1  ;;  %v2052_v25 = vpop.f32.mrf.mxu0  ;;  %v4391_v19 = vld [vmem:[#allocation15_spill] sm:$0xff] }
 0x43f   : > { %v1964_v31 = vadd.f32 %v1918_v33, %v1840_v13  ;;  %v4389_v33 = vld [vmem:[#allocation6_spill] sm:$0xff]  ;;  %v1588_v12 = vadd.f32 %v4391_v19, %v3807_v17 }
 0x441   : > { %v2088_v48 = vadd.f32 %v2042_v22, %v1964_v31  ;;  %v1586_v22 = vadd.f32 %v4389_v33, %v4388_v26  ;;  %v1720_v31 = vadd.f32 %v1680_v36, %v1588_v12 }
 0x443   : > { %v2142_v46 = vsel %vm811_vm1, %v2088_v48, 0.0  ;;  %v2189_v56 = vmul.f32 %v2088_v48, %v2088_v48  ;;  %v2689_v59 = vpack.i.bf16 %v2088_v48, %v4018_v16  ;;  %v1718_v24 = vadd.f32 %v1675_v40, %v1586_v22  ;;  %v1926_v50 = vpop.f32.mrf.mxu3 }
 0x444   : > { %v2143_v37 = vadd.f32 %v2142_v46, %v2141_v54  ;;  %v1797_v2 = vpop.f32.mrf.mxu2 }
 0x445   : > { %v2243_v57 = vsel %vm811_vm1, %v2189_v56, 0.0  ;;  %v1841_v7 = vadd.f32 %v1797_v2, %v1717_v21  ;;  %2690 = vxpose.xlu1.b32.cont [8/16] (narrow) %v2689_v59, 8 }
 0x446   : > { %v2244_v10 = vadd.f32 %v2243_v57, %v2242_v30  ;;  %v1683_v30 = vpop.f32.mrf.mxu1  ;;  %v2055_v57 = vpop.f32.mrf.mxu0 }
 0x447   : > { %v1965_v44 = vadd.f32 %v1921_v45, %v1841_v7 }
 0x449   : > { %v2089_v8 = vadd.f32 %v2045_v43, %v1965_v44 }
 0x44b   : > { %v2144_v47 = vsel %vm811_vm1, %v2089_v8, 0.0  ;;  %v2190_v38 = vmul.f32 %v2089_v8, %v2089_v8  ;;  %v2691_v16 = vpack.i.bf16 %v2089_v8, %v4030_v49  ;;  %v1928_v54 = vpop.f32.mrf.mxu3 }
 0x44c   : > { %v2145_v55 = vadd.f32 %v2144_v47, %v2143_v37  ;;  %v1799_v58 = vpop.f32.mrf.mxu2  ;;  %v4393_v37 = vld [vmem:[#allocation37_spill] sm:$0xff] }
 0x44d   : > { %v2245_v23 = vsel %vm811_vm1, %v2190_v38, 0.0  ;;  %v1842_v61 = vadd.f32 %v1799_v58, %v1718_v24  ;;  %2692 = vxpose.xlu1.b32.cont [9/16] (narrow) %v2691_v16, 8  ;;  %v4394_v38 = vld [vmem:[#allocation52_spill] sm:$0xff]  ;;  %v4395_v16 = vld [vmem:[#allocation9_spill] sm:$0xff] }
 0x44e   : > { %v2246_v9 = vadd.f32 %v2245_v23, %v2244_v10  ;;  %v1685_v44 = vpop.f32.mrf.mxu1  ;;  %v2057_v4 = vpop.f32.mrf.mxu0 }
 0x44f   : > { %v1966_v18 = vadd.f32 %v1923_v28, %v1842_v61  ;;  %v4392_v28 = vld [vmem:[#allocation5_spill] sm:$0xff] }
 0x450   : > { %v1589_v2 = vadd.f32 %v4393_v37, %v4392_v28 }
 0x451   : > { %v2090_v52 = vadd.f32 %v2047_v39, %v1966_v18 }
 0x452   : > { %v1721_v7 = vadd.f32 %v1683_v30, %v1589_v2 }
 0x453   : > { %v2146_v6 = vsel %vm811_vm1, %v2090_v52, 0.0  ;;  %v2191_v45 = vmul.f32 %v2090_v52, %v2090_v52  ;;  %v2693_v49 = vpack.i.bf16 %v2090_v52, %v4040_v11  ;;  %v1931_v39 = vpop.f32.mrf.mxu3 }
 0x454   : > { %v2147_v43 = vadd.f32 %v2146_v6, %v2145_v55  ;;  %v1802_v51 = vpop.f32.mrf.mxu2  ;;  %v1590_v55 = vadd.f32 %v4395_v16, %v4394_v38 }
 0x455   : > { %v2247_v29 = vsel %vm811_vm1, %v2191_v45, 0.0  ;;  %v1843_v3 = vadd.f32 %v1802_v51, %v1719_v0  ;;  %2694 = vxpose.xlu1.b32.cont [10/16] (narrow) %v2693_v49, 8  ;;  %v4396_v45 = vld [vmem:[#allocation40_spill] sm:$0xff] }
 0x456   : > { %v2248_v14 = vadd.f32 %v2247_v29, %v2246_v9  ;;  %v1722_v23 = vadd.f32 %v1685_v44, %v1590_v55  ;;  %v1688_v52 = vpop.f32.mrf.mxu1  ;;  %v1591_v49 = vadd.f32 %v4396_v45, %v3862_v62  ;;  %v4397_v62 = vld [vmem:[#allocation12_spill] sm:$0xff] }
 0x457   : > { %v1967_v40 = vadd.f32 %v1926_v50, %v1843_v3 }
 0x458   : > { %v1723_v51 = vadd.f32 %v1688_v52, %v1591_v49 }
 0x459   : > { %v2091_v13 = vadd.f32 %v2050_v53, %v1967_v40 }
 0x45b   : > { %v2148_v32 = vsel %vm811_vm1, %v2091_v13, 0.0  ;;  %v2192_v20 = vmul.f32 %v2091_v13, %v2091_v13  ;;  %v2695_v11 = vpack.i.bf16 %v2091_v13, %v4052_v41  ;;  %v2060_v13 = vpop.f32.mrf.mxu0 }
 0x45c   : > { %v2149_v35 = vadd.f32 %v2148_v32, %v2147_v43  ;;  %v1804_v48 = vpop.f32.mrf.mxu2  ;;  %v1592_v32 = vadd.f32 %v4397_v62, %v3873_v1 }
 0x45d   : > { %v2249_v21 = vsel %vm811_vm1, %v2192_v20, 0.0  ;;  %v1844_v46 = vadd.f32 %v1804_v48, %v1720_v31  ;;  %2696 = vxpose.xlu1.b32.cont [11/16] (narrow) %v2695_v11, 8 }
 0x45e   : > { %v2250_v56 = vadd.f32 %v2249_v21, %v2248_v14  ;;  %v1690_v31 = vpop.f32.mrf.mxu1 }
 0x45f   : > { %v1968_v59 = vadd.f32 %v1928_v54, %v1844_v46  ;;  %v1724_v11 = vadd.f32 %v1690_v31, %v1592_v32 }
 0x461   : > { %v2092_v17 = vadd.f32 %v2052_v25, %v1968_v59 }
 0x463   : > { %v2150_v42 = vsel %vm811_vm1, %v2092_v17, 0.0  ;;  %v2193_v10 = vmul.f32 %v2092_v17, %v2092_v17  ;;  %v2697_v41 = vpack.i.bf16 %v2092_v17, %v4060_v63  ;;  %v1933_v63 = vpop.f32.mrf.mxu3  ;;  %v2062_v17 = vpop.f32.mrf.mxu0 }
 0x464   : > { %v2151_v26 = vadd.f32 %v2150_v42, %v2149_v35  ;;  %v1807_v33 = vpop.f32.mrf.mxu2 }
 0x465   : > { %v2251_v22 = vsel %vm811_vm1, %v2193_v10, 0.0  ;;  %v1845_v8 = vadd.f32 %v1807_v33, %v1721_v7  ;;  %2698 = vxpose.xlu1.b32.cont [12/16] (narrow) %v2697_v41, 8 }
 0x466   : > { %v2252_v24 = vadd.f32 %v2251_v22, %v2250_v56 }
 0x467   : > { %v1969_v47 = vadd.f32 %v1931_v39, %v1845_v8 }
 0x469   : > { %v2093_v58 = vadd.f32 %v2055_v57, %v1969_v47 }
 0x46b   : > { %v2152_v61 = vsel %vm811_vm1, %v2093_v58, 0.0  ;;  %v2194_v50 = vmul.f32 %v2093_v58, %v2093_v58  ;;  %v2699_v9 = vpack.i.bf16 %v2093_v58, %v4070_v60  ;;  %v1936_v40 = vpop.f32.mrf.mxu3 }
 0x46c   : > { %v2153_v53 = vadd.f32 %v2152_v61, %v2151_v26  ;;  %v1809_v18 = vpop.f32.mrf.mxu2 }
 0x46d   : > { %v2253_v36 = vsel %vm811_vm1, %v2194_v50, 0.0  ;;  %v1846_v5 = vadd.f32 %v1809_v18, %v1722_v23  ;;  %2700 = vxpose.xlu1.b32.cont [13/16] (narrow) %v2699_v9, 8 }
 0x46e   : > { %v2254_v0 = vadd.f32 %v2253_v36, %v2252_v24 }
 0x46f   : > { %v1970_v6 = vadd.f32 %v1933_v63, %v1846_v5 }
 0x471   : > { %v2094_v43 = vadd.f32 %v2057_v4, %v1970_v6 }
 0x473   : > { %v2154_v29 = vsel %vm811_vm1, %v2094_v43, 0.0  ;;  %v2195_v3 = vmul.f32 %v2094_v43, %v2094_v43  ;;  %v2701_v60 = vpack.i.bf16 %v2094_v43, %v4078_v27  ;;  %v1938_v37 = vpop.f32.mrf.mxu3 }
 0x474   : > { %v2155_v14 = vadd.f32 %v2154_v29, %v2153_v53  ;;  %v1812_v54 = vpop.f32.mrf.mxu2 }
 0x475   : > { %v2255_v25 = vsel %vm811_vm1, %v2195_v3, 0.0  ;;  %v1847_v19 = vadd.f32 %v1812_v54, %v1723_v51  ;;  %2702 = vxpose.xlu1.b32.cont [14/16] (narrow) %v2701_v60, 8 }
 0x476   : > { %v2256_v12 = vadd.f32 %v2255_v25, %v2254_v0 }
 0x477   : > { %v1971_v30 = vadd.f32 %v1936_v40, %v1847_v19 }
 0x479   : > { %v2095_v20 = vadd.f32 %v2060_v13, %v1971_v30 }
 0x47b   : > { %v2156_v35 = vsel %vm811_vm1, %v2095_v20, 0.0  ;;  %v2196_v48 = vmul.f32 %v2095_v20, %v2095_v20  ;;  %v2703_v27 = vpack.i.bf16 %v2095_v20, %v4087_v15 }
 0x47c   : > { %v2157_v21 = vadd.f32 %v2156_v35, %v2155_v14  ;;  %v1814_v46 = vpop.f32.mrf.mxu2 }
 0x47d   : > { %v2257_v56 = vsel %vm811_vm1, %v2196_v48, 0.0  ;;  %v1848_v59 = vadd.f32 %v1814_v46, %v1724_v11  ;;  %2704 = vxpose.xlu1.b32.cont [15/16] (narrow) %v2703_v27, 8 }
 0x47e   : > { %v2258_v28 = vadd.f32 %v2257_v56, %v2256_v12 }
 0x47f   : > { %v1972_v2 = vadd.f32 %v1938_v37, %v1848_v59 }
 0x481   : > { %v2096_v39 = vadd.f32 %v2062_v17, %v1972_v2 }
 0x483   : > { %v2158_v1 = vsel %vm811_vm1, %v2096_v39, 0.0  ;;  %v2197_v57 = vmul.f32 %v2096_v39, %v2096_v39  ;;  %v2705_v7 = vpack.i.bf16 %v2096_v39, %v4097_v34 }
 0x484   : > { %v2159_v42 = vadd.f32 %v2158_v1, %v2157_v21 }
 0x485   : > { %v2259_v15 = vsel %vm811_vm1, %v2197_v57, 0.0  ;;  %2706 = vxpose.xlu1.b32.end [16/16] (narrow) %v2705_v7, 8 }
 0x486   : > { %v2160_v10 = vrot.slane %v2159_v42, 4  ;;  %v2260_v41 = vadd.f32 %v2259_v15, %v2258_v28 }
 0x488   : > { %v2161_v44 = vadd.f32 %v2160_v10, %v2159_v42  ;;  %v2261_v26 = vrot.slane %v2260_v41, 4 }
 0x48a   : > { %v2162_v33 = vrot.slane %v2161_v44, 2  ;;  %v2262_v22 = vadd.f32 %v2261_v26, %v2260_v41 }
 0x48c   : > { %v2163_v8 = vadd.f32 %v2162_v33, %v2161_v44  ;;  %v2263_v24 = vrot.slane %v2262_v22, 2 }
 0x48e   : > { %v2164_v47 = vrot.slane %v2163_v8, 1  ;;  %v2264_v38 = vadd.f32 %v2263_v24, %v2262_v22 }
 0x490   : > { %v2265_v16 = vrot.slane %v2264_v38, 1  ;;  %v2165_v34 = vadd.f32 %v2164_v47, %v2163_v8 }
 0x492   : > { %v2266_v55 = vadd.f32 %v2265_v16, %v2264_v38 }
 0x494   : > { %v2268_v58 = vsel %vm587_vm2, %v2165_v34, %v2266_v55 }
 0x495   : > { %2270 = vst.msk [vmem:[%s235_s27] sm:$0x3] %vm2269_vm7, %v2268_v58 }
 0x4b1   : > { %v2707_v23 = vpop.trf.xlu1 }
 0x4b2   : > { %v2711_v61 = vunpack.i.h.bf16 %v2707_v23  ;;  %v2708_v50 = vunpack.i.l.bf16 %v2707_v23 }
 0x4b4   : > { %v2335_v9 = vpack.c.bf16 %v2711_v61, %v2708_v50 }
 0x4b6   : > { %2336 = vst [vmem:[%s231_s30] sm:$0xff] %v2335_v9 }
 0x4b7 PF: > { %s16_s18 = sadd.s32 1, %s2718_s18  }
 0x4b8   : > { %p13_p4 = scmp.ge.s32.totalorder %s16_s18, 4  }
 0x4ba   :  { %15 = sbr.rel (!%p13_p4) target bundleno = 1 (0x1), region = 78 }

</bundles_post_ra>
